<compile_context>
chip_gen: v5e
topology: v5e:2x2
jax: 0.10.0
libtpu: 0.0.40
codegen_flags: <defaults>
</compile_context>

<pallas_src>
import functools

import jax
import jax.numpy as jnp
from jax.experimental import pallas as pl
from jax.experimental.pallas import tpu as pltpu

IN_F, H1, H2, H3, OUT_F = 784, 256, 128, 64, 10
IN_PAD, H3_PAD, OUT_PAD = 896, 128, 128   # lane-dense padded dims


def _mlp_kernel(x_ref, w1_ref, b1_ref, w2_ref, b2_ref, w3_ref, b3_ref,
                w4_ref, b4_ref, out_ref):
    # hidden_1: 896 -> 256, ReLU   (bf16 matmul, f32 accumulate)
    h = jnp.dot(x_ref[...], w1_ref[...],
                preferred_element_type=jnp.float32) + b1_ref[...]
    h = jnp.maximum(h, 0.0)
    # hidden_2: 256 -> 128, ReLU
    h = jnp.dot(h.astype(jnp.bfloat16), w2_ref[...],
                preferred_element_type=jnp.float32) + b2_ref[...]
    h = jnp.maximum(h, 0.0)
    # hidden_3: 128 -> 128 (logical 64, zero-padded), ReLU
    h = jnp.dot(h.astype(jnp.bfloat16), w3_ref[...],
                preferred_element_type=jnp.float32) + b3_ref[...]
    h = jnp.maximum(h, 0.0)
    # hidden_4: 128 -> 128 (logical 10, zero-padded) -> logits
    logits = jnp.dot(h.astype(jnp.bfloat16), w4_ref[...],
                     preferred_element_type=jnp.float32) + b4_ref[...]
    # Mask padded logit lanes to -inf so they do not affect the log-softmax.
    lane = jax.lax.broadcasted_iota(jnp.int32, logits.shape, 1)
    logits = jnp.where(lane < OUT_F, logits, -jnp.inf)
    # Numerically stable log_softmax over the class axis (f32).
    m = jnp.max(logits, axis=-1, keepdims=True)
    shifted = logits - m
    lse = jnp.log(jnp.sum(jnp.exp(shifted), axis=-1, keepdims=True))
    out_ref[...] = shifted - lse


@functools.partial(jax.jit, static_argnames=("tm",))
def classifier_forward(x, params, *, tm=256):
    """x: (B, 1, 28, 28) float32 -> (B, 10) float32 log-probs."""
    B = x.shape[0]
    x2d = x.reshape(B, IN_F).astype(jnp.float32)          # x.view(x.shape[0], 784)

    # Pad batch to a multiple of TM and features 784 -> 896; cast to bf16 so the
    # streaming input DMA is half-width.
    b_pad = pl.cdiv(B, tm) * tm
    x_p = jnp.pad(x2d, ((0, b_pad - B), (0, IN_PAD - IN_F))).astype(jnp.bfloat16)

    w1, b1, w2, b2, w3, b3, w4, b4 = params
    n_tiles = b_pad // tm

    # Weights/biases: full-shape blocks, constant index_map -> resident in VMEM.
    const2d = lambda shp: pl.BlockSpec(shp, lambda i: (0, 0))

    grid_spec = pltpu.PrefetchScalarGridSpec(
        num_scalar_prefetch=0,
        grid=(n_tiles,),
        in_specs=[
            pl.BlockSpec((tm, IN_PAD), lambda i: (i, 0)),   # x tile (streams)
            const2d((IN_PAD, H1)), const2d((1, H1)),
            const2d((H1, H2)),     const2d((1, H2)),
            const2d((H2, H3_PAD)), const2d((1, H3_PAD)),
            const2d((H3_PAD, OUT_PAD)), const2d((1, OUT_PAD)),
        ],
        out_specs=pl.BlockSpec((tm, OUT_PAD), lambda i: (i, 0)),
    )

    out_padded = pl.pallas_call(
        _mlp_kernel,
        out_shape=jax.ShapeDtypeStruct((b_pad, OUT_PAD), jnp.float32),
        grid_spec=grid_spec,
        compiler_params=pltpu.CompilerParams(
            dimension_semantics=("parallel",)),   # shard batch tiles across TCs (v7x)
    )(x_p, w1, b1, w2, b2, w3, b3, w4, b4)

    return out_padded[:B, :OUT_F]


def init_params(key):
    """PyTorch nn.Linear-style init: U(-1/sqrt(fan_in), 1/sqrt(fan_in)).
    Weights stored as (in_features, out_features) so the kernel computes x @ W + b."""
    dims = [(IN_F, H1), (H1, H2), (H2, H3), (H3, OUT_F)]
    params = []
    for (fan_in, fan_out) in dims:
        key, kw, kb = jax.random.split(key, 3)
        bound = 1.0 / jnp.sqrt(fan_in)
        w = jax.random.uniform(kw, (fan_in, fan_out), jnp.float32,
                               minval=-bound, maxval=bound)
        b = jax.random.uniform(kb, (1, fan_out), jnp.float32,
                               minval=-bound, maxval=bound)
        params.extend([w, b])
    return tuple(params)


def prepare_params(params):
    """Zero-pad narrow dims to lane-dense tiles and cast weights to bf16
    (biases stay f32 for the f32 epilogue)."""
    w1, b1, w2, b2, w3, b3, w4, b4 = params
    w1p = jnp.pad(w1, ((0, IN_PAD - IN_F), (0, 0)))            # 896 x 256
    w3p = jnp.pad(w3, ((0, 0), (0, H3_PAD - H3)))              # 128 x 128
    b3p = jnp.pad(b3, ((0, 0), (0, H3_PAD - H3)))              # 1 x 128
    w4p = jnp.pad(w4, ((0, H3_PAD - H3), (0, OUT_PAD - OUT_F)))  # 128 x 128
    b4p = jnp.pad(b4, ((0, 0), (0, OUT_PAD - OUT_F)))          # 1 x 128
    bf = lambda a: a.astype(jnp.bfloat16)
    return (bf(w1p), b1, bf(w2), b2, bf(w3p), b3p, bf(w4p), b4p)


def _reference(x, params):
    """Pure-JAX reference using the same bf16-weight / f32-accumulate math."""
    w1, b1, w2, b2, w3, b3, w4, b4 = params
    h = x.reshape(x.shape[0], IN_F).astype(jnp.bfloat16)
    for (w, b) in [(w1, b1), (w2, b2), (w3, b3)]:
        h = jnp.dot(h, w.astype(jnp.bfloat16),
                    preferred_element_type=jnp.float32) + b
        h = jnp.maximum(h, 0.0).astype(jnp.bfloat16)
    logits = jnp.dot(h, w4.astype(jnp.bfloat16),
                     preferred_element_type=jnp.float32) + b4
    return jax.nn.log_softmax(logits, axis=-1)


if __name__ == "__main__":
    key = jax.random.PRNGKey(0)
    key, kx = jax.random.split(key)

    B = 8
    x = jax.random.normal(kx, (B, 1, 28, 28), jnp.float32)  # NCHW, like MNIST

    raw_params = init_params(key)
    params = prepare_params(raw_params)

    out = classifier_forward(x, params)
    out = jax.block_until_ready(out)

    assert out.shape == (B, OUT_F)
    # log-probs must exponentiate-and-sum to ~1 per row
    row_sums = jnp.exp(out).sum(axis=1)
    assert bool(jnp.all(jnp.abs(row_sums - 1.0) < 1e-4))
    # cross-check against a pure-JAX reference (same bf16/f32 math, no padding)
    ref = _reference(x, raw_params)
    assert bool(jnp.max(jnp.abs(out - ref)) < 5e-2)

    print("KERNEL_OK")
</pallas_src>

<mosaic_0001>
module attributes {stable_mosaic.version = 11 : i64} {
  func.func @_mlp_kernel(%arg0: i32, %arg1: memref<256x896xbf16, #tpu.memory_space<vmem>>, %arg2: memref<896x256xbf16, #tpu.memory_space<vmem>>, %arg3: memref<1x256xf32, #tpu.memory_space<vmem>>, %arg4: memref<256x128xbf16, #tpu.memory_space<vmem>>, %arg5: memref<1x128xf32, #tpu.memory_space<vmem>>, %arg6: memref<128x128xbf16, #tpu.memory_space<vmem>>, %arg7: memref<1x128xf32, #tpu.memory_space<vmem>>, %arg8: memref<128x128xbf16, #tpu.memory_space<vmem>>, %arg9: memref<1x128xf32, #tpu.memory_space<vmem>>, %arg10: memref<256x128xf32, #tpu.memory_space<vmem>>) attributes {dimension_semantics = [#tpu.dimension_semantics<parallel>], iteration_bounds = array<i64: 1>, scalar_prefetch = 0 : i64, scratch_operands = 0 : i64, tpu.core_type = #tpu.core_type<tc>, window_params = [{transform_indices = @transform_0, window_bounds = array<i64: 256, 896>}, {pipeline_mode = #tpu.pipeline_mode<synchronous>, transform_indices = @transform_1, window_bounds = array<i64: 896, 256>}, {pipeline_mode = #tpu.pipeline_mode<synchronous>, transform_indices = @transform_2, window_bounds = array<i64: 1, 256>}, {pipeline_mode = #tpu.pipeline_mode<synchronous>, transform_indices = @transform_3, window_bounds = array<i64: 256, 128>}, {pipeline_mode = #tpu.pipeline_mode<synchronous>, transform_indices = @transform_4, window_bounds = array<i64: 1, 128>}, {pipeline_mode = #tpu.pipeline_mode<synchronous>, transform_indices = @transform_5, window_bounds = array<i64: 128, 128>}, {pipeline_mode = #tpu.pipeline_mode<synchronous>, transform_indices = @transform_6, window_bounds = array<i64: 1, 128>}, {pipeline_mode = #tpu.pipeline_mode<synchronous>, transform_indices = @transform_7, window_bounds = array<i64: 128, 128>}, {pipeline_mode = #tpu.pipeline_mode<synchronous>, transform_indices = @transform_8, window_bounds = array<i64: 1, 128>}, {transform_indices = @transform_9, window_bounds = array<i64: 256, 128>}]} {
    %c0 = arith.constant 0 : index
    %c0_0 = arith.constant 0 : index
    %0 = vector.load %arg1[%c0, %c0_0] : memref<256x896xbf16, #tpu.memory_space<vmem>>, vector<256x896xbf16>
    %c0_1 = arith.constant 0 : index
    %c0_2 = arith.constant 0 : index
    %1 = vector.load %arg2[%c0_1, %c0_2] : memref<896x256xbf16, #tpu.memory_space<vmem>>, vector<896x256xbf16>
    %cst = arith.constant dense<0.000000e+00> : vector<256x256xf32>
    %2 = tpu.matmul %0, %1, %cst {dimension_numbers = #tpu.dot_dimension_numbers<[1], [0], [0], [1], [0, 0, 1, 1], [], []>} : vector<256x896xbf16>, vector<896x256xbf16>, vector<256x256xf32> -> vector<256x256xf32>
    %c0_3 = arith.constant 0 : index
    %c0_4 = arith.constant 0 : index
    %3 = vector.load %arg3[%c0_3, %c0_4] : memref<1x256xf32, #tpu.memory_space<vmem>>, vector<1x256xf32>
    %4 = vector.broadcast %3 : vector<1x256xf32> to vector<256x256xf32>
    %5 = arith.addf %2, %4 : vector<256x256xf32>
    %cst_5 = arith.constant 0.000000e+00 : f32
    %6 = vector.broadcast %cst_5 : f32 to vector<256x256xf32>
    %7 = arith.maximumf %5, %6 : vector<256x256xf32>
    %8 = arith.truncf %7 : vector<256x256xf32> to vector<256x256xbf16>
    %c0_6 = arith.constant 0 : index
    %c0_7 = arith.constant 0 : index
    %9 = vector.load %arg4[%c0_6, %c0_7] : memref<256x128xbf16, #tpu.memory_space<vmem>>, vector<256x128xbf16>
    %cst_8 = arith.constant dense<0.000000e+00> : vector<256x128xf32>
    %10 = tpu.matmul %8, %9, %cst_8 {dimension_numbers = #tpu.dot_dimension_numbers<[1], [0], [0], [1], [0, 0, 1, 1], [], []>} : vector<256x256xbf16>, vector<256x128xbf16>, vector<256x128xf32> -> vector<256x128xf32>
    %c0_9 = arith.constant 0 : index
    %c0_10 = arith.constant 0 : index
    %11 = vector.load %arg5[%c0_9, %c0_10] : memref<1x128xf32, #tpu.memory_space<vmem>>, vector<1x128xf32>
    %12 = vector.broadcast %11 : vector<1x128xf32> to vector<256x128xf32>
    %13 = arith.addf %10, %12 : vector<256x128xf32>
    %cst_11 = arith.constant 0.000000e+00 : f32
    %14 = vector.broadcast %cst_11 : f32 to vector<256x128xf32>
    %15 = arith.maximumf %13, %14 : vector<256x128xf32>
    %16 = arith.truncf %15 : vector<256x128xf32> to vector<256x128xbf16>
    %c0_12 = arith.constant 0 : index
    %c0_13 = arith.constant 0 : index
    %17 = vector.load %arg6[%c0_12, %c0_13] : memref<128x128xbf16, #tpu.memory_space<vmem>>, vector<128x128xbf16>
    %cst_14 = arith.constant dense<0.000000e+00> : vector<256x128xf32>
    %18 = tpu.matmul %16, %17, %cst_14 {dimension_numbers = #tpu.dot_dimension_numbers<[1], [0], [0], [1], [0, 0, 1, 1], [], []>} : vector<256x128xbf16>, vector<128x128xbf16>, vector<256x128xf32> -> vector<256x128xf32>
    %c0_15 = arith.constant 0 : index
    %c0_16 = arith.constant 0 : index
    %19 = vector.load %arg7[%c0_15, %c0_16] : memref<1x128xf32, #tpu.memory_space<vmem>>, vector<1x128xf32>
    %20 = vector.broadcast %19 : vector<1x128xf32> to vector<256x128xf32>
    %21 = arith.addf %18, %20 : vector<256x128xf32>
    %cst_17 = arith.constant 0.000000e+00 : f32
    %22 = vector.broadcast %cst_17 : f32 to vector<256x128xf32>
    %23 = arith.maximumf %21, %22 : vector<256x128xf32>
    %24 = arith.truncf %23 : vector<256x128xf32> to vector<256x128xbf16>
    %c0_18 = arith.constant 0 : index
    %c0_19 = arith.constant 0 : index
    %25 = vector.load %arg8[%c0_18, %c0_19] : memref<128x128xbf16, #tpu.memory_space<vmem>>, vector<128x128xbf16>
    %cst_20 = arith.constant dense<0.000000e+00> : vector<256x128xf32>
    %26 = tpu.matmul %24, %25, %cst_20 {dimension_numbers = #tpu.dot_dimension_numbers<[1], [0], [0], [1], [0, 0, 1, 1], [], []>} : vector<256x128xbf16>, vector<128x128xbf16>, vector<256x128xf32> -> vector<256x128xf32>
    %c0_21 = arith.constant 0 : index
    %c0_22 = arith.constant 0 : index
    %27 = vector.load %arg9[%c0_21, %c0_22] : memref<1x128xf32, #tpu.memory_space<vmem>>, vector<1x128xf32>
    %28 = vector.broadcast %27 : vector<1x128xf32> to vector<256x128xf32>
    %29 = arith.addf %26, %28 : vector<256x128xf32>
    %30 = tpu.iota {dimensions = array<i32: 1>} : vector<256x128xi32>
    %c10_i32 = arith.constant 10 : i32
    %31 = vector.broadcast %c10_i32 : i32 to vector<256x128xi32>
    %32 = arith.cmpi slt, %30, %31 : vector<256x128xi32>
    %cst_23 = arith.constant 0xFF800000 : f32
    %33 = vector.broadcast %cst_23 : f32 to vector<256x128xf32>
    %34 = arith.select %32, %29, %33 : vector<256x128xi1>, vector<256x128xf32>
    %cst_24 = arith.constant dense<0xFF800000> : vector<256xf32>
    %35 = vector.multi_reduction <maximumf>, %34, %cst_24 [1] : vector<256x128xf32> to vector<256xf32>
    %36 = vector.shape_cast %35 : vector<256xf32> to vector<256x1xf32>
    %37 = vector.broadcast %36 : vector<256x1xf32> to vector<256x128xf32>
    %38 = arith.subf %34, %37 : vector<256x128xf32>
    %39 = math.exp %38 : vector<256x128xf32>
    %cst_25 = arith.constant dense<0.000000e+00> : vector<256xf32>
    %40 = vector.multi_reduction <add>, %39, %cst_25 [1] : vector<256x128xf32> to vector<256xf32>
    %41 = vector.shape_cast %40 : vector<256xf32> to vector<256x1xf32>
    %42 = math.log %41 : vector<256x1xf32>
    %43 = vector.broadcast %42 : vector<256x1xf32> to vector<256x128xf32>
    %44 = arith.subf %38, %43 : vector<256x128xf32>
    %c0_26 = arith.constant 0 : index
    %c0_27 = arith.constant 0 : index
    %45 = vector.load %arg10[%c0_26, %c0_27] : memref<256x128xf32, #tpu.memory_space<vmem>>, vector<256x128xf32>
    tpu.vector_store %arg10[%c0_26, %c0_27], %44 {strides = array<i32>} : memref<256x128xf32, #tpu.memory_space<vmem>>, vector<256x128xf32>,
    return
  }
  func.func @transform_0(%arg0: i32) -> (i32, i32) {
    %c0_i32 = arith.constant 0 : i32
    %c0_i32_0 = arith.constant 0 : i32
    return %arg0, %c0_i32 : i32, i32
  }
  func.func @transform_1(%arg0: i32) -> (i32, i32) {
    %c0_i32 = arith.constant 0 : i32
    %c0_i32_0 = arith.constant 0 : i32
    %c0_i32_1 = arith.constant 0 : i32
    return %c0_i32, %c0_i32_0 : i32, i32
  }
  func.func @transform_2(%arg0: i32) -> (i32, i32) {
    %c0_i32 = arith.constant 0 : i32
    %c0_i32_0 = arith.constant 0 : i32
    %c0_i32_1 = arith.constant 0 : i32
    return %c0_i32, %c0_i32_0 : i32, i32
  }
  func.func @transform_3(%arg0: i32) -> (i32, i32) {
    %c0_i32 = arith.constant 0 : i32
    %c0_i32_0 = arith.constant 0 : i32
    %c0_i32_1 = arith.constant 0 : i32
    return %c0_i32, %c0_i32_0 : i32, i32
  }
  func.func @transform_4(%arg0: i32) -> (i32, i32) {
    %c0_i32 = arith.constant 0 : i32
    %c0_i32_0 = arith.constant 0 : i32
    %c0_i32_1 = arith.constant 0 : i32
    return %c0_i32, %c0_i32_0 : i32, i32
  }
  func.func @transform_5(%arg0: i32) -> (i32, i32) {
    %c0_i32 = arith.constant 0 : i32
    %c0_i32_0 = arith.constant 0 : i32
    %c0_i32_1 = arith.constant 0 : i32
    return %c0_i32, %c0_i32_0 : i32, i32
  }
  func.func @transform_6(%arg0: i32) -> (i32, i32) {
    %c0_i32 = arith.constant 0 : i32
    %c0_i32_0 = arith.constant 0 : i32
    %c0_i32_1 = arith.constant 0 : i32
    return %c0_i32, %c0_i32_0 : i32, i32
  }
  func.func @transform_7(%arg0: i32) -> (i32, i32) {
    %c0_i32 = arith.constant 0 : i32
    %c0_i32_0 = arith.constant 0 : i32
    %c0_i32_1 = arith.constant 0 : i32
    return %c0_i32, %c0_i32_0 : i32, i32
  }
  func.func @transform_8(%arg0: i32) -> (i32, i32) {
    %c0_i32 = arith.constant 0 : i32
    %c0_i32_0 = arith.constant 0 : i32
    %c0_i32_1 = arith.constant 0 : i32
    return %c0_i32, %c0_i32_0 : i32, i32
  }
  func.func @transform_9(%arg0: i32) -> (i32, i32) {
    %c0_i32 = arith.constant 0 : i32
    %c0_i32_0 = arith.constant 0 : i32
    return %arg0, %c0_i32 : i32, i32
  }
}

</mosaic_0001>

<bundles_post_ra>
// kernel: classifier_forward.1
= control target key start
LH: loop header
LB: loop body
LE: loop exit
PB: predicated region body
PF: predicated region fallthrough
CT: control target
= control target key end

     0   :  { %s8221_s1 = inlined_call_operand.vmem [shape: bf16[896,256], index: 1, kind: input, shape index: {}]   ;;  %s8222_s0 = inlined_call_operand.vmem [shape: bf16[256,896], index: 0, kind: input, shape index: {}]   ;;  %s8223_s2 = inlined_call_operand.vmem [shape: f32[1,256], index: 2, kind: input, shape index: {}]   ;;  %s8224_s3 = inlined_call_operand.vmem [shape: bf16[256,128], index: 3, kind: input, shape index: {}]   ;;  %s8225_s5 = inlined_call_operand.vmem [shape: bf16[128,128], index: 5, kind: input, shape index: {}]   ;;  %s8226_s7 = inlined_call_operand.vmem [shape: bf16[128,128], index: 7, kind: input, shape index: {}]   ;;  %s8227_s4 = inlined_call_operand.vmem [shape: f32[1,128], index: 4, kind: input, shape index: {}]   ;;  %s8228_s6 = inlined_call_operand.vmem [shape: f32[1,128], index: 6, kind: input, shape index: {}]   ;;  %s8229_s8 = inlined_call_operand.vmem [shape: f32[1,128], index: 8, kind: input, shape index: {}]   ;;  %s8230_s9 = inlined_call_operand.vmem [shape: f32[256,128], index: 9, kind: output, shape index: {}]  }
   0x1   :  { %v4373_v0 = vld [vmem:[%s8221_s1 + $0x70] sm:$0xf]  ;;  %v5018_v1 = vld [vmem:[%s8221_s1 + $0x74] sm:$0xf0]  ;;  %v4365_v5 = vld [vmem:[%s8221_s1 + $0x60] sm:$0xf] }
   0x2   :  { %v4437_v2 = vld [vmem:[%s8221_s1 + $0xf0] sm:$0xf]  ;;  %v4374_v3 = vor.u32 %v5018_v1, %v4373_v0  ;;  %v5034_v4 = vld [vmem:[%s8221_s1 + $0xf4] sm:$0xf0]  ;;  %v5016_v6 = vld [vmem:[%s8221_s1 + $0x64] sm:$0xf0] }
   0x3   :  { %v4438_v7 = vor.u32 %v5034_v4, %v4437_v2  ;;  %v4429_v8 = vld [vmem:[%s8221_s1 + $0xe0] sm:$0xf]  ;;  %v5032_v9 = vld [vmem:[%s8221_s1 + $0xe4] sm:$0xf0]  ;;  %v4366_v10 = vor.u32 %v5016_v6, %v4365_v5  ;;  %v4357_v12 = vld [vmem:[%s8221_s1 + $0x50] sm:$0xf] }
   0x4   :  { %5147 = vmatpush.bf16.msra.mxu2 %v4374_v3  ;;  %1414 = vmatpush.bf16.msra.mxu0 %v4374_v3  ;;  %v4430_v11 = vor.u32 %v5032_v9, %v4429_v8  ;;  %v5014_v13 = vld [vmem:[%s8221_s1 + $0x54] sm:$0xf0]  ;;  %v4421_v14 = vld [vmem:[%s8221_s1 + $0xd0] sm:$0xf]  ;;  %v4349_v18 = vld [vmem:[%s8221_s1 + $0x40] sm:$0xf] }
   0x5   :  { %5155 = vmatpush.bf16.msra.mxu3 %v4438_v7  ;;  %1503 = vmatpush.bf16.msra.mxu1 %v4438_v7  ;;  %v5030_v15 = vld [vmem:[%s8221_s1 + $0xd4] sm:$0xf0]  ;;  %v4358_v16 = vor.u32 %v5014_v13, %v4357_v12  ;;  %v5012_v19 = vld [vmem:[%s8221_s1 + $0x44] sm:$0xf0]  ;;  %v4413_v20 = vld [vmem:[%s8221_s1 + $0xc0] sm:$0xf] }
   0x6   :  { %v4422_v17 = vor.u32 %v5030_v15, %v4421_v14  ;;  %v5028_v21 = vld [vmem:[%s8221_s1 + $0xc4] sm:$0xf0]  ;;  %v4350_v22 = vor.u32 %v5012_v19, %v4349_v18  ;;  %v4341_v24 = vld [vmem:[%s8221_s1 + $0x30] sm:$0xf]  ;;  %v5010_v25 = vld [vmem:[%s8221_s1 + $0x34] sm:$0xf0] }
   0x7   :  { %v4414_v23 = vor.u32 %v5028_v21, %v4413_v20  ;;  %v4405_v26 = vld [vmem:[%s8221_s1 + $0xb0] sm:$0xf]  ;;  %v5026_v27 = vld [vmem:[%s8221_s1 + $0xb4] sm:$0xf0]  ;;  %v4342_v28 = vor.u32 %v5010_v25, %v4341_v24  ;;  %v4333_v30 = vld [vmem:[%s8221_s1 + $0x20] sm:$0xf] }
   0x8   :  { %5148 = vmatpush.bf16.msra.mxu2 %v4366_v10  ;;  %1415 = vmatpush.bf16.msra.mxu0 %v4366_v10  ;;  %v4406_v29 = vor.u32 %v5026_v27, %v4405_v26  ;;  %v5008_v31 = vld [vmem:[%s8221_s1 + $0x24] sm:$0xf0]  ;;  %v4397_v32 = vld [vmem:[%s8221_s1 + $0xa0] sm:$0xf]  ;;  %v4325_v36 = vld [vmem:[%s8221_s1 + $0x10] sm:$0xf] }
   0x9   :  { %5156 = vmatpush.bf16.msra.mxu3 %v4430_v11  ;;  %1504 = vmatpush.bf16.msra.mxu1 %v4430_v11  ;;  %v5024_v33 = vld [vmem:[%s8221_s1 + $0xa4] sm:$0xf0]  ;;  %v4334_v34 = vor.u32 %v5008_v31, %v4333_v30  ;;  %v5006_v37 = vld [vmem:[%s8221_s1 + $0x14] sm:$0xf0]  ;;  %v4389_v38 = vld [vmem:[%s8221_s1 + $0x90] sm:$0xf] }
   0xa   :  { %v4398_v35 = vor.u32 %v5024_v33, %v4397_v32  ;;  %v5022_v39 = vld [vmem:[%s8221_s1 + $0x94] sm:$0xf0]  ;;  %v4326_v40 = vor.u32 %v5006_v37, %v4325_v36  ;;  %v4317_v42 = vld [vmem:[%s8221_s1] sm:$0xf]  ;;  %v5004_v43 = vld [vmem:[%s8221_s1 + $0x4] sm:$0xf0] }
   0xb   :  { %v4390_v41 = vor.u32 %v5022_v39, %v4389_v38  ;;  %v4381_v44 = vld [vmem:[%s8221_s1 + $0x80] sm:$0xf]  ;;  %v5020_v45 = vld [vmem:[%s8221_s1 + $0x84] sm:$0xf0]  ;;  %v4501_v46 = vld [vmem:[%s8221_s1 + $0x170] sm:$0xf]  ;;  %v4318_v51 = vor.u32 %v5004_v43, %v4317_v42 }
   0xc   :  { %5149 = vmatpush.bf16.msra.mxu2 %v4358_v16  ;;  %1416 = vmatpush.bf16.msra.mxu0 %v4358_v16  ;;  %v5050_v47 = vld [vmem:[%s8221_s1 + $0x174] sm:$0xf0]  ;;  %v4093_v48 = vld [vmem:[%s8222_s0 + $0x1c0] sm:$0xf]  ;;  %v4565_v49 = vld [vmem:[%s8221_s1 + $0x1f0] sm:$0xf]  ;;  %v4382_v55 = vor.u32 %v5020_v45, %v4381_v44 }
   0xd   :  { %5157 = vmatpush.bf16.msra.mxu3 %v4422_v17  ;;  %1505 = vmatpush.bf16.msra.mxu1 %v4422_v17  ;;  %v5066_v50 = vld [vmem:[%s8221_s1 + $0x1f4] sm:$0xf0]  ;;  %v4950_v52 = vld [vmem:[%s8222_s0 + $0x1d8] sm:$0xf0]  ;;  %v3869_v53 = vld [vmem:[%s8222_s0] sm:$0xf]  ;;  %v4502_v58 = vor.u32 %v5050_v47, %v4501_v46 }
   0xe   :  { %v4894_v54 = vld [vmem:[%s8222_s0 + $0x18] sm:$0xf0]  ;;  %v4947_v56 = vld [vmem:[%s8222_s0 + $0x1c4] sm:$0xf]  ;;  %v4095_v57 = vld [vmem:[%s8222_s0 + $0x1dc] sm:$0xf0]  ;;  %v4566_v60 = vor.u32 %v5066_v50, %v4565_v49  ;;  %v5483_v0 = vor.u32 %v4950_v52, %v4093_v48 }
   0xf   :  { %v4891_v59 = vld [vmem:[%s8222_s0 + $0x4] sm:$0xf]  ;;  %v3871_v61 = vld [vmem:[%s8222_s0 + $0x1c] sm:$0xf0]  ;;  %v5048_v63 = vld [vmem:[%s8221_s1 + $0x164] sm:$0xf0]  ;;  %v5485_v1 = vor.u32 %v4894_v54, %v3869_v53  ;;  %v5493_v4 = vor.u32 %v4947_v56, %v4095_v57 }
  0x10   :  { %5150 = vmatpush.bf16.msra.mxu2 %v4350_v22  ;;  %1417 = vmatpush.bf16.msra.mxu0 %v4350_v22  ;;  %v4493_v62 = vld [vmem:[%s8221_s1 + $0x160] sm:$0xf]  ;;  %8306 = vst [vmem:[#allocation2_spill] sm:$0xff] %v5483_v0  ;;  %v5064_v3 = vld [vmem:[%s8221_s1 + $0x1e4] sm:$0xf0]  ;;  %v5495_v5 = vor.u32 %v4891_v59, %v3871_v61 }
  0x11   :  { %5158 = vmatpush.bf16.msra.mxu3 %v4414_v23  ;;  %1506 = vmatpush.bf16.msra.mxu1 %v4414_v23  ;;  %v4557_v2 = vld [vmem:[%s8221_s1 + $0x1e0] sm:$0xf]  ;;  %8307 = vst [vmem:[#allocation3_spill] sm:$0xff] %v5493_v4  ;;  %v4494_v6 = vor.u32 %v5048_v63, %v4493_v62  ;;  %v4485_v8 = vld [vmem:[%s8221_s1 + $0x150] sm:$0xf] }
  0x12   :  { %v4558_v7 = vor.u32 %v5064_v3, %v4557_v2  ;;  %v5046_v9 = vld [vmem:[%s8221_s1 + $0x154] sm:$0xf0]  ;;  %v4549_v10 = vld [vmem:[%s8221_s1 + $0x1d0] sm:$0xf]  ;;  %v4957_v15 = vld [vmem:[%s8222_s0 + $0x210] sm:$0xf0] }
  0x13   :  { %v4486_v11 = vor.u32 %v5046_v9, %v4485_v8  ;;  %v5062_v12 = vld [vmem:[%s8221_s1 + $0x1d4] sm:$0xf0]  ;;  %v4901_v17 = vld [vmem:[%s8222_s0 + $0x50] sm:$0xf0]  ;;  %v4954_v18 = vld [vmem:[%s8222_s0 + $0x1fc] sm:$0xf] }
  0x14   :  { %5151 = vmatpush.bf16.msra.mxu2 %v4342_v28  ;;  %1418 = vmatpush.bf16.msra.mxu0 %v4342_v28  ;;  %v4550_v13 = vor.u32 %v5062_v12, %v4549_v10  ;;  %v4121_v14 = vld [vmem:[%s8222_s0 + $0x1f8] sm:$0xf]  ;;  %v4898_v20 = vld [vmem:[%s8222_s0 + $0x3c] sm:$0xf]  ;;  %v4477_v26 = vld [vmem:[%s8221_s1 + $0x140] sm:$0xf] }
  0x15   :  { %5159 = vmatpush.bf16.msra.mxu3 %v4406_v29  ;;  %1507 = vmatpush.bf16.msra.mxu1 %v4406_v29  ;;  %v3897_v16 = vld [vmem:[%s8222_s0 + $0x38] sm:$0xf]  ;;  %v5537_v22 = vor.u32 %v4957_v15, %v4121_v14  ;;  %v5044_v27 = vld [vmem:[%s8221_s1 + $0x144] sm:$0xf0]  ;;  %v4541_v28 = vld [vmem:[%s8221_s1 + $0x1c0] sm:$0xf] }
  0x16   :  { %v4123_v19 = vld [vmem:[%s8222_s0 + $0x214] sm:$0xf0]  ;;  %v5539_v23 = vor.u32 %v4901_v17, %v3897_v16  ;;  %v4478_v29 = vor.u32 %v5044_v27, %v4477_v26  ;;  %v5060_v30 = vld [vmem:[%s8221_s1 + $0x1c4] sm:$0xf0]  ;;  %v4149_v32 = vld [vmem:[%s8222_s0 + $0x230] sm:$0xf] }
  0x17   :  { %v3899_v21 = vld [vmem:[%s8222_s0 + $0x54] sm:$0xf0]  ;;  %8308 = vst [vmem:[#allocation4_spill] sm:$0xff] %v5537_v22  ;;  %v5541_v24 = vor.u32 %v4954_v18, %v4123_v19  ;;  %v4542_v31 = vor.u32 %v5060_v30, %v4541_v28  ;;  %v4964_v33 = vld [vmem:[%s8222_s0 + $0x248] sm:$0xf0] }
  0x18   :  { %5152 = vmatpush.bf16.msra.mxu2 %v4334_v34  ;;  %1419 = vmatpush.bf16.msra.mxu0 %v4334_v34  ;;  %v5543_v25 = vor.u32 %v4898_v20, %v3899_v21  ;;  %v3925_v34 = vld [vmem:[%s8222_s0 + $0x70] sm:$0xf]  ;;  %v4961_v36 = vld [vmem:[%s8222_s0 + $0x234] sm:$0xf]  ;;  %v5042_v45 = vld [vmem:[%s8221_s1 + $0x134] sm:$0xf0] }
  0x19   :  { %5160 = vmatpush.bf16.msra.mxu3 %v4398_v35  ;;  %1508 = vmatpush.bf16.msra.mxu1 %v4398_v35  ;;  %8309 = vst [vmem:[#allocation5_spill] sm:$0xff] %v5541_v24  ;;  %v4908_v35 = vld [vmem:[%s8222_s0 + $0x88] sm:$0xf0]  ;;  %v4151_v37 = vld [vmem:[%s8222_s0 + $0x24c] sm:$0xf0] }
  0x1a   :  { %v4905_v38 = vld [vmem:[%s8222_s0 + $0x74] sm:$0xf]  ;;  %v3927_v39 = vld [vmem:[%s8222_s0 + $0x8c] sm:$0xf0]  ;;  %v5589_v42 = vor.u32 %v4961_v36, %v4151_v37  ;;  %v5058_v48 = vld [vmem:[%s8221_s1 + $0x1b4] sm:$0xf0] }
  0x1b   :  { %v5591_v43 = vor.u32 %v4905_v38, %v3927_v39  ;;  %v4469_v44 = vld [vmem:[%s8221_s1 + $0x130] sm:$0xf]  ;;  %v4177_v50 = vld [vmem:[%s8222_s0 + $0x268] sm:$0xf]  ;;  %v4915_v53 = vld [vmem:[%s8222_s0 + $0xc0] sm:$0xf0] }
  0x1c   :  { %5153 = vmatpush.bf16.msra.mxu2 %v4326_v40  ;;  %1420 = vmatpush.bf16.msra.mxu0 %v4326_v40  ;;  %v5585_v40 = vor.u32 %v4964_v33, %v4149_v32  ;;  %8311 = vst [vmem:[#allocation7_spill] sm:$0xff] %v5589_v42  ;;  %v4533_v46 = vld [vmem:[%s8221_s1 + $0x1b0] sm:$0xf]  ;;  %v4470_v47 = vor.u32 %v5042_v45, %v4469_v44  ;;  %v3953_v52 = vld [vmem:[%s8222_s0 + $0xa8] sm:$0xf] }
  0x1d   :  { %5161 = vmatpush.bf16.msra.mxu3 %v4390_v41  ;;  %1509 = vmatpush.bf16.msra.mxu1 %v4390_v41  ;;  %v5587_v41 = vor.u32 %v4908_v35, %v3925_v34  ;;  %v4534_v49 = vor.u32 %v5058_v48, %v4533_v46  ;;  %v4968_v54 = vld [vmem:[%s8222_s0 + $0x26c] sm:$0xf]  ;;  %v3955_v57 = vld [vmem:[%s8222_s0 + $0xc4] sm:$0xf0]  ;;  %v5635_v59 = vor.u32 %v4915_v53, %v3953_v52  ;;  %v4461_v62 = vld [vmem:[%s8221_s1 + $0x120] sm:$0xf] }
  0x1e   :  { %8310 = vst [vmem:[#allocation6_spill] sm:$0xff] %v5585_v40  ;;  %v4912_v56 = vld [vmem:[%s8222_s0 + $0xac] sm:$0xf]  ;;  %v5040_v63 = vld [vmem:[%s8221_s1 + $0x124] sm:$0xf0] }
  0x1f   :  { %v5639_v61 = vor.u32 %v4912_v56, %v3955_v57  ;;  %v4525_v2 = vld [vmem:[%s8221_s1 + $0x1a0] sm:$0xf]  ;;  %v4462_v3 = vor.u32 %v5040_v63, %v4461_v62  ;;  %v4978_v9 = vld [vmem:[%s8222_s0 + $0x2b8] sm:$0xf0]  ;;  %v4975_v12 = vld [vmem:[%s8222_s0 + $0x2a4] sm:$0xf] }
  0x20   :  { %5154 = vmatpush.bf16.msra.mxu2 %v4318_v51  ;;  %1421 = vmatpush.bf16.msra.mxu0 %v4318_v51  ;;  %v4971_v51 = vld [vmem:[%s8222_s0 + $0x280] sm:$0xf0]  ;;  %v4205_v8 = vld [vmem:[%s8222_s0 + $0x2a0] sm:$0xf]  ;;  %v4453_v20 = vld [vmem:[%s8221_s1 + $0x110] sm:$0xf] }
  0x21   :  { %5162 = vmatpush.bf16.msra.mxu3 %v4382_v55  ;;  %1510 = vmatpush.bf16.msra.mxu1 %v4382_v55  ;;  %v4179_v55 = vld [vmem:[%s8222_s0 + $0x284] sm:$0xf0]  ;;  %v3981_v10 = vld [vmem:[%s8222_s0 + $0xe0] sm:$0xf]  ;;  %v4919_v14 = vld [vmem:[%s8222_s0 + $0xe4] sm:$0xf]  ;;  %v5681_v16 = vor.u32 %v4978_v9, %v4205_v8 }
  0x22   :  { %v3983_v15 = vld [vmem:[%s8222_s0 + $0xfc] sm:$0xf0]  ;;  %v5038_v21 = vld [vmem:[%s8221_s1 + $0x114] sm:$0xf0]  ;;  %v4517_v26 = vld [vmem:[%s8221_s1 + $0x190] sm:$0xf] }
  0x23   :  { %1462 = vmatmul.bf16.vlgmr.msra.gmra.mxu2 %v5483_v0  ;;  %1422 = vmatmul.bf16.vlgmr.msra.gmra.mxu0 %v5485_v1  ;;  %8314 = vst [vmem:[#allocation10_spill] sm:$0xff] %v5681_v16  ;;  %v5687_v19 = vor.u32 %v4919_v14, %v3983_v15  ;;  %v4454_v27 = vor.u32 %v5038_v21, %v4453_v20  ;;  %v5054_v28 = vld [vmem:[%s8221_s1 + $0x194] sm:$0xf0]  ;;  %v4629_v30 = vld [vmem:[%s8221_s1 + $0x270] sm:$0xf] }
  0x24   :  { %1592 = vmatpush.bf16.msrb.mxu2 %v4502_v58  ;;  %1551 = vmatmul.bf16.vlgmr.msra.gmra.mxu3 %v5493_v4  ;;  %v5633_v58 = vor.u32 %v4971_v51, %v4177_v50  ;;  %v4693_v33 = vld [vmem:[%s8221_s1 + $0x2f0] sm:$0xf]  ;;  %v5098_v34 = vld [vmem:[%s8221_s1 + $0x2f4] sm:$0xf0]  ;;  %v4621_v36 = vld [vmem:[%s8221_s1 + $0x260] sm:$0xf] }
  0x25   :  { %1681 = vmatpush.bf16.msrb.mxu3 %v4566_v60  ;;  %1511 = vmatmul.bf16.vlgmr.msra.gmra.mxu1 %v5495_v5  ;;  %v5637_v60 = vor.u32 %v4968_v54, %v4179_v55  ;;  %v4694_v35 = vor.u32 %v5098_v34, %v4693_v33  ;;  %v5080_v37 = vld [vmem:[%s8221_s1 + $0x264] sm:$0xf0]  ;;  %v4685_v38 = vld [vmem:[%s8221_s1 + $0x2e0] sm:$0xf]  ;;  %v4233_v46 = vld [vmem:[%s8222_s0 + $0x2d8] sm:$0xf] }
  0x26   :  { %8312 = vst [vmem:[#allocation8_spill] sm:$0xff] %v5633_v58  ;;  %v4622_v39 = vor.u32 %v5080_v37, %v4621_v36  ;;  %v5096_v44 = vld [vmem:[%s8221_s1 + $0x2e4] sm:$0xf0]  ;;  %v4009_v48 = vld [vmem:[%s8222_s0 + $0x118] sm:$0xf] }
  0x27   :  { %8313 = vst [vmem:[#allocation9_spill] sm:$0xff] %v5637_v60  ;;  %1859 = vmatpush.bf16.msrb.mxu1 %v4694_v35  ;;  %v4686_v45 = vor.u32 %v5096_v44, %v4685_v38  ;;  %v4982_v50 = vld [vmem:[%s8222_s0 + $0x2dc] sm:$0xf]  ;;  %v4235_v51 = vld [vmem:[%s8222_s0 + $0x2f4] sm:$0xf0] }
  0x28   :  { %1593 = vmatpush.bf16.msrb.mxu2 %v4494_v6  ;;  %v5056_v6 = vld [vmem:[%s8221_s1 + $0x1a4] sm:$0xf0]  ;;  %v4926_v52 = vld [vmem:[%s8222_s0 + $0x11c] sm:$0xf]  ;;  %v4011_v53 = vld [vmem:[%s8222_s0 + $0x134] sm:$0xf0]  ;;  %v5757_v56 = vor.u32 %v4982_v50, %v4235_v51 }
  0x29   :  { %1682 = vmatpush.bf16.msrb.mxu3 %v4558_v7  ;;  %v4526_v7 = vor.u32 %v5056_v6, %v4525_v2  ;;  %v5759_v57 = vor.u32 %v4926_v52, %v4011_v53  ;;  %v4613_v62 = vld [vmem:[%s8221_s1 + $0x250] sm:$0xf]  ;;  %v5078_v63 = vld [vmem:[%s8221_s1 + $0x254] sm:$0xf0]  ;;  %v5036_v6 = vld [vmem:[%s8221_s1 + $0x104] sm:$0xf0] }
  0x2a   :  { %8317 = vst [vmem:[#allocation13_spill] sm:$0xff] %v5757_v56  ;;  %v4614_v2 = vor.u32 %v5078_v63, %v4613_v62  ;;  %v5052_v9 = vld [vmem:[%s8221_s1 + $0x184] sm:$0xf0]  ;;  %v4605_v14 = vld [vmem:[%s8221_s1 + $0x240] sm:$0xf] }
  0x2b   :  { %1860 = vmatpush.bf16.msrb.mxu1 %v4686_v45  ;;  %v5076_v15 = vld [vmem:[%s8221_s1 + $0x244] sm:$0xf0]  ;;  %v4669_v20 = vld [vmem:[%s8221_s1 + $0x2c0] sm:$0xf]  ;;  %v4261_v35 = vld [vmem:[%s8222_s0 + $0x310] sm:$0xf] }
  0x2c   :  { %1594 = vmatpush.bf16.msrb.mxu2 %v4486_v11  ;;  %v4922_v11 = vld [vmem:[%s8222_s0 + $0xf8] sm:$0xf0]  ;;  %v4606_v21 = vor.u32 %v5076_v15, %v4605_v14  ;;  %v4589_v33 = vld [vmem:[%s8221_s1 + $0x220] sm:$0xf]  ;;  %v5072_v34 = vld [vmem:[%s8221_s1 + $0x224] sm:$0xf0] }
  0x2d   :  { %1683 = vmatpush.bf16.msrb.mxu3 %v4550_v13  ;;  %v4207_v13 = vld [vmem:[%s8222_s0 + $0x2bc] sm:$0xf0]  ;;  %v5683_v17 = vor.u32 %v4922_v11, %v3981_v10  ;;  %v4677_v10 = vld [vmem:[%s8221_s1 + $0x2d0] sm:$0xf]  ;;  %v5094_v11 = vld [vmem:[%s8221_s1 + $0x2d4] sm:$0xf0] }
  0x2e   :  { %v5685_v18 = vor.u32 %v4975_v12, %v4207_v13  ;;  %v4678_v13 = vor.u32 %v5094_v11, %v4677_v10  ;;  %v4992_v36 = vld [vmem:[%s8222_s0 + $0x328] sm:$0xf0]  ;;  %v4989_v37 = vld [vmem:[%s8222_s0 + $0x314] sm:$0xf]  ;;  %v4037_v38 = vld [vmem:[%s8222_s0 + $0x150] sm:$0xf] }
  0x2f   :  { %v4263_v45 = vld [vmem:[%s8222_s0 + $0x32c] sm:$0xf0]  ;;  %v5849_v51 = vor.u32 %v4992_v36, %v4261_v35  ;;  %v4375_v11 = vld [vmem:[%s8221_s1 + $0x78] sm:$0xf0]  ;;  %v5086_v14 = vld [vmem:[%s8221_s1 + $0x294] sm:$0xf0] }
  0x30   :  { %1595 = vmatpush.bf16.msrb.mxu2 %v4478_v29  ;;  %8315 = vst [vmem:[#allocation11_spill] sm:$0xff] %v5685_v18  ;;  %v4518_v29 = vor.u32 %v5054_v28, %v4517_v26  ;;  %v5092_v26 = vld [vmem:[%s8221_s1 + $0x2c4] sm:$0xf0]  ;;  %1861 = vmatpush.bf16.msrb.mxu1 %v4678_v13  ;;  %v4597_v28 = vld [vmem:[%s8221_s1 + $0x230] sm:$0xf]  ;;  %v5853_v53 = vor.u32 %v4989_v37, %v4263_v45 }
  0x31   :  { %1684 = vmatpush.bf16.msrb.mxu3 %v4542_v31  ;;  %v5082_v31 = vld [vmem:[%s8221_s1 + $0x274] sm:$0xf0]  ;;  %v4039_v50 = vld [vmem:[%s8222_s0 + $0x16c] sm:$0xf0]  ;;  %8318 = vst [vmem:[#allocation14_spill] sm:$0xff] %v5849_v51 }
  0x32   :  { %v4630_v32 = vor.u32 %v5082_v31, %v4629_v30  ;;  %v4661_v31 = vld [vmem:[%s8221_s1 + $0x2b0] sm:$0xf]  ;;  %8320 = vst [vmem:[#allocation16_spill] sm:$0xff] %v5853_v53  ;;  %v4573_v15 = vld [vmem:[%s8221_s1 + $0x200] sm:$0xf] }
  0x33   :  { %1467 = vmatmul.bf16.gmra.mxu2 %v5537_v22  ;;  %1427 = vmatmul.bf16.gmra.mxu0 %v5539_v23  ;;  %v4291_v35 = vld [vmem:[%s8222_s0 + $0x364] sm:$0xf0]  ;;  %v4940_v36 = vld [vmem:[%s8222_s0 + $0x18c] sm:$0xf] }
  0x34   :  { %1556 = vmatmul.bf16.gmra.mxu3 %v5541_v24  ;;  %1596 = vmatpush.bf16.msrb.mxu2 %v4470_v47  ;;  %v4985_v47 = vld [vmem:[%s8222_s0 + $0x2f0] sm:$0xf0]  ;;  %v4067_v37 = vld [vmem:[%s8222_s0 + $0x1a4] sm:$0xf0] }
  0x35   :  { %1516 = vmatmul.bf16.gmra.mxu1 %v5543_v25  ;;  %1685 = vmatpush.bf16.msrb.mxu3 %v4534_v49  ;;  %v4929_v49 = vld [vmem:[%s8222_s0 + $0x130] sm:$0xf0]  ;;  %v5753_v54 = vor.u32 %v4985_v47, %v4233_v46  ;;  %v4590_v46 = vor.u32 %v5072_v34, %v4589_v33  ;;  %v4653_v47 = vld [vmem:[%s8221_s1 + $0x2a0] sm:$0xf]  ;;  %v4943_v33 = vld [vmem:[%s8222_s0 + $0x1a0] sm:$0xf0]  ;;  %v5927_v45 = vor.u32 %v4940_v36, %v4067_v37 }
  0x36   :  { %1770 = vmatpush.bf16.msrb.mxu0 %v4630_v32  ;;  %v5755_v55 = vor.u32 %v4929_v49, %v4009_v48  ;;  %v5090_v32 = vld [vmem:[%s8221_s1 + $0x2b4] sm:$0xf0]  ;;  %v5088_v48 = vld [vmem:[%s8221_s1 + $0x2a4] sm:$0xf0]  ;;  %v4933_v49 = vld [vmem:[%s8222_s0 + $0x154] sm:$0xf] }
  0x37   :  { %8316 = vst [vmem:[#allocation12_spill] sm:$0xff] %v5753_v54  ;;  %v4662_v44 = vor.u32 %v5090_v32, %v4661_v31  ;;  %v4654_v62 = vor.u32 %v5088_v48, %v4653_v47  ;;  %v5855_v63 = vor.u32 %v4933_v49, %v4039_v50  ;;  %v4999_v31 = vld [vmem:[%s8222_s0 + $0x360] sm:$0xf0]  ;;  %v4065_v32 = vld [vmem:[%s8222_s0 + $0x188] sm:$0xf] }
  0x38   :  { %1597 = vmatpush.bf16.msrb.mxu2 %v4462_v3  ;;  %v4445_v3 = vld [vmem:[%s8221_s1 + $0x100] sm:$0xf]  ;;  %v4996_v34 = vld [vmem:[%s8222_s0 + $0x34c] sm:$0xf]  ;;  %8325 = vst [vmem:[#allocation21_spill] sm:$0xff] %v5927_v45 }
  0x39   :  { %1686 = vmatpush.bf16.msrb.mxu3 %v4526_v7  ;;  %v4509_v7 = vld [vmem:[%s8221_s1 + $0x180] sm:$0xf]  ;;  %v4446_v8 = vor.u32 %v5036_v6, %v4445_v3  ;;  %8321 = vst [vmem:[#allocation17_spill] sm:$0xff] %v5855_v63  ;;  %v5070_v3 = vld [vmem:[%s8221_s1 + $0x214] sm:$0xf0] }
  0x3a   :  { %1771 = vmatpush.bf16.msrb.mxu0 %v4622_v39  ;;  %v4510_v12 = vor.u32 %v5052_v9, %v4509_v7  ;;  %v4936_v39 = vld [vmem:[%s8222_s0 + $0x168] sm:$0xf0]  ;;  %v4757_v7 = vld [vmem:[%s8221_s1 + $0x370] sm:$0xf]  ;;  %v5017_v9 = vld [vmem:[%s8221_s1 + $0x74] sm:$0xf] }
  0x3b   :  { %v5851_v52 = vor.u32 %v4936_v39, %v4037_v38  ;;  %v4378_v13 = vor.u32 %v5017_v9, %v4375_v11  ;;  %v5923_v39 = vor.u32 %v4943_v33, %v4065_v32  ;;  %v4895_v47 = vld [vmem:[%s8222_s0 + $0x20] sm:$0xf0]  ;;  %v272_v48 = vld [vmem:[%s8223_s2] sm:$0x3]  ;;  %v3885_v49 = vld [vmem:[%s8222_s0 + $0x10] sm:$0xf] }
  0x3c   :  { %1598 = vmatpush.bf16.msrb.mxu2 %v4454_v27  ;;  %v4670_v27 = vor.u32 %v5092_v26, %v4669_v20  ;;  %v4896_v50 = vld [vmem:[%s8222_s0 + $0x28] sm:$0xf0] }
  0x3d   :  { %1687 = vmatpush.bf16.msrb.mxu3 %v4518_v29  ;;  %v5074_v29 = vld [vmem:[%s8221_s1 + $0x234] sm:$0xf0]  ;;  %8319 = vst [vmem:[#allocation15_spill] sm:$0xff] %v5851_v52  ;;  %v5964_v9 = vor.u32 %v4896_v50, %v3885_v49  ;;  %v4903_v49 = vld [vmem:[%s8222_s0 + $0x60] sm:$0xf0] }
  0x3e   :  { %1772 = vmatpush.bf16.msrb.mxu0 %v4614_v2  ;;  %v4598_v30 = vor.u32 %v5074_v29, %v4597_v28  ;;  %1862 = vmatpush.bf16.msrb.mxu1 %v4670_v27  ;;  %v4581_v2 = vld [vmem:[%s8221_s1 + $0x210] sm:$0xf]  ;;  %v4637_v27 = vld [vmem:[%s8221_s1 + $0x280] sm:$0xf]  ;;  %v5084_v28 = vld [vmem:[%s8221_s1 + $0x284] sm:$0xf0] }
  0x3f   :  { %v4582_v6 = vor.u32 %v5070_v3, %v4581_v2  ;;  %v4638_v29 = vor.u32 %v5084_v28, %v4637_v27  ;;  %8323 = vst [vmem:[#allocation19_spill] sm:$0xff] %v5923_v39  ;;  %v3879_v2 = vld [vmem:[%s8222_s0 + $0x24] sm:$0xf0]  ;;  %v4893_v3 = vld [vmem:[%s8222_s0 + $0x14] sm:$0xf] }
  0x40   :  { %1599 = vmatpush.bf16.msrb.mxu2 %v4446_v8  ;;  %v5114_v8 = vld [vmem:[%s8221_s1 + $0x374] sm:$0xf0]  ;;  %8326 = vst [vmem:[#allocation22_spill] sm:$0xff] %v5964_v9  ;;  %v4367_v28 = vld [vmem:[%s8221_s1 + $0x68] sm:$0xf0] }
  0x41   :  { %1688 = vmatpush.bf16.msrb.mxu3 %v4510_v12  ;;  %v4758_v10 = vor.u32 %v5114_v8, %v4757_v7  ;;  %v4645_v12 = vld [vmem:[%s8221_s1 + $0x290] sm:$0xf]  ;;  %v5962_v8 = vperm.slane %v272_v48, 0  ;;  %v3913_v48 = vld [vmem:[%s8222_s0 + $0x48] sm:$0xf] }
  0x42   :  { %1773 = vmatpush.bf16.msrb.mxu0 %v4606_v21  ;;  %1863 = vmatpush.bf16.msrb.mxu1 %v4662_v44  ;;  %v4646_v20 = vor.u32 %v5086_v14, %v4645_v12  ;;  %v5068_v21 = vld [vmem:[%s8221_s1 + $0x204] sm:$0xf0]  ;;  %v5925_v44 = vor.u32 %v4996_v34, %v4291_v35  ;;  %v4899_v50 = vld [vmem:[%s8222_s0 + $0x44] sm:$0xf] }
  0x43   :  { %1472 = vmatmul.bf16.gmra.mxu2 %v5585_v40  ;;  %1432 = vmatmul.bf16.gmra.mxu0 %v5587_v41  ;;  %v4574_v26 = vor.u32 %v5068_v21, %v4573_v15  ;;  %v5112_v21 = vld [vmem:[%s8221_s1 + $0x364] sm:$0xf0] }
  0x44   :  { %1561 = vmatmul.bf16.gmra.mxu3 %v5589_v42  ;;  %1948 = vmatpush.bf16.msra.mxu2 %v4758_v10  ;;  %8324 = vst [vmem:[#allocation20_spill] sm:$0xff] %v5925_v44 }
  0x45   :  { %1521 = vmatmul.bf16.gmra.mxu1 %v5591_v43  ;;  %2037 = vmatpush.bf16.msra.mxu3 %v4378_v13 }
  0x46   :  { %1774 = vmatpush.bf16.msrb.mxu0 %v4598_v30  ;;  %1864 = vmatpush.bf16.msrb.mxu1 %v4654_v62  ;;  %v4289_v30 = vld [vmem:[%s8222_s0 + $0x348] sm:$0xf]  ;;  %v4892_v62 = vld [vmem:[%s8222_s0 + $0xc] sm:$0xf] }
  0x47   :  { %v5921_v38 = vor.u32 %v4999_v31, %v4289_v30  ;;  %v5966_v10 = vor.u32 %v4892_v62, %v3879_v2  ;;  %v3907_v62 = vld [vmem:[%s8222_s0 + $0x5c] sm:$0xf0] }
  0x49   :  { %8322 = vst [vmem:[#allocation18_spill] sm:$0xff] %v5921_v38 }
  0x4a   :  { %1775 = vmatpush.bf16.msrb.mxu0 %v4590_v46  ;;  %1865 = vmatpush.bf16.msrb.mxu1 %v4646_v20  ;;  %v3877_v46 = vld [vmem:[%s8222_s0 + $0x8] sm:$0xf]  ;;  %8327 = vst [vmem:[#allocation23_spill] sm:$0xff] %v5966_v10  ;;  %v4749_v20 = vld [vmem:[%s8221_s1 + $0x360] sm:$0xf] }
  0x4b   :  { %v5960_v7 = vor.u32 %v4895_v47, %v3877_v46  ;;  %v4750_v27 = vor.u32 %v5112_v21, %v4749_v20  ;;  %v3905_v46 = vld [vmem:[%s8222_s0 + $0x40] sm:$0xf]  ;;  %v4902_v47 = vld [vmem:[%s8222_s0 + $0x58] sm:$0xf0]  ;;  %v6022_v20 = vor.u32 %v4903_v49, %v3913_v48  ;;  %v6024_v21 = vor.u32 %v4899_v50, %v3907_v62  ;;  %v3933_v50 = vld [vmem:[%s8222_s0 + $0x78] sm:$0xf] }
  0x4c   :  { %v4909_v62 = vld [vmem:[%s8222_s0 + $0x90] sm:$0xf0] }
  0x4d   :  { %1949 = vmatpush.bf16.msra.mxu2 %v4750_v27  ;;  %8329 = vst [vmem:[#allocation25_spill] sm:$0xff] %v6022_v20 }
  0x4e   :  { %1776 = vmatpush.bf16.msrb.mxu0 %v4582_v6  ;;  %1866 = vmatpush.bf16.msrb.mxu1 %v4638_v29  ;;  %v3887_v6 = vld [vmem:[%s8222_s0 + $0x2c] sm:$0xf0]  ;;  %8330 = vst [vmem:[#allocation26_spill] sm:$0xff] %v6024_v21 }
  0x4f   :  { %v5969_v13 = vor.u32 %v4893_v3, %v3887_v6  ;;  %v4900_v3 = vld [vmem:[%s8222_s0 + $0x4c] sm:$0xf]  ;;  %v3915_v6 = vld [vmem:[%s8222_s0 + $0x64] sm:$0xf0] }
  0x51   :  { %8328 = vst [vmem:[#allocation24_spill] sm:$0xff] %v5969_v13 }
  0x52   :  { %1777 = vmatpush.bf16.msrb.mxu0 %v4574_v26  ;;  %v5015_v26 = vld [vmem:[%s8221_s1 + $0x64] sm:$0xf] }
  0x53   :  { %1477 = vmatmul.bf16.gmra.mxu2 %v5633_v58  ;;  %1437 = vmatmul.bf16.gmra.mxu0 %v5635_v59  ;;  %v4370_v30 = vor.u32 %v5015_v26, %v4367_v28 }
  0x54   :  { %1566 = vmatmul.bf16.gmra.mxu3 %v5637_v60 }
  0x55   :  { %1526 = vmatmul.bf16.gmra.mxu1 %v5639_v61  ;;  %2038 = vmatpush.bf16.msra.mxu3 %v4370_v30 }
  0x63   :  { %1482 = vmatmul.bf16.gmra.mxu2 %v5681_v16  ;;  %1442 = vmatmul.bf16.gmra.mxu0 %v5683_v17 }
  0x64   :  { %1571 = vmatmul.bf16.gmra.mxu3 %v5685_v18 }
  0x65   :  { %1531 = vmatmul.bf16.gmra.mxu1 %v5687_v19 }
  0x73   :  { %1487 = vmatmul.bf16.gmra.mxu2 %v5753_v54  ;;  %1447 = vmatmul.bf16.gmra.mxu0 %v5755_v55 }
  0x74   :  { %1576 = vmatmul.bf16.gmra.mxu3 %v5757_v56 }
  0x75   :  { %1536 = vmatmul.bf16.gmra.mxu1 %v5759_v57 }
  0x83   :  { %1492 = vmatmul.bf16.gmra.mxu2 %v5849_v51  ;;  %1452 = vmatmul.bf16.gmra.mxu0 %v5851_v52 }
  0x84   :  { %1581 = vmatmul.bf16.gmra.mxu3 %v5853_v53 }
  0x85   :  { %1541 = vmatmul.bf16.gmra.mxu1 %v5855_v63 }
  0x93   :  { %1497 = vmatmul.bf16.gmra.mxu2 %v5921_v38  ;;  %1457 = vmatmul.bf16.gmra.mxu0 %v5923_v39 }
  0x94   :  { %1586 = vmatmul.bf16.gmra.mxu3 %v5925_v44 }
  0x95   :  { %1546 = vmatmul.bf16.gmra.mxu1 %v5927_v45 }
  0xa0   :  { %v1423_v11 = vpop.f32.mrf.mxu0 }
  0xa1   :  { %v1424_v12 = vadd.f32 %v1423_v11, %v5962_v8 }
  0xa2   :  { %v1512_v14 = vpop.f32.mrf.mxu1 }
  0xa3   :  { %1600 = vmatmul.bf16.vlgmr.msrb.gmra.mxu2 %v5960_v7  ;;  %v5972_v15 = vadd.f32 %v1512_v14, %v1424_v12  ;;  %1778 = vmatmul.bf16.vlgmr.msrb.gmra.mxu0 %v5964_v9  ;;  %v6020_v14 = vor.u32 %v4902_v47, %v3905_v46 }
  0xa4   :  { %1689 = vmatmul.bf16.vlgmr.msrb.gmra.mxu3 %v5966_v10 }
  0xa5   :  { %1867 = vmatmul.bf16.vlgmr.msrb.gmra.mxu1 %v5969_v13 }
  0xa6   :  { %v1463_v29 = vpop.f32.mrf.mxu2 }
  0xa7   :  { %v1464_v31 = vadd.f32 %v1463_v29, %v5962_v8  ;;  %v1552_v32 = vpop.f32.mrf.mxu3  ;;  %v6029_v29 = vor.u32 %v4900_v3, %v3915_v6  ;;  %v4910_v3 = vld [vmem:[%s8222_s0 + $0x98] sm:$0xf0] }
  0xa8   :  { %v1425_v33 = vpop.f32.mrf.mxu0  ;;  %v4906_v6 = vld [vmem:[%s8222_s0 + $0x7c] sm:$0xf] }
  0xa9   :  { %v5990_v34 = vadd.f32 %v1552_v32, %v1464_v31  ;;  %v1426_v35 = vadd.f32 %v1425_v33, %v5962_v8  ;;  %8331 = vst [vmem:[#allocation27_spill] sm:$0xff] %v6029_v29 }
  0xaa   :  { %v1514_v36 = vpop.f32.mrf.mxu1 }
  0xab   :  { %v5993_v37 = vadd.f32 %v1514_v36, %v1426_v35 }
  0xae   :  { %v1465_v2 = vpop.f32.mrf.mxu2 }
  0xaf   :  { %v1466_v11 = vadd.f32 %v1465_v2, %v5962_v8  ;;  %v1554_v12 = vpop.f32.mrf.mxu3  ;;  %v3941_v2 = vld [vmem:[%s8222_s0 + $0x80] sm:$0xf] }
  0xb0   :  { %v1428_v26 = vpop.f32.mrf.mxu0 }
  0xb1   :  { %v6026_v27 = vadd.f32 %v1554_v12, %v1466_v11  ;;  %v1429_v28 = vadd.f32 %v1428_v26, %v5962_v8  ;;  %v3935_v11 = vld [vmem:[%s8222_s0 + $0x94] sm:$0xf0]  ;;  %v4907_v26 = vld [vmem:[%s8222_s0 + $0x84] sm:$0xf] }
  0xb2   :  { %v1517_v30 = vpop.f32.mrf.mxu1 }
  0xb3   :  { %1605 = vmatmul.bf16.gmra.mxu2 %v6020_v14  ;;  %v6032_v31 = vadd.f32 %v1517_v30, %v1429_v28  ;;  %1783 = vmatmul.bf16.gmra.mxu0 %v6022_v20  ;;  %v3943_v28 = vld [vmem:[%s8222_s0 + $0x9c] sm:$0xf0] }
  0xb4   :  { %1694 = vmatmul.bf16.gmra.mxu3 %v6024_v21 }
  0xb5   :  { %1872 = vmatmul.bf16.gmra.mxu1 %v6029_v29  ;;  %v6077_v29 = vor.u32 %v4907_v26, %v3943_v28 }
  0xb6   :  { %v1468_v32 = vpop.f32.mrf.mxu2 }
  0xb7   :  { %v1469_v33 = vadd.f32 %v1468_v32, %v5962_v8  ;;  %v1557_v35 = vpop.f32.mrf.mxu3  ;;  %8334 = vst [vmem:[#allocation30_spill] sm:$0xff] %v6077_v29 }
  0xb8   :  { %v1430_v36 = vpop.f32.mrf.mxu0 }
  0xb9   :  { %v6038_v46 = vadd.f32 %v1557_v35, %v1469_v33  ;;  %v1431_v47 = vadd.f32 %v1430_v36, %v5962_v8  ;;  %v6068_v33 = vor.u32 %v4909_v62, %v3933_v50  ;;  %v6070_v35 = vor.u32 %v4910_v3, %v3941_v2  ;;  %v4741_v50 = vld [vmem:[%s8221_s1 + $0x350] sm:$0xf]  ;;  %v5110_v62 = vld [vmem:[%s8221_s1 + $0x354] sm:$0xf0]  ;;  %v5013_v2 = vld [vmem:[%s8221_s1 + $0x54] sm:$0xf] }
  0xba   :  { %v1519_v48 = vpop.f32.mrf.mxu1  ;;  %v6072_v36 = vor.u32 %v4906_v6, %v3935_v11 }
  0xbb   :  { %v6041_v49 = vadd.f32 %v1519_v48, %v1431_v47  ;;  %8332 = vst [vmem:[#allocation28_spill] sm:$0xff] %v6070_v35 }
  0xbc   :  { %8333 = vst [vmem:[#allocation29_spill] sm:$0xff] %v6072_v36 }
  0xbe   :  { %v1470_v12 = vpop.f32.mrf.mxu2 }
  0xbf   :  { %v1471_v30 = vadd.f32 %v1470_v12, %v5962_v8  ;;  %v1559_v32 = vpop.f32.mrf.mxu3 }
  0xc0   :  { %v1433_v47 = vpop.f32.mrf.mxu0 }
  0xc1   :  { %v6074_v48 = vadd.f32 %v1559_v32, %v1471_v30  ;;  %v1434_v20 = vadd.f32 %v1433_v47, %v5962_v8 }
  0xc2   :  { %v1522_v21 = vpop.f32.mrf.mxu1 }
  0xc3   :  { %1610 = vmatmul.bf16.gmra.mxu2 %v6068_v33  ;;  %v6080_v9 = vadd.f32 %v1522_v21, %v1434_v20  ;;  %1788 = vmatmul.bf16.gmra.mxu0 %v6070_v35  ;;  %v4742_v20 = vor.u32 %v5110_v62, %v4741_v50  ;;  %v4359_v21 = vld [vmem:[%s8221_s1 + $0x58] sm:$0xf0]  ;;  %v3961_v50 = vld [vmem:[%s8222_s0 + $0xb0] sm:$0xf]  ;;  %v4916_v62 = vld [vmem:[%s8222_s0 + $0xc8] sm:$0xf0] }
  0xc4   :  { %1699 = vmatmul.bf16.gmra.mxu3 %v6072_v36  ;;  %v4362_v6 = vor.u32 %v5013_v2, %v4359_v21  ;;  %v3969_v2 = vld [vmem:[%s8222_s0 + $0xb8] sm:$0xf]  ;;  %v4913_v21 = vld [vmem:[%s8222_s0 + $0xb4] sm:$0xf] }
  0xc5   :  { %1877 = vmatmul.bf16.gmra.mxu1 %v6077_v29  ;;  %1950 = vmatpush.bf16.msra.mxu2 %v4742_v20  ;;  %v4917_v20 = vld [vmem:[%s8222_s0 + $0xd0] sm:$0xf0] }
  0xc6   :  { %v1473_v3 = vpop.f32.mrf.mxu2  ;;  %2039 = vmatpush.bf16.msra.mxu3 %v4362_v6  ;;  %v6130_v35 = vor.u32 %v4917_v20, %v3969_v2 }
  0xc7   :  { %v1474_v11 = vadd.f32 %v1473_v3, %v5962_v8  ;;  %v1562_v12 = vpop.f32.mrf.mxu3  ;;  %v3963_v3 = vld [vmem:[%s8222_s0 + $0xcc] sm:$0xf0] }
  0xc8   :  { %v1435_v26 = vpop.f32.mrf.mxu0  ;;  %8335 = vst [vmem:[#allocation31_spill] sm:$0xff] %v6130_v35  ;;  %v6132_v29 = vor.u32 %v4913_v21, %v3963_v3 }
  0xc9   :  { %v6098_v28 = vadd.f32 %v1562_v12, %v1474_v11  ;;  %v1436_v30 = vadd.f32 %v1435_v26, %v5962_v8  ;;  %v4914_v11 = vld [vmem:[%s8222_s0 + $0xbc] sm:$0xf]  ;;  %v3971_v12 = vld [vmem:[%s8222_s0 + $0xd4] sm:$0xf0] }
  0xca   :  { %v1524_v32 = vpop.f32.mrf.mxu1  ;;  %8336 = vst [vmem:[#allocation32_spill] sm:$0xff] %v6132_v29  ;;  %v6137_v38 = vor.u32 %v4914_v11, %v3971_v12  ;;  %v3997_v11 = vld [vmem:[%s8222_s0 + $0xf0] sm:$0xf]  ;;  %v4924_v12 = vld [vmem:[%s8222_s0 + $0x108] sm:$0xf0] }
  0xcb   :  { %v6101_v47 = vadd.f32 %v1524_v32, %v1436_v30  ;;  %v6128_v32 = vor.u32 %v4916_v62, %v3961_v50 }
  0xcc   :  { %8337 = vst [vmem:[#allocation33_spill] sm:$0xff] %v6137_v38 }
  0xce   :  { %v1475_v6 = vpop.f32.mrf.mxu2 }
  0xcf   :  { %v1476_v26 = vadd.f32 %v1475_v6, %v5962_v8  ;;  %v1564_v30 = vpop.f32.mrf.mxu3 }
  0xd0   :  { %v1438_v36 = vpop.f32.mrf.mxu0 }
  0xd1   :  { %v6134_v13 = vadd.f32 %v1564_v30, %v1476_v26  ;;  %v1439_v10 = vadd.f32 %v1438_v36, %v5962_v8  ;;  %v4920_v26 = vld [vmem:[%s8222_s0 + $0xec] sm:$0xf]  ;;  %v3991_v30 = vld [vmem:[%s8222_s0 + $0x104] sm:$0xf0] }
  0xd2   :  { %v1527_v44 = vpop.f32.mrf.mxu1 }
  0xd3   :  { %1615 = vmatmul.bf16.gmra.mxu2 %v6128_v32  ;;  %v6140_v51 = vadd.f32 %v1527_v44, %v1439_v10  ;;  %1793 = vmatmul.bf16.gmra.mxu0 %v6130_v35  ;;  %v3989_v44 = vld [vmem:[%s8222_s0 + $0xe8] sm:$0xf]  ;;  %v4923_v10 = vld [vmem:[%s8222_s0 + $0x100] sm:$0xf0]  ;;  %v6178_v35 = vor.u32 %v4924_v12, %v3997_v11 }
  0xd4   :  { %1704 = vmatmul.bf16.gmra.mxu3 %v6132_v29 }
  0xd5   :  { %1882 = vmatmul.bf16.gmra.mxu1 %v6137_v38  ;;  %8338 = vst [vmem:[#allocation34_spill] sm:$0xff] %v6178_v35  ;;  %v6180_v38 = vor.u32 %v4920_v26, %v3991_v30 }
  0xd6   :  { %v1478_v50 = vpop.f32.mrf.mxu2 }
  0xd7   :  { %v1479_v62 = vadd.f32 %v1478_v50, %v5962_v8  ;;  %v1567_v2 = vpop.f32.mrf.mxu3  ;;  %8339 = vst [vmem:[#allocation35_spill] sm:$0xff] %v6180_v38 }
  0xd8   :  { %v1440_v20 = vpop.f32.mrf.mxu0 }
  0xd9   :  { %v6146_v21 = vadd.f32 %v1567_v2, %v1479_v62  ;;  %v1441_v36 = vadd.f32 %v1440_v20, %v5962_v8  ;;  %v4921_v62 = vld [vmem:[%s8222_s0 + $0xf4] sm:$0xf]  ;;  %v3999_v2 = vld [vmem:[%s8222_s0 + $0x10c] sm:$0xf0] }
  0xda   :  { %v1529_v3 = vpop.f32.mrf.mxu1  ;;  %v6185_v56 = vor.u32 %v4921_v62, %v3999_v2 }
  0xdb   :  { %v6149_v6 = vadd.f32 %v1529_v3, %v1441_v36  ;;  %v6176_v3 = vor.u32 %v4923_v10, %v3989_v44  ;;  %v4733_v44 = vld [vmem:[%s8221_s1 + $0x340] sm:$0xf]  ;;  %v5108_v10 = vld [vmem:[%s8221_s1 + $0x344] sm:$0xf0] }
  0xdc   :  { %8340 = vst [vmem:[#allocation36_spill] sm:$0xff] %v6185_v56 }
  0xde   :  { %v1480_v50 = vpop.f32.mrf.mxu2 }
  0xdf   :  { %v1481_v20 = vadd.f32 %v1480_v50, %v5962_v8  ;;  %v1569_v36 = vpop.f32.mrf.mxu3 }
  0xe0   :  { %v1443_v29 = vpop.f32.mrf.mxu0 }
  0xe1   :  { %v6182_v53 = vadd.f32 %v1569_v36, %v1481_v20  ;;  %v1444_v54 = vadd.f32 %v1443_v29, %v5962_v8  ;;  %v5011_v29 = vld [vmem:[%s8221_s1 + $0x44] sm:$0xf] }
  0xe2   :  { %v1532_v16 = vpop.f32.mrf.mxu1 }
  0xe3   :  { %1620 = vmatmul.bf16.gmra.mxu2 %v6176_v3  ;;  %v6188_v18 = vadd.f32 %v1532_v16, %v1444_v54  ;;  %1798 = vmatmul.bf16.gmra.mxu0 %v6178_v35  ;;  %v4734_v16 = vor.u32 %v5108_v10, %v4733_v44  ;;  %v4351_v54 = vld [vmem:[%s8221_s1 + $0x48] sm:$0xf0]  ;;  %v4017_v44 = vld [vmem:[%s8222_s0 + $0x120] sm:$0xf]  ;;  %v4930_v10 = vld [vmem:[%s8222_s0 + $0x138] sm:$0xf0] }
  0xe4   :  { %1709 = vmatmul.bf16.gmra.mxu3 %v6180_v38  ;;  %v4354_v12 = vor.u32 %v5011_v29, %v4351_v54  ;;  %v4025_v29 = vld [vmem:[%s8222_s0 + $0x128] sm:$0xf]  ;;  %v4927_v54 = vld [vmem:[%s8222_s0 + $0x124] sm:$0xf] }
  0xe5   :  { %1887 = vmatmul.bf16.gmra.mxu1 %v6185_v56  ;;  %1951 = vmatpush.bf16.msra.mxu2 %v4734_v16  ;;  %v4931_v16 = vld [vmem:[%s8222_s0 + $0x140] sm:$0xf0] }
  0xe6   :  { %v1483_v11 = vpop.f32.mrf.mxu2  ;;  %2040 = vmatpush.bf16.msra.mxu3 %v4354_v12  ;;  %v6238_v35 = vor.u32 %v4931_v16, %v4025_v29 }
  0xe7   :  { %v1484_v26 = vadd.f32 %v1483_v11, %v5962_v8  ;;  %v1572_v30 = vpop.f32.mrf.mxu3  ;;  %v4019_v11 = vld [vmem:[%s8222_s0 + $0x13c] sm:$0xf0] }
  0xe8   :  { %v1445_v50 = vpop.f32.mrf.mxu0  ;;  %8341 = vst [vmem:[#allocation37_spill] sm:$0xff] %v6238_v35  ;;  %v6240_v56 = vor.u32 %v4927_v54, %v4019_v11  ;;  %v5049_v11 = vld [vmem:[%s8221_s1 + $0x174] sm:$0xf] }
  0xe9   :  { %v6206_v62 = vadd.f32 %v1572_v30, %v1484_v26  ;;  %v1446_v2 = vadd.f32 %v1445_v50, %v5962_v8  ;;  %v4928_v26 = vld [vmem:[%s8222_s0 + $0x12c] sm:$0xf]  ;;  %v4027_v30 = vld [vmem:[%s8222_s0 + $0x144] sm:$0xf0] }
  0xea   :  { %v1534_v20 = vpop.f32.mrf.mxu1  ;;  %8342 = vst [vmem:[#allocation38_spill] sm:$0xff] %v6240_v56  ;;  %v6245_v40 = vor.u32 %v4928_v26, %v4027_v30  ;;  %v4503_v30 = vld [vmem:[%s8221_s1 + $0x178] sm:$0xf0] }
  0xeb   :  { %v6209_v36 = vadd.f32 %v1534_v20, %v1446_v2  ;;  %v6236_v20 = vor.u32 %v4930_v10, %v4017_v44 }
  0xec   :  { %8343 = vst [vmem:[#allocation39_spill] sm:$0xff] %v6245_v40 }
  0xee   :  { %v1485_v12 = vpop.f32.mrf.mxu2 }
  0xef   :  { %v1486_v50 = vadd.f32 %v1485_v12, %v5962_v8  ;;  %v1574_v2 = vpop.f32.mrf.mxu3 }
  0xf0   :  { %v1448_v38 = vpop.f32.mrf.mxu0 }
  0xf1   :  { %v6242_v58 = vadd.f32 %v1574_v2, %v1486_v50  ;;  %v1449_v60 = vadd.f32 %v1448_v38, %v5962_v8  ;;  %v4045_v2 = vld [vmem:[%s8222_s0 + $0x158] sm:$0xf] }
  0xf2   :  { %v1537_v42 = vpop.f32.mrf.mxu1 }
  0xf3   :  { %1625 = vmatmul.bf16.gmra.mxu2 %v6236_v20  ;;  %v6248_v22 = vadd.f32 %v1537_v42, %v1449_v60  ;;  %1803 = vmatmul.bf16.gmra.mxu0 %v6238_v35  ;;  %v5033_v42 = vld [vmem:[%s8221_s1 + $0xf4] sm:$0xf]  ;;  %v4439_v60 = vld [vmem:[%s8221_s1 + $0xf8] sm:$0xf0] }
  0xf4   :  { %1714 = vmatmul.bf16.gmra.mxu3 %v6240_v56  ;;  %v4442_v26 = vor.u32 %v5033_v42, %v4439_v60  ;;  %v4047_v42 = vld [vmem:[%s8222_s0 + $0x174] sm:$0xf0] }
  0xf5   :  { %1892 = vmatmul.bf16.gmra.mxu1 %v6245_v40 }
  0xf6   :  { %v1488_v44 = vpop.f32.mrf.mxu2  ;;  %2126 = vmatpush.bf16.msra.mxu0 %v4442_v26 }
  0xf7   :  { %v1489_v10 = vadd.f32 %v1488_v44, %v5962_v8  ;;  %v1577_v29 = vpop.f32.mrf.mxu3  ;;  %v4506_v44 = vor.u32 %v5049_v11, %v4503_v30  ;;  %v4935_v11 = vld [vmem:[%s8222_s0 + $0x164] sm:$0xf] }
  0xf8   :  { %v1450_v16 = vpop.f32.mrf.mxu0 }
  0xf9   :  { %v6254_v54 = vadd.f32 %v1577_v29, %v1489_v10  ;;  %v1451_v38 = vadd.f32 %v1450_v16, %v5962_v8  ;;  %v4937_v10 = vld [vmem:[%s8222_s0 + $0x170] sm:$0xf0]  ;;  %v4053_v29 = vld [vmem:[%s8222_s0 + $0x160] sm:$0xf]  ;;  %v4938_v16 = vld [vmem:[%s8222_s0 + $0x178] sm:$0xf0]  ;;  %2215 = vmatpush.bf16.msra.mxu1 %v4506_v44 }
  0xfa   :  { %v1539_v12 = vpop.f32.mrf.mxu1  ;;  %v6296_v35 = vor.u32 %v4937_v10, %v4045_v2  ;;  %v6298_v40 = vor.u32 %v4938_v16, %v4053_v29  ;;  %v4725_v2 = vld [vmem:[%s8221_s1 + $0x330] sm:$0xf]  ;;  %v5106_v10 = vld [vmem:[%s8221_s1 + $0x334] sm:$0xf0] }
  0xfb   :  { %8344 = vst [vmem:[#allocation40_spill] sm:$0xff] %v6254_v54  ;;  %v6269_v50 = vadd.f32 %v1539_v12, %v1451_v38  ;;  %v4934_v38 = vld [vmem:[%s8222_s0 + $0x15c] sm:$0xf]  ;;  %v4055_v12 = vld [vmem:[%s8222_s0 + $0x17c] sm:$0xf0] }
  0xfc   :  { %8345 = vst [vmem:[#allocation41_spill] sm:$0xff] %v6296_v35  ;;  %v6300_v56 = vor.u32 %v4934_v38, %v4047_v42  ;;  %v6305_v4 = vor.u32 %v4935_v11, %v4055_v12 }
  0xfd   :  { %8346 = vst [vmem:[#allocation42_spill] sm:$0xff] %v6298_v40 }
  0xfe   :  { %v1490_v60 = vpop.f32.mrf.mxu2  ;;  %8347 = vst [vmem:[#allocation43_spill] sm:$0xff] %v6300_v56 }
  0xff   :  { %v1491_v26 = vadd.f32 %v1490_v60, %v5962_v8  ;;  %v1579_v30 = vpop.f32.mrf.mxu3  ;;  %8349 = vst [vmem:[#allocation45_spill] sm:$0xff] %v6305_v4 }
 0x100   :  { %v1453_v24 = vpop.f32.mrf.mxu0 }
 0x101   :  { %v6302_v44 = vadd.f32 %v1579_v30, %v1491_v26  ;;  %v1454_v0 = vadd.f32 %v1453_v24, %v5962_v8  ;;  %v5009_v24 = vld [vmem:[%s8221_s1 + $0x34] sm:$0xf] }
 0x102   :  { %v1542_v39 = vpop.f32.mrf.mxu1 }
 0x103   :  { %8348 = vst [vmem:[#allocation44_spill] sm:$0xff] %v6302_v44  ;;  %1630 = vmatmul.bf16.gmra.mxu2 %v6296_v35  ;;  %v6308_v45 = vadd.f32 %v1542_v39, %v1454_v0  ;;  %1808 = vmatmul.bf16.gmra.mxu0 %v6298_v40  ;;  %v4726_v0 = vor.u32 %v5106_v10, %v4725_v2  ;;  %v4343_v39 = vld [vmem:[%s8221_s1 + $0x38] sm:$0xf0]  ;;  %v4073_v2 = vld [vmem:[%s8222_s0 + $0x190] sm:$0xf] }
 0x104   :  { %1719 = vmatmul.bf16.gmra.mxu3 %v6300_v56  ;;  %v4346_v16 = vor.u32 %v5009_v24, %v4343_v39  ;;  %v4944_v10 = vld [vmem:[%s8222_s0 + $0x1a8] sm:$0xf0]  ;;  %v4081_v24 = vld [vmem:[%s8222_s0 + $0x198] sm:$0xf]  ;;  %v4941_v39 = vld [vmem:[%s8222_s0 + $0x194] sm:$0xf] }
 0x105   :  { %1897 = vmatmul.bf16.gmra.mxu1 %v6305_v4  ;;  %1952 = vmatpush.bf16.msra.mxu2 %v4726_v0  ;;  %v4945_v0 = vld [vmem:[%s8222_s0 + $0x1b0] sm:$0xf0] }
 0x106   :  { %v1493_v29 = vpop.f32.mrf.mxu2  ;;  %2041 = vmatpush.bf16.msra.mxu3 %v4346_v16  ;;  %v6358_v40 = vor.u32 %v4945_v0, %v4081_v24 }
 0x107   :  { %v1494_v38 = vadd.f32 %v1493_v29, %v5962_v8  ;;  %v1582_v42 = vpop.f32.mrf.mxu3  ;;  %v4075_v29 = vld [vmem:[%s8222_s0 + $0x1ac] sm:$0xf0] }
 0x108   :  { %v1455_v60 = vpop.f32.mrf.mxu0  ;;  %8352 = vst [vmem:[#allocation48_spill] sm:$0xff] %v6358_v40  ;;  %v6360_v4 = vor.u32 %v4941_v39, %v4075_v29 }
 0x109   :  { %v6326_v11 = vadd.f32 %v1582_v42, %v1494_v38  ;;  %v1456_v12 = vadd.f32 %v1455_v60, %v5962_v8  ;;  %v4942_v38 = vld [vmem:[%s8222_s0 + $0x19c] sm:$0xf]  ;;  %v4083_v42 = vld [vmem:[%s8222_s0 + $0x1b4] sm:$0xf0] }
 0x10a   :  { %v1544_v26 = vpop.f32.mrf.mxu1  ;;  %8353 = vst [vmem:[#allocation49_spill] sm:$0xff] %v6360_v4  ;;  %v6365_v52 = vor.u32 %v4942_v38, %v4083_v42  ;;  %v4101_v42 = vld [vmem:[%s8222_s0 + $0x1c8] sm:$0xf] }
 0x10b   :  { %8350 = vst [vmem:[#allocation46_spill] sm:$0xff] %v6326_v11  ;;  %v6329_v30 = vadd.f32 %v1544_v26, %v1456_v12  ;;  %v6356_v26 = vor.u32 %v4944_v10, %v4073_v2 }
 0x10c   :  { %8355 = vst [vmem:[#allocation51_spill] sm:$0xff] %v6365_v52 }
 0x10d   :  { %8351 = vst [vmem:[#allocation47_spill] sm:$0xff] %v6356_v26 }
 0x10e   :  { %v1495_v16 = vpop.f32.mrf.mxu2 }
 0x10f   :  { %v1496_v60 = vadd.f32 %v1495_v16, %v5962_v8  ;;  %v1584_v12 = vpop.f32.mrf.mxu3 }
 0x110   :  { %v1458_v56 = vpop.f32.mrf.mxu0 }
 0x111   :  { %v6362_v11 = vadd.f32 %v1584_v12, %v1496_v60  ;;  %v1459_v35 = vadd.f32 %v1458_v56, %v5962_v8  ;;  %v5047_v60 = vld [vmem:[%s8221_s1 + $0x164] sm:$0xf]  ;;  %v4495_v12 = vld [vmem:[%s8221_s1 + $0x168] sm:$0xf0] }
 0x112   :  { %v1547_v63 = vpop.f32.mrf.mxu1 }
 0x113   :  { %8354 = vst [vmem:[#allocation50_spill] sm:$0xff] %v6362_v11  ;;  %1635 = vmatmul.bf16.gmra.mxu2 %v6356_v26  ;;  %v6368_v44 = vadd.f32 %v1547_v63, %v1459_v35  ;;  %1813 = vmatmul.bf16.gmra.mxu0 %v6358_v40  ;;  %v5031_v63 = vld [vmem:[%s8221_s1 + $0xe4] sm:$0xf]  ;;  %v4431_v35 = vld [vmem:[%s8221_s1 + $0xe8] sm:$0xf0] }
 0x114   :  { %1724 = vmatmul.bf16.gmra.mxu3 %v6360_v4  ;;  %v4434_v16 = vor.u32 %v5031_v63, %v4431_v35  ;;  %v4103_v63 = vld [vmem:[%s8222_s0 + $0x1e4] sm:$0xf0]  ;;  %v4111_v40 = vld [vmem:[%s8222_s0 + $0x1ec] sm:$0xf0] }
 0x115   :  { %1902 = vmatmul.bf16.gmra.mxu1 %v6365_v52 }
 0x116   :  { %v1498_v2 = vpop.f32.mrf.mxu2  ;;  %2127 = vmatpush.bf16.msra.mxu0 %v4434_v16 }
 0x117   :  { %v1499_v10 = vadd.f32 %v1498_v2, %v5962_v8  ;;  %v1587_v24 = vpop.f32.mrf.mxu3  ;;  %v4951_v2 = vld [vmem:[%s8222_s0 + $0x1e0] sm:$0xf0] }
 0x118   :  { %v1460_v0 = vpop.f32.mrf.mxu0 }
 0x119   :  { %v6374_v39 = vadd.f32 %v1587_v24, %v1499_v10  ;;  %v1461_v56 = vadd.f32 %v1460_v0, %v5962_v8  ;;  %v4109_v10 = vld [vmem:[%s8222_s0 + $0x1d0] sm:$0xf]  ;;  %v4952_v24 = vld [vmem:[%s8222_s0 + $0x1e8] sm:$0xf0]  ;;  %v4498_v0 = vor.u32 %v5047_v60, %v4495_v12  ;;  %v6416_v12 = vor.u32 %v4951_v2, %v4101_v42  ;;  %v5104_v42 = vld [vmem:[%s8221_s1 + $0x324] sm:$0xf0] }
 0x11a   :  { %v1549_v29 = vpop.f32.mrf.mxu1  ;;  %v6418_v52 = vor.u32 %v4952_v24, %v4109_v10  ;;  %v4335_v24 = vld [vmem:[%s8221_s1 + $0x28] sm:$0xf0] }
 0x11b   :  { %8356 = vst [vmem:[#allocation52_spill] sm:$0xff] %v6374_v39  ;;  %v6383_v38 = vadd.f32 %v1549_v29, %v1461_v56  ;;  %v4948_v56 = vld [vmem:[%s8222_s0 + $0x1cc] sm:$0xf]  ;;  %v4949_v29 = vld [vmem:[%s8222_s0 + $0x1d4] sm:$0xf]  ;;  %2216 = vmatpush.bf16.msra.mxu1 %v4498_v0 }
 0x11c   :  { %8357 = vst [vmem:[#allocation53_spill] sm:$0xff] %v6416_v12  ;;  %v6420_v4 = vor.u32 %v4948_v56, %v4103_v63  ;;  %v6424_v11 = vor.u32 %v4949_v29, %v4111_v40  ;;  %v5007_v40 = vld [vmem:[%s8221_s1 + $0x24] sm:$0xf] }
 0x11d   :  { %8358 = vst [vmem:[#allocation54_spill] sm:$0xff] %v6418_v52  ;;  %v4338_v63 = vor.u32 %v5007_v40, %v4335_v24  ;;  %v4956_v24 = vld [vmem:[%s8222_s0 + $0x20c] sm:$0xf] }
 0x11e   :  { %v1500_v35 = vpop.f32.mrf.mxu2  ;;  %8359 = vst [vmem:[#allocation55_spill] sm:$0xff] %v6420_v4 }
 0x11f   :  { %v1501_v16 = vadd.f32 %v1500_v35, %v5962_v8  ;;  %v1589_v60 = vpop.f32.mrf.mxu3  ;;  %8361 = vst [vmem:[#allocation57_spill] sm:$0xff] %v6424_v11  ;;  %v4717_v8 = vld [vmem:[%s8221_s1 + $0x320] sm:$0xf]  ;;  %2042 = vmatpush.bf16.msra.mxu3 %v4338_v63 }
 0x120   :  { %v1779_v39 = vpop.f32.mrf.mxu0  ;;  %v4718_v10 = vor.u32 %v5104_v42, %v4717_v8  ;;  %v4958_v8 = vld [vmem:[%s8222_s0 + $0x218] sm:$0xf0]  ;;  %v4959_v42 = vld [vmem:[%s8222_s0 + $0x220] sm:$0xf0] }
 0x121   :  { %v6422_v26 = vadd.f32 %v1589_v60, %v1501_v16 }
 0x122   :  { %v1868_v54 = vpop.f32.mrf.mxu1  ;;  %1953 = vmatpush.bf16.msra.mxu2 %v4718_v10 }
 0x123   :  { %8360 = vst [vmem:[#allocation56_spill] sm:$0xff] %v6422_v26  ;;  %1640 = vmatmul.bf16.gmra.mxu2 %v6416_v12  ;;  %1818 = vmatmul.bf16.gmra.mxu0 %v6418_v52  ;;  %v4129_v52 = vld [vmem:[%s8222_s0 + $0x200] sm:$0xf] }
 0x124   :  { %1729 = vmatmul.bf16.gmra.mxu3 %v6420_v4  ;;  %v6470_v63 = vor.u32 %v4958_v8, %v4129_v52 }
 0x125   :  { %1907 = vmatmul.bf16.gmra.mxu1 %v6424_v11 }
 0x126   :  { %v1601_v2 = vpop.f32.mrf.mxu2  ;;  %8363 = vst [vmem:[#allocation59_spill] sm:$0xff] %v6470_v63 }
 0x127   :  { %v1602_v0 = vadd.f32 %v1601_v2, %v5972_v15  ;;  %v1690_v56 = vpop.f32.mrf.mxu3  ;;  %v4137_v15 = vld [vmem:[%s8222_s0 + $0x208] sm:$0xf]  ;;  %v4131_v2 = vld [vmem:[%s8222_s0 + $0x21c] sm:$0xf0] }
 0x128   :  { %v1781_v35 = vpop.f32.mrf.mxu0 }
 0x129   :  { %v1691_v29 = vadd.f32 %v1690_v56, %v1602_v0  ;;  %v4139_v0 = vld [vmem:[%s8222_s0 + $0x224] sm:$0xf0] }
 0x12a   :  { %v1870_v16 = vpop.f32.mrf.mxu1 }
 0x12b   :  { %v1780_v60 = vadd.f32 %v1779_v39, %v1691_v29  ;;  %v4955_v39 = vld [vmem:[%s8222_s0 + $0x204] sm:$0xf]  ;;  %v6472_v29 = vor.u32 %v4959_v42, %v4137_v15 }
 0x12d   :  { %v6455_v40 = vadd.f32 %v1868_v54, %v1780_v60  ;;  %8364 = vst [vmem:[#allocation60_spill] sm:$0xff] %v6472_v29  ;;  %v6474_v60 = vor.u32 %v4955_v39, %v4131_v2 }
 0x12e   :  { %v1603_v10 = vpop.f32.mrf.mxu2 }
 0x12f   :  { %8362 = vst [vmem:[#allocation58_spill] sm:$0xff] %v6455_v40  ;;  %v1604_v54 = vadd.f32 %v1603_v10, %v5993_v37  ;;  %v1692_v56 = vpop.f32.mrf.mxu3  ;;  %v6476_v40 = vor.u32 %v4956_v24, %v4139_v0  ;;  %v4487_v24 = vld [vmem:[%s8221_s1 + $0x158] sm:$0xf0]  ;;  %v4965_v0 = vld [vmem:[%s8222_s0 + $0x250] sm:$0xf0] }
 0x130   :  { %8365 = vst [vmem:[#allocation61_spill] sm:$0xff] %v6474_v60  ;;  %v1784_v11 = vpop.f32.mrf.mxu0 }
 0x131   :  { %v1693_v4 = vadd.f32 %v1692_v56, %v1604_v54  ;;  %8366 = vst [vmem:[#allocation62_spill] sm:$0xff] %v6476_v40  ;;  %v4966_v54 = vld [vmem:[%s8222_s0 + $0x258] sm:$0xf0] }
 0x132   :  { %v1873_v12 = vpop.f32.mrf.mxu1 }
 0x133   :  { %v1782_v26 = vadd.f32 %v1781_v35, %v1693_v4  ;;  %1645 = vmatmul.bf16.gmra.mxu2 %v6470_v63  ;;  %1823 = vmatmul.bf16.gmra.mxu0 %v6472_v29  ;;  %v5029_v4 = vld [vmem:[%s8221_s1 + $0xd4] sm:$0xf]  ;;  %v4423_v35 = vld [vmem:[%s8221_s1 + $0xd8] sm:$0xf0] }
 0x134   :  { %1734 = vmatmul.bf16.gmra.mxu3 %v6474_v60  ;;  %v4426_v10 = vor.u32 %v5029_v4, %v4423_v35  ;;  %v4963_v4 = vld [vmem:[%s8222_s0 + $0x244] sm:$0xf]  ;;  %v4167_v35 = vld [vmem:[%s8222_s0 + $0x25c] sm:$0xf0] }
 0x135   :  { %v6481_v37 = vadd.f32 %v1870_v16, %v1782_v26  ;;  %1912 = vmatmul.bf16.gmra.mxu1 %v6476_v40  ;;  %v4157_v16 = vld [vmem:[%s8222_s0 + $0x238] sm:$0xf]  ;;  %v6530_v60 = vor.u32 %v4963_v4, %v4167_v35  ;;  %v4185_v35 = vld [vmem:[%s8222_s0 + $0x270] sm:$0xf] }
 0x136   :  { %v1606_v52 = vpop.f32.mrf.mxu2  ;;  %2128 = vmatpush.bf16.msra.mxu0 %v4426_v10 }
 0x137   :  { %v1607_v8 = vadd.f32 %v1606_v52, %v6032_v31  ;;  %v1695_v15 = vpop.f32.mrf.mxu3  ;;  %v5045_v31 = vld [vmem:[%s8221_s1 + $0x154] sm:$0xf]  ;;  %8370 = vst [vmem:[#allocation66_spill] sm:$0xff] %v6530_v60 }
 0x138   :  { %v1786_v42 = vpop.f32.mrf.mxu0  ;;  %v4490_v56 = vor.u32 %v5045_v31, %v4487_v24 }
 0x139   :  { %v1696_v39 = vadd.f32 %v1695_v15, %v1607_v8  ;;  %v4962_v8 = vld [vmem:[%s8222_s0 + $0x23c] sm:$0xf]  ;;  %v4159_v15 = vld [vmem:[%s8222_s0 + $0x254] sm:$0xf0] }
 0x13a   :  { %v1875_v2 = vpop.f32.mrf.mxu1  ;;  %2217 = vmatpush.bf16.msra.mxu1 %v4490_v56  ;;  %v6528_v24 = vor.u32 %v4962_v8, %v4159_v15 }
 0x13b   :  { %v1785_v26 = vadd.f32 %v1784_v11, %v1696_v39  ;;  %v4165_v11 = vld [vmem:[%s8222_s0 + $0x240] sm:$0xf] }
 0x13c   :  { %v6526_v31 = vor.u32 %v4966_v54, %v4165_v11  ;;  %8369 = vst [vmem:[#allocation65_spill] sm:$0xff] %v6528_v24 }
 0x13d   :  { %v6509_v52 = vadd.f32 %v1873_v12, %v1785_v26  ;;  %v6524_v26 = vor.u32 %v4965_v0, %v4157_v16  ;;  %v4709_v16 = vld [vmem:[%s8221_s1 + $0x310] sm:$0xf]  ;;  %v5102_v0 = vld [vmem:[%s8221_s1 + $0x314] sm:$0xf0] }
 0x13e   :  { %v1608_v39 = vpop.f32.mrf.mxu2  ;;  %8368 = vst [vmem:[#allocation64_spill] sm:$0xff] %v6526_v31  ;;  %v4710_v11 = vor.u32 %v5102_v0, %v4709_v16  ;;  %v4187_v0 = vld [vmem:[%s8222_s0 + $0x28c] sm:$0xf0] }
 0x13f   :  { %8367 = vst [vmem:[#allocation63_spill] sm:$0xff] %v6509_v52  ;;  %v1609_v12 = vadd.f32 %v1608_v39, %v6041_v49  ;;  %v1697_v10 = vpop.f32.mrf.mxu3 }
 0x140   :  { %v1789_v29 = vpop.f32.mrf.mxu0  ;;  %1954 = vmatpush.bf16.msra.mxu2 %v4710_v11  ;;  %v4195_v11 = vld [vmem:[%s8222_s0 + $0x294] sm:$0xf0] }
 0x141   :  { %v1698_v40 = vadd.f32 %v1697_v10, %v1609_v12  ;;  %v4972_v12 = vld [vmem:[%s8222_s0 + $0x288] sm:$0xf0]  ;;  %v4973_v10 = vld [vmem:[%s8222_s0 + $0x290] sm:$0xf0] }
 0x142   :  { %v1878_v52 = vpop.f32.mrf.mxu1 }
 0x143   :  { %v1787_v63 = vadd.f32 %v1786_v42, %v1698_v40  ;;  %1650 = vmatmul.bf16.gmra.mxu2 %v6524_v26  ;;  %1828 = vmatmul.bf16.gmra.mxu0 %v6526_v31  ;;  %v5005_v40 = vld [vmem:[%s8221_s1 + $0x14] sm:$0xf] }
 0x144   :  { %1739 = vmatmul.bf16.gmra.mxu3 %v6528_v24 }
 0x145   :  { %v6535_v49 = vadd.f32 %v1875_v2, %v1787_v63  ;;  %1917 = vmatmul.bf16.gmra.mxu1 %v6530_v60  ;;  %v4327_v63 = vld [vmem:[%s8221_s1 + $0x18] sm:$0xf0] }
 0x146   :  { %v1611_v42 = vpop.f32.mrf.mxu2  ;;  %v4330_v56 = vor.u32 %v5005_v40, %v4327_v63 }
 0x147   :  { %v1612_v2 = vadd.f32 %v1611_v42, %v6080_v9  ;;  %v1700_v54 = vpop.f32.mrf.mxu3  ;;  %v4193_v9 = vld [vmem:[%s8222_s0 + $0x278] sm:$0xf]  ;;  %v4970_v42 = vld [vmem:[%s8222_s0 + $0x27c] sm:$0xf] }
 0x148   :  { %v1791_v8 = vpop.f32.mrf.mxu0  ;;  %2043 = vmatpush.bf16.msra.mxu3 %v4330_v56  ;;  %v6584_v31 = vor.u32 %v4970_v42, %v4195_v11  ;;  %v4479_v11 = vld [vmem:[%s8221_s1 + $0x148] sm:$0xf0] }
 0x149   :  { %v1701_v15 = vadd.f32 %v1700_v54, %v1612_v2  ;;  %v6578_v2 = vor.u32 %v4972_v12, %v4185_v35  ;;  %v6580_v54 = vor.u32 %v4973_v10, %v4193_v9 }
 0x14a   :  { %v1880_v39 = vpop.f32.mrf.mxu1  ;;  %8374 = vst [vmem:[#allocation70_spill] sm:$0xff] %v6584_v31 }
 0x14b   :  { %v1790_v4 = vadd.f32 %v1789_v29, %v1701_v15  ;;  %v4969_v29 = vld [vmem:[%s8222_s0 + $0x274] sm:$0xf]  ;;  %8371 = vst [vmem:[#allocation67_spill] sm:$0xff] %v6578_v2 }
 0x14c   :  { %8372 = vst [vmem:[#allocation68_spill] sm:$0xff] %v6580_v54  ;;  %v6582_v56 = vor.u32 %v4969_v29, %v4187_v0  ;;  %v4415_v0 = vld [vmem:[%s8221_s1 + $0xc8] sm:$0xf0] }
 0x14d   :  { %v6563_v16 = vadd.f32 %v1878_v52, %v1790_v4 }
 0x14e   :  { %v1613_v40 = vpop.f32.mrf.mxu2  ;;  %8373 = vst [vmem:[#allocation69_spill] sm:$0xff] %v6582_v56 }
 0x14f   :  { %v1614_v52 = vadd.f32 %v1613_v40, %v6101_v47  ;;  %v1702_v63 = vpop.f32.mrf.mxu3 }
 0x150   :  { %v1794_v15 = vpop.f32.mrf.mxu0 }
 0x151   :  { %v1703_v4 = vadd.f32 %v1702_v63, %v1614_v52  ;;  %v4979_v52 = vld [vmem:[%s8222_s0 + $0x2c0] sm:$0xf0]  ;;  %v4221_v63 = vld [vmem:[%s8222_s0 + $0x2b0] sm:$0xf] }
 0x152   :  { %v1883_v60 = vpop.f32.mrf.mxu1 }
 0x153   :  { %v1792_v24 = vadd.f32 %v1791_v8, %v1703_v4  ;;  %1655 = vmatmul.bf16.gmra.mxu2 %v6578_v2  ;;  %1833 = vmatmul.bf16.gmra.mxu0 %v6580_v54  ;;  %v5027_v8 = vld [vmem:[%s8221_s1 + $0xc4] sm:$0xf] }
 0x154   :  { %1744 = vmatmul.bf16.gmra.mxu3 %v6582_v56  ;;  %v4418_v42 = vor.u32 %v5027_v8, %v4415_v0  ;;  %v4977_v8 = vld [vmem:[%s8222_s0 + $0x2b4] sm:$0xf]  ;;  %v4223_v0 = vld [vmem:[%s8222_s0 + $0x2cc] sm:$0xf0] }
 0x155   :  { %v6589_v47 = vadd.f32 %v1880_v39, %v1792_v24  ;;  %1922 = vmatmul.bf16.gmra.mxu1 %v6584_v31  ;;  %v4213_v39 = vld [vmem:[%s8222_s0 + $0x2a8] sm:$0xf]  ;;  %v6638_v56 = vor.u32 %v4977_v8, %v4223_v0  ;;  %v4241_v0 = vld [vmem:[%s8222_s0 + $0x2e0] sm:$0xf] }
 0x156   :  { %v1616_v35 = vpop.f32.mrf.mxu2  ;;  %2129 = vmatpush.bf16.msra.mxu0 %v4418_v42 }
 0x157   :  { %v1617_v12 = vadd.f32 %v1616_v35, %v6140_v51  ;;  %v1705_v9 = vpop.f32.mrf.mxu3  ;;  %v5043_v51 = vld [vmem:[%s8221_s1 + $0x144] sm:$0xf]  ;;  %8378 = vst [vmem:[#allocation74_spill] sm:$0xff] %v6638_v56 }
 0x158   :  { %v1796_v10 = vpop.f32.mrf.mxu0  ;;  %v4482_v4 = vor.u32 %v5043_v51, %v4479_v11 }
 0x159   :  { %v1706_v29 = vadd.f32 %v1705_v9, %v1617_v12  ;;  %v4976_v12 = vld [vmem:[%s8222_s0 + $0x2ac] sm:$0xf]  ;;  %v4215_v9 = vld [vmem:[%s8222_s0 + $0x2c4] sm:$0xf0] }
 0x15a   :  { %v1885_v40 = vpop.f32.mrf.mxu1  ;;  %2218 = vmatpush.bf16.msra.mxu1 %v4482_v4  ;;  %v6636_v11 = vor.u32 %v4976_v12, %v4215_v9 }
 0x15b   :  { %v1795_v24 = vadd.f32 %v1794_v15, %v1706_v29  ;;  %v4980_v15 = vld [vmem:[%s8222_s0 + $0x2c8] sm:$0xf0] }
 0x15c   :  { %v6634_v51 = vor.u32 %v4980_v15, %v4221_v63  ;;  %8377 = vst [vmem:[#allocation73_spill] sm:$0xff] %v6636_v11 }
 0x15d   :  { %v6617_v35 = vadd.f32 %v1883_v60, %v1795_v24  ;;  %v6632_v24 = vor.u32 %v4979_v52, %v4213_v39  ;;  %v4701_v39 = vld [vmem:[%s8221_s1 + $0x300] sm:$0xf]  ;;  %v5100_v52 = vld [vmem:[%s8221_s1 + $0x304] sm:$0xf0] }
 0x15e   :  { %v1618_v29 = vpop.f32.mrf.mxu2  ;;  %8376 = vst [vmem:[#allocation72_spill] sm:$0xff] %v6634_v51  ;;  %v4702_v63 = vor.u32 %v5100_v52, %v4701_v39  ;;  %v4243_v52 = vld [vmem:[%s8222_s0 + $0x2fc] sm:$0xf0] }
 0x15f   :  { %8375 = vst [vmem:[#allocation71_spill] sm:$0xff] %v6617_v35  ;;  %v1619_v60 = vadd.f32 %v1618_v29, %v6149_v6  ;;  %v1707_v42 = vpop.f32.mrf.mxu3 }
 0x160   :  { %v1799_v54 = vpop.f32.mrf.mxu0  ;;  %1955 = vmatpush.bf16.msra.mxu2 %v4702_v63  ;;  %v4251_v63 = vld [vmem:[%s8222_s0 + $0x304] sm:$0xf0] }
 0x161   :  { %v1708_v31 = vadd.f32 %v1707_v42, %v1619_v60  ;;  %v4986_v60 = vld [vmem:[%s8222_s0 + $0x2f8] sm:$0xf0]  ;;  %v4987_v42 = vld [vmem:[%s8222_s0 + $0x300] sm:$0xf0] }
 0x162   :  { %v1888_v35 = vpop.f32.mrf.mxu1 }
 0x163   :  { %v1797_v2 = vadd.f32 %v1796_v10, %v1708_v31  ;;  %1660 = vmatmul.bf16.gmra.mxu2 %v6632_v24  ;;  %1838 = vmatmul.bf16.gmra.mxu0 %v6634_v51  ;;  %v5003_v31 = vld [vmem:[%s8221_s1 + $0x4] sm:$0xf] }
 0x164   :  { %1749 = vmatmul.bf16.gmra.mxu3 %v6636_v11 }
 0x165   :  { %v6643_v6 = vadd.f32 %v1885_v40, %v1797_v2  ;;  %1927 = vmatmul.bf16.gmra.mxu1 %v6638_v56  ;;  %v4319_v2 = vld [vmem:[%s8221_s1 + $0x8] sm:$0xf0] }
 0x166   :  { %v1621_v10 = vpop.f32.mrf.mxu2  ;;  %v4322_v4 = vor.u32 %v5003_v31, %v4319_v2 }
 0x167   :  { %v1622_v40 = vadd.f32 %v1621_v10, %v6188_v18  ;;  %v1710_v15 = vpop.f32.mrf.mxu3  ;;  %v4249_v18 = vld [vmem:[%s8222_s0 + $0x2e8] sm:$0xf]  ;;  %v4984_v10 = vld [vmem:[%s8222_s0 + $0x2ec] sm:$0xf] }
 0x168   :  { %v1801_v12 = vpop.f32.mrf.mxu0  ;;  %2044 = vmatpush.bf16.msra.mxu3 %v4322_v4  ;;  %v6692_v51 = vor.u32 %v4984_v10, %v4251_v63  ;;  %v4471_v63 = vld [vmem:[%s8221_s1 + $0x138] sm:$0xf0] }
 0x169   :  { %v1711_v9 = vadd.f32 %v1710_v15, %v1622_v40  ;;  %v6686_v40 = vor.u32 %v4986_v60, %v4241_v0  ;;  %v6688_v15 = vor.u32 %v4987_v42, %v4249_v18 }
 0x16a   :  { %v1890_v29 = vpop.f32.mrf.mxu1  ;;  %8383 = vst [vmem:[#allocation79_spill] sm:$0xff] %v6692_v51 }
 0x16b   :  { %v1800_v8 = vadd.f32 %v1799_v54, %v1711_v9  ;;  %v4983_v54 = vld [vmem:[%s8222_s0 + $0x2e4] sm:$0xf]  ;;  %8380 = vst [vmem:[#allocation76_spill] sm:$0xff] %v6686_v40 }
 0x16c   :  { %8381 = vst [vmem:[#allocation77_spill] sm:$0xff] %v6688_v15  ;;  %v6690_v4 = vor.u32 %v4983_v54, %v4243_v52  ;;  %v4407_v52 = vld [vmem:[%s8221_s1 + $0xb8] sm:$0xf0] }
 0x16d   :  { %v6671_v39 = vadd.f32 %v1888_v35, %v1800_v8 }
 0x16e   :  { %v1623_v31 = vpop.f32.mrf.mxu2  ;;  %8382 = vst [vmem:[#allocation78_spill] sm:$0xff] %v6690_v4 }
 0x16f   :  { %8379 = vst [vmem:[#allocation75_spill] sm:$0xff] %v6671_v39  ;;  %v1624_v35 = vadd.f32 %v1623_v31, %v6209_v36  ;;  %v1712_v2 = vpop.f32.mrf.mxu3 }
 0x170   :  { %v1804_v9 = vpop.f32.mrf.mxu0 }
 0x171   :  { %v1713_v8 = vadd.f32 %v1712_v2, %v1624_v35  ;;  %v4993_v35 = vld [vmem:[%s8222_s0 + $0x330] sm:$0xf0]  ;;  %v4277_v2 = vld [vmem:[%s8222_s0 + $0x320] sm:$0xf] }
 0x172   :  { %v1893_v56 = vpop.f32.mrf.mxu1 }
 0x173   :  { %v1802_v11 = vadd.f32 %v1801_v12, %v1713_v8  ;;  %1665 = vmatmul.bf16.gmra.mxu2 %v6686_v40  ;;  %1843 = vmatmul.bf16.gmra.mxu0 %v6688_v15  ;;  %v5025_v12 = vld [vmem:[%s8221_s1 + $0xb4] sm:$0xf]  ;;  %v4463_v40 = vld [vmem:[%s8221_s1 + $0x128] sm:$0xf0] }
 0x174   :  { %1754 = vmatmul.bf16.gmra.mxu3 %v6690_v4  ;;  %v4410_v10 = vor.u32 %v5025_v12, %v4407_v52  ;;  %v4279_v52 = vld [vmem:[%s8222_s0 + $0x33c] sm:$0xf0] }
 0x175   :  { %v6697_v36 = vadd.f32 %v1890_v29, %v1802_v11  ;;  %1932 = vmatmul.bf16.gmra.mxu1 %v6692_v51  ;;  %v4269_v29 = vld [vmem:[%s8222_s0 + $0x318] sm:$0xf] }
 0x176   :  { %v1626_v0 = vpop.f32.mrf.mxu2  ;;  %2130 = vmatpush.bf16.msra.mxu0 %v4410_v10  ;;  %v4399_v10 = vld [vmem:[%s8221_s1 + $0xa8] sm:$0xf0] }
 0x177   :  { %8384 = vst [vmem:[#allocation80_spill] sm:$0xff] %v6697_v36  ;;  %v1627_v60 = vadd.f32 %v1626_v0, %v6248_v22  ;;  %v1715_v18 = vpop.f32.mrf.mxu3  ;;  %v5041_v22 = vld [vmem:[%s8221_s1 + $0x134] sm:$0xf] }
 0x178   :  { %v1806_v42 = vpop.f32.mrf.mxu0  ;;  %v4474_v8 = vor.u32 %v5041_v22, %v4471_v63  ;;  %v6746_v63 = vor.u32 %v4993_v35, %v4269_v29  ;;  %v5021_v35 = vld [vmem:[%s8221_s1 + $0x94] sm:$0xf] }
 0x179   :  { %v1716_v54 = vadd.f32 %v1715_v18, %v1627_v60  ;;  %v4990_v60 = vld [vmem:[%s8222_s0 + $0x31c] sm:$0xf]  ;;  %v4271_v18 = vld [vmem:[%s8222_s0 + $0x334] sm:$0xf0] }
 0x17a   :  { %v1895_v31 = vpop.f32.mrf.mxu1  ;;  %2219 = vmatpush.bf16.msra.mxu1 %v4474_v8  ;;  %v6750_v4 = vor.u32 %v4990_v60, %v4271_v18  ;;  %v5039_v8 = vld [vmem:[%s8221_s1 + $0x124] sm:$0xf] }
 0x17b   :  { %v1805_v11 = vadd.f32 %v1804_v9, %v1716_v54  ;;  %v4994_v9 = vld [vmem:[%s8222_s0 + $0x338] sm:$0xf0]  ;;  %v4991_v54 = vld [vmem:[%s8222_s0 + $0x324] sm:$0xf] }
 0x17c   :  { %v6748_v15 = vor.u32 %v4994_v9, %v4277_v2  ;;  %8387 = vst [vmem:[#allocation83_spill] sm:$0xff] %v6750_v4  ;;  %v6758_v39 = vor.u32 %v4991_v54, %v4279_v52  ;;  %v4391_v2 = vld [vmem:[%s8221_s1 + $0x98] sm:$0xf0]  ;;  %v5081_v54 = vld [vmem:[%s8221_s1 + $0x274] sm:$0xf] }
 0x17d   :  { %v6725_v0 = vadd.f32 %v1893_v56, %v1805_v11  ;;  %v5023_v56 = vld [vmem:[%s8221_s1 + $0xa4] sm:$0xf]  ;;  %v4394_v60 = vor.u32 %v5021_v35, %v4391_v2 }
 0x17e   :  { %v1628_v12 = vpop.f32.mrf.mxu2  ;;  %8386 = vst [vmem:[#allocation82_spill] sm:$0xff] %v6748_v15  ;;  %v4402_v51 = vor.u32 %v5023_v56, %v4399_v10  ;;  %v5019_v10 = vld [vmem:[%s8221_s1 + $0x84] sm:$0xf] }
 0x17f   :  { %8385 = vst [vmem:[#allocation81_spill] sm:$0xff] %v6725_v0  ;;  %v1629_v11 = vadd.f32 %v1628_v12, %v6269_v50  ;;  %v1717_v22 = vpop.f32.mrf.mxu3  ;;  %v4466_v50 = vor.u32 %v5039_v8, %v4463_v40  ;;  %v4455_v40 = vld [vmem:[%s8221_s1 + $0x118] sm:$0xf0] }
 0x180   :  { %v1809_v0 = vpop.f32.mrf.mxu0  ;;  %8388 = vst [vmem:[#allocation84_spill] sm:$0xff] %v6758_v39  ;;  %2131 = vmatpush.bf16.msra.mxu0 %v4402_v51  ;;  %v5037_v51 = vld [vmem:[%s8221_s1 + $0x114] sm:$0xf] }
 0x181   :  { %v1718_v36 = vadd.f32 %v1717_v22, %v1629_v11  ;;  %2220 = vmatpush.bf16.msra.mxu1 %v4466_v50  ;;  %v4458_v12 = vor.u32 %v5037_v51, %v4455_v40  ;;  %v4383_v11 = vld [vmem:[%s8221_s1 + $0x88] sm:$0xf0] }
 0x182   :  { %v1898_v29 = vpop.f32.mrf.mxu1  ;;  %v4386_v35 = vor.u32 %v5019_v10, %v4383_v11  ;;  %v4998_v11 = vld [vmem:[%s8222_s0 + $0x35c] sm:$0xf] }
 0x183   :  { %v1807_v9 = vadd.f32 %v1806_v42, %v1718_v36  ;;  %1670 = vmatmul.bf16.gmra.mxu2 %v6746_v63  ;;  %1848 = vmatmul.bf16.gmra.mxu0 %v6748_v15  ;;  %v5065_v36 = vld [vmem:[%s8221_s1 + $0x1f4] sm:$0xf]  ;;  %v4567_v42 = vld [vmem:[%s8221_s1 + $0x1f8] sm:$0xf0] }
 0x184   :  { %1759 = vmatmul.bf16.gmra.mxu3 %v6750_v4  ;;  %2132 = vmatpush.bf16.msra.mxu0 %v4394_v60  ;;  %v4570_v56 = vor.u32 %v5065_v36, %v4567_v42  ;;  %v4447_v60 = vld [vmem:[%s8221_s1 + $0x108] sm:$0xf0]  ;;  %v4297_v42 = vld [vmem:[%s8222_s0 + $0x350] sm:$0xf] }
 0x185   :  { %v6775_v18 = vadd.f32 %v1895_v31, %v1807_v9  ;;  %1937 = vmatmul.bf16.gmra.mxu1 %v6758_v39  ;;  %v4631_v31 = vld [vmem:[%s8221_s1 + $0x278] sm:$0xf0]  ;;  %v5035_v9 = vld [vmem:[%s8221_s1 + $0x104] sm:$0xf]  ;;  %v8422_v39 = vld [vmem:[#allocation11_spill] sm:$0xff] }
 0x186   :  { %v1631_v52 = vpop.f32.mrf.mxu2  ;;  %v4634_v50 = vor.u32 %v5081_v54, %v4631_v31  ;;  %2304 = vmatpush.bf16.msrb.mxu2 %v4570_v56  ;;  %2221 = vmatpush.bf16.msra.mxu1 %v4458_v12  ;;  %v4450_v40 = vor.u32 %v5035_v9, %v4447_v60  ;;  %v5000_v54 = vld [vmem:[%s8222_s0 + $0x368] sm:$0xf0]  ;;  %v4305_v12 = vld [vmem:[%s8222_s0 + $0x358] sm:$0xf]  ;;  %v4299_v31 = vld [vmem:[%s8222_s0 + $0x36c] sm:$0xf0] }
 0x187   :  { %v1632_v22 = vadd.f32 %v1631_v52, %v6308_v45  ;;  %v1720_v8 = vpop.f32.mrf.mxu3  ;;  %v5001_v52 = vld [vmem:[%s8222_s0 + $0x370] sm:$0xf0] }
 0x188   :  { %v1811_v2 = vpop.f32.mrf.mxu0  ;;  %2393 = vmatpush.bf16.msrb.mxu3 %v4634_v50  ;;  %2133 = vmatpush.bf16.msra.mxu0 %v4386_v35  ;;  %v6830_v50 = vor.u32 %v5000_v54, %v4297_v42  ;;  %v6832_v35 = vor.u32 %v5001_v52, %v4305_v12 }
 0x189   :  { %v1721_v51 = vadd.f32 %v1720_v8, %v1632_v22  ;;  %v4307_v22 = vld [vmem:[%s8222_s0 + $0x374] sm:$0xf0] }
 0x18a   :  { %v1900_v36 = vpop.f32.mrf.mxu1  ;;  %2222 = vmatpush.bf16.msra.mxu1 %v4450_v40  ;;  %8389 = vst [vmem:[#allocation85_spill] sm:$0xff] %v6832_v35  ;;  %v6836_v40 = vor.u32 %v4998_v11, %v4307_v22  ;;  %v4897_v11 = vld [vmem:[%s8222_s0 + $0x30] sm:$0xf0] }
 0x18b   :  { %v1810_v45 = vadd.f32 %v1809_v0, %v1721_v51  ;;  %v4997_v0 = vld [vmem:[%s8222_s0 + $0x354] sm:$0xf] }
 0x18c   :  { %v6834_v9 = vor.u32 %v4997_v0, %v4299_v31  ;;  %8391 = vst [vmem:[#allocation87_spill] sm:$0xff] %v6836_v40 }
 0x18d   :  { %v6815_v56 = vadd.f32 %v1898_v29, %v1810_v45 }
 0x18e   :  { %v1633_v10 = vpop.f32.mrf.mxu2  ;;  %8390 = vst [vmem:[#allocation86_spill] sm:$0xff] %v6834_v9 }
 0x18f   :  { %v1634_v29 = vadd.f32 %v1633_v10, %v6329_v30  ;;  %v1722_v8 = vpop.f32.mrf.mxu3 }
 0x190   :  { %v1814_v60 = vpop.f32.mrf.mxu0 }
 0x191   :  { %v1723_v51 = vadd.f32 %v1722_v8, %v1634_v29 }
 0x192   :  { %v1903_v45 = vpop.f32.mrf.mxu1 }
 0x193   :  { %v1812_v15 = vadd.f32 %v1811_v2, %v1723_v51  ;;  %1675 = vmatmul.bf16.gmra.mxu2 %v6830_v50  ;;  %1853 = vmatmul.bf16.gmra.mxu0 %v6832_v35  ;;  %v3893_v2 = vld [vmem:[%s8222_s0 + $0x18] sm:$0xf]  ;;  %v8410_v35 = vld [vmem:[#allocation4_spill] sm:$0xff] }
 0x194   :  { %1764 = vmatmul.bf16.gmra.mxu3 %v6834_v9 }
 0x195   :  { %v6841_v30 = vadd.f32 %v1900_v36, %v1812_v15  ;;  %1942 = vmatmul.bf16.gmra.mxu1 %v6836_v40  ;;  %v8413_v40 = vld [vmem:[#allocation7_spill] sm:$0xff] }
 0x196   :  { %v1636_v42 = vpop.f32.mrf.mxu2 }
 0x197   :  { %v1637_v54 = vadd.f32 %v1636_v42, %v6368_v44  ;;  %v1725_v12 = vpop.f32.mrf.mxu3  ;;  %v6854_v44 = vor.u32 %v4897_v11, %v3893_v2 }
 0x198   :  { %v1816_v52 = vpop.f32.mrf.mxu0 }
 0x199   :  { %v1726_v0 = vadd.f32 %v1725_v12, %v1637_v54  ;;  %v5079_v12 = vld [vmem:[%s8221_s1 + $0x264] sm:$0xf] }
 0x19a   :  { %v1905_v31 = vpop.f32.mrf.mxu1 }
 0x19b   :  { %v1815_v10 = vadd.f32 %v1814_v60, %v1726_v0 }
 0x19d   :  { %v6851_v15 = vadd.f32 %v1903_v45, %v1815_v10  ;;  %v4559_v45 = vld [vmem:[%s8221_s1 + $0x1e8] sm:$0xf0] }
 0x19e   :  { %v1638_v36 = vpop.f32.mrf.mxu2 }
 0x19f   :  { %v1639_v22 = vadd.f32 %v1638_v36, %v6383_v38  ;;  %v1727_v29 = vpop.f32.mrf.mxu3  ;;  %v5063_v38 = vld [vmem:[%s8221_s1 + $0x1e4] sm:$0xf] }
 0x1a0   :  { %v1819_v8 = vpop.f32.mrf.mxu0 }
 0x1a1   :  { %v1728_v51 = vadd.f32 %v1727_v29, %v1639_v22  ;;  %v3921_v22 = vld [vmem:[%s8222_s0 + $0x50] sm:$0xf]  ;;  %v4904_v29 = vld [vmem:[%s8222_s0 + $0x68] sm:$0xf0] }
 0x1a2   :  { %v1908_v42 = vpop.f32.mrf.mxu1 }
 0x1a3   :  { %v1817_v60 = vadd.f32 %v1816_v52, %v1728_v51  ;;  %1956 = vmatmul.bf16.vlgmr.msra.gmra.mxu2 %v6854_v44  ;;  %2134 = vmatmul.bf16.vlgmr.msra.gmra.mxu0 %v5495_v5  ;;  %v4562_v5 = vor.u32 %v5063_v38, %v4559_v45  ;;  %v6884_v45 = vor.u32 %v4904_v29, %v3921_v22 }
 0x1a4   :  { %2045 = vmatmul.bf16.vlgmr.msra.gmra.mxu3 %v5485_v1  ;;  %v4623_v1 = vld [vmem:[%s8221_s1 + $0x268] sm:$0xf0] }
 0x1a5   :  { %v6859_v54 = vadd.f32 %v1905_v31, %v1817_v60  ;;  %2223 = vmatmul.bf16.vlgmr.msra.gmra.mxu1 %v5960_v7  ;;  %v4626_v31 = vor.u32 %v5079_v12, %v4623_v1  ;;  %2305 = vmatpush.bf16.msrb.mxu2 %v4562_v5 }
 0x1a6   :  { %v1641_v52 = vpop.f32.mrf.mxu2 }
 0x1a7   :  { %v1642_v7 = vadd.f32 %v1641_v52, %v5990_v34  ;;  %v1730_v0 = vpop.f32.mrf.mxu3  ;;  %2394 = vmatpush.bf16.msrb.mxu3 %v4626_v31 }
 0x1a8   :  { %v1821_v10 = vpop.f32.mrf.mxu0 }
 0x1a9   :  { %v1731_v2 = vadd.f32 %v1730_v0, %v1642_v7 }
 0x1aa   :  { %v1910_v11 = vpop.f32.mrf.mxu1 }
 0x1ab   :  { %v1820_v36 = vadd.f32 %v1819_v8, %v1731_v2 }
 0x1ad   :  { %v6881_v51 = vadd.f32 %v1908_v42, %v1820_v36 }
 0x1ae   :  { %v1643_v60 = vpop.f32.mrf.mxu2 }
 0x1af   :  { %v1644_v34 = vadd.f32 %v1643_v60, %v6026_v27  ;;  %v1732_v38 = vpop.f32.mrf.mxu3 }
 0x1b0   :  { %v1824_v12 = vpop.f32.mrf.mxu0 }
 0x1b1   :  { %v1733_v52 = vadd.f32 %v1732_v38, %v1644_v34 }
 0x1b2   :  { %v1913_v5 = vpop.f32.mrf.mxu1 }
 0x1b3   :  { %v1822_v8 = vadd.f32 %v1821_v10, %v1733_v52  ;;  %1961 = vmatmul.bf16.gmra.mxu2 %v6884_v45  ;;  %2139 = vmatmul.bf16.gmra.mxu0 %v5543_v25  ;;  %v3949_v10 = vld [vmem:[%s8222_s0 + $0x88] sm:$0xf]  ;;  %v4551_v52 = vld [vmem:[%s8221_s1 + $0x1d8] sm:$0xf0] }
 0x1b4   :  { %2050 = vmatmul.bf16.gmra.mxu3 %v5539_v23  ;;  %v4911_v23 = vld [vmem:[%s8222_s0 + $0xa0] sm:$0xf0] }
 0x1b5   :  { %v6889_v1 = vadd.f32 %v1910_v11, %v1822_v8  ;;  %2228 = vmatmul.bf16.gmra.mxu1 %v6020_v14 }
 0x1b6   :  { %v1646_v42 = vpop.f32.mrf.mxu2 }
 0x1b7   :  { %v1647_v27 = vadd.f32 %v1646_v42, %v6038_v46  ;;  %v1735_v7 = vpop.f32.mrf.mxu3  ;;  %v6902_v46 = vor.u32 %v4911_v23, %v3949_v10  ;;  %v4918_v10 = vld [vmem:[%s8222_s0 + $0xd8] sm:$0xf0] }
 0x1b8   :  { %v1826_v0 = vpop.f32.mrf.mxu0 }
 0x1b9   :  { %v1736_v31 = vadd.f32 %v1735_v7, %v1647_v27 }
 0x1ba   :  { %v1915_v2 = vpop.f32.mrf.mxu1 }
 0x1bb   :  { %v1825_v36 = vadd.f32 %v1824_v12, %v1736_v31 }
 0x1bd   :  { %v6899_v25 = vadd.f32 %v1913_v5, %v1825_v36  ;;  %v5077_v5 = vld [vmem:[%s8221_s1 + $0x254] sm:$0xf]  ;;  %v3977_v36 = vld [vmem:[%s8222_s0 + $0xc0] sm:$0xf] }
 0x1be   :  { %v1648_v11 = vpop.f32.mrf.mxu2 }
 0x1bf   :  { %v1649_v14 = vadd.f32 %v1648_v11, %v6074_v48  ;;  %v1737_v22 = vpop.f32.mrf.mxu3  ;;  %v5061_v48 = vld [vmem:[%s8221_s1 + $0x1d4] sm:$0xf] }
 0x1c0   :  { %v1829_v29 = vpop.f32.mrf.mxu0 }
 0x1c1   :  { %v1738_v60 = vadd.f32 %v1737_v22, %v1649_v14  ;;  %v6932_v22 = vor.u32 %v4918_v10, %v3977_v36 }
 0x1c2   :  { %v1918_v34 = vpop.f32.mrf.mxu1 }
 0x1c3   :  { %v1827_v38 = vadd.f32 %v1826_v0, %v1738_v60  ;;  %1966 = vmatmul.bf16.gmra.mxu2 %v6902_v46  ;;  %2144 = vmatmul.bf16.gmra.mxu0 %v5591_v43  ;;  %v4554_v43 = vor.u32 %v5061_v48, %v4551_v52 }
 0x1c4   :  { %2055 = vmatmul.bf16.gmra.mxu3 %v5587_v41  ;;  %v4615_v41 = vld [vmem:[%s8221_s1 + $0x258] sm:$0xf0] }
 0x1c5   :  { %v6907_v12 = vadd.f32 %v1915_v2, %v1827_v38  ;;  %2233 = vmatmul.bf16.gmra.mxu1 %v6068_v33  ;;  %v4618_v27 = vor.u32 %v5077_v5, %v4615_v41  ;;  %2306 = vmatpush.bf16.msrb.mxu2 %v4554_v43 }
 0x1c6   :  { %v1651_v8 = vpop.f32.mrf.mxu2 }
 0x1c7   :  { %v1652_v33 = vadd.f32 %v1651_v8, %v6098_v28  ;;  %v1740_v42 = vpop.f32.mrf.mxu3  ;;  %2395 = vmatpush.bf16.msrb.mxu3 %v4618_v27 }
 0x1c8   :  { %v1831_v7 = vpop.f32.mrf.mxu0 }
 0x1c9   :  { %v1741_v0 = vadd.f32 %v1740_v42, %v1652_v33  ;;  %v4005_v42 = vld [vmem:[%s8222_s0 + $0xf8] sm:$0xf] }
 0x1ca   :  { %v1920_v31 = vpop.f32.mrf.mxu1 }
 0x1cb   :  { %v1830_v2 = vadd.f32 %v1829_v29, %v1741_v0 }
 0x1cd   :  { %v6929_v23 = vadd.f32 %v1918_v34, %v1830_v2 }
 0x1ce   :  { %v1653_v11 = vpop.f32.mrf.mxu2 }
 0x1cf   :  { %v1654_v28 = vadd.f32 %v1653_v11, %v6134_v13  ;;  %v1742_v14 = vpop.f32.mrf.mxu3  ;;  %v4543_v11 = vld [vmem:[%s8221_s1 + $0x1c8] sm:$0xf0] }
 0x1d0   :  { %v1834_v60 = vpop.f32.mrf.mxu0 }
 0x1d1   :  { %v1743_v38 = vadd.f32 %v1742_v14, %v1654_v28  ;;  %v5075_v28 = vld [vmem:[%s8221_s1 + $0x244] sm:$0xf] }
 0x1d2   :  { %v1923_v48 = vpop.f32.mrf.mxu1 }
 0x1d3   :  { %v1832_v29 = vadd.f32 %v1831_v7, %v1743_v38  ;;  %1971 = vmatmul.bf16.gmra.mxu2 %v6932_v22  ;;  %2149 = vmatmul.bf16.gmra.mxu0 %v5639_v61 }
 0x1d4   :  { %2060 = vmatmul.bf16.gmra.mxu3 %v5635_v59  ;;  %v4925_v59 = vld [vmem:[%s8222_s0 + $0x110] sm:$0xf0] }
 0x1d5   :  { %v6937_v52 = vadd.f32 %v1920_v31, %v1832_v29  ;;  %2238 = vmatmul.bf16.gmra.mxu1 %v6128_v32 }
 0x1d6   :  { %v1656_v34 = vpop.f32.mrf.mxu2 }
 0x1d7   :  { %v1657_v13 = vadd.f32 %v1656_v34, %v6146_v21  ;;  %v1745_v5 = vpop.f32.mrf.mxu3  ;;  %v6950_v21 = vor.u32 %v4925_v59, %v4005_v42 }
 0x1d8   :  { %v1836_v8 = vpop.f32.mrf.mxu0 }
 0x1d9   :  { %v1746_v43 = vadd.f32 %v1745_v5, %v1657_v13  ;;  %v4033_v5 = vld [vmem:[%s8222_s0 + $0x130] sm:$0xf] }
 0x1da   :  { %v1925_v41 = vpop.f32.mrf.mxu1 }
 0x1db   :  { %v1835_v33 = vadd.f32 %v1834_v60, %v1746_v43 }
 0x1dd   :  { %v6947_v61 = vadd.f32 %v1923_v48, %v1835_v33 }
 0x1de   :  { %v1658_v27 = vpop.f32.mrf.mxu2 }
 0x1df   :  { %v1659_v32 = vadd.f32 %v1658_v27, %v6182_v53  ;;  %v1747_v7 = vpop.f32.mrf.mxu3  ;;  %v5059_v53 = vld [vmem:[%s8221_s1 + $0x1c4] sm:$0xf] }
 0x1e0   :  { %v1839_v0 = vpop.f32.mrf.mxu0 }
 0x1e1   :  { %v1748_v31 = vadd.f32 %v1747_v7, %v1659_v32 }
 0x1e2   :  { %v1928_v2 = vpop.f32.mrf.mxu1 }
 0x1e3   :  { %v1837_v36 = vadd.f32 %v1836_v8, %v1748_v31  ;;  %1976 = vmatmul.bf16.gmra.mxu2 %v6950_v21  ;;  %2154 = vmatmul.bf16.gmra.mxu0 %v5687_v19  ;;  %v4546_v19 = vor.u32 %v5059_v53, %v4543_v11  ;;  %v4932_v8 = vld [vmem:[%s8222_s0 + $0x148] sm:$0xf0] }
 0x1e4   :  { %2065 = vmatmul.bf16.gmra.mxu3 %v5683_v17  ;;  %v4607_v17 = vld [vmem:[%s8221_s1 + $0x248] sm:$0xf0]  ;;  %v6980_v42 = vor.u32 %v4932_v8, %v4033_v5 }
 0x1e5   :  { %v6955_v10 = vadd.f32 %v1925_v41, %v1837_v36  ;;  %2243 = vmatmul.bf16.gmra.mxu1 %v6176_v3  ;;  %v4610_v38 = vor.u32 %v5075_v28, %v4607_v17  ;;  %2307 = vmatpush.bf16.msrb.mxu2 %v4546_v19  ;;  %v5097_v28 = vld [vmem:[%s8221_s1 + $0x2f4] sm:$0xf]  ;;  %v4759_v17 = vld [vmem:[%s8221_s1 + $0x378] sm:$0xf0] }
 0x1e6   :  { %v1661_v14 = vpop.f32.mrf.mxu2 }
 0x1e7   :  { %v1662_v3 = vadd.f32 %v1661_v14, %v6206_v62  ;;  %v1750_v60 = vpop.f32.mrf.mxu3  ;;  %2396 = vmatpush.bf16.msrb.mxu3 %v4610_v38 }
 0x1e8   :  { %v1841_v48 = vpop.f32.mrf.mxu0 }
 0x1e9   :  { %v1751_v29 = vadd.f32 %v1750_v60, %v1662_v3  ;;  %v4061_v3 = vld [vmem:[%s8222_s0 + $0x168] sm:$0xf]  ;;  %v4939_v60 = vld [vmem:[%s8222_s0 + $0x180] sm:$0xf0] }
 0x1ea   :  { %v1930_v34 = vpop.f32.mrf.mxu1  ;;  %v7010_v8 = vor.u32 %v4939_v60, %v4061_v3 }
 0x1eb   :  { %v1840_v13 = vadd.f32 %v1839_v0, %v1751_v29 }
 0x1ed   :  { %v6977_v43 = vadd.f32 %v1928_v2, %v1840_v13  ;;  %v8392_v2 = vld [vmem:[#allocation40_spill] sm:$0xff] }
 0x1ee   :  { %v1663_v41 = vpop.f32.mrf.mxu2 }
 0x1ef   :  { %v1664_v62 = vadd.f32 %v1663_v41, %v6242_v58  ;;  %v1752_v33 = vpop.f32.mrf.mxu3 }
 0x1f0   :  { %v1844_v59 = vpop.f32.mrf.mxu0 }
 0x1f1   :  { %v1753_v27 = vadd.f32 %v1752_v33, %v1664_v62 }
 0x1f2   :  { %v1933_v32 = vpop.f32.mrf.mxu1 }
 0x1f3   :  { %v1842_v7 = vadd.f32 %v1841_v48, %v1753_v27  ;;  %1981 = vmatmul.bf16.gmra.mxu2 %v6980_v42  ;;  %2159 = vmatmul.bf16.gmra.mxu0 %v5759_v57  ;;  %v4695_v57 = vld [vmem:[%s8221_s1 + $0x2f8] sm:$0xf0] }
 0x1f4   :  { %2070 = vmatmul.bf16.gmra.mxu3 %v5755_v55  ;;  %v4698_v55 = vor.u32 %v5097_v28, %v4695_v57  ;;  %v8394_v27 = vld [vmem:[#allocation17_spill] sm:$0xff]  ;;  %v8397_v57 = vld [vmem:[#allocation46_spill] sm:$0xff] }
 0x1f5   :  { %v6985_v0 = vadd.f32 %v1930_v34, %v1842_v7  ;;  %2248 = vmatmul.bf16.gmra.mxu1 %v6236_v20  ;;  %v5113_v20 = vld [vmem:[%s8221_s1 + $0x374] sm:$0xf]  ;;  %v8395_v7 = vld [vmem:[#allocation15_spill] sm:$0xff]  ;;  %v4599_v28 = vld [vmem:[%s8221_s1 + $0x238] sm:$0xf0] }
 0x1f6   :  { %v1666_v31 = vpop.f32.mrf.mxu2  ;;  %2482 = vmatpush.bf16.msrb.mxu0 %v4698_v55  ;;  %v4762_v38 = vor.u32 %v5113_v20, %v4759_v17  ;;  %v8393_v34 = vld [vmem:[#allocation44_spill] sm:$0xff] }
 0x1f7   :  { %v1667_v58 = vadd.f32 %v1666_v31, %v8392_v2  ;;  %v1755_v36 = vpop.f32.mrf.mxu3  ;;  %v5057_v2 = vld [vmem:[%s8221_s1 + $0x1b4] sm:$0xf] }
 0x1f8   :  { %v1846_v53 = vpop.f32.mrf.mxu0  ;;  %2571 = vmatpush.bf16.msrb.mxu1 %v4762_v38  ;;  %v4089_v38 = vld [vmem:[%s8222_s0 + $0x1a0] sm:$0xf] }
 0x1f9   :  { %v1756_v11 = vadd.f32 %v1755_v36, %v1667_v58  ;;  %v4535_v58 = vld [vmem:[%s8221_s1 + $0x1b8] sm:$0xf0]  ;;  %v5073_v36 = vld [vmem:[%s8221_s1 + $0x234] sm:$0xf] }
 0x1fa   :  { %v1935_v14 = vpop.f32.mrf.mxu1 }
 0x1fb   :  { %v1845_v19 = vadd.f32 %v1844_v59, %v1756_v11  ;;  %v4538_v11 = vor.u32 %v5057_v2, %v4535_v58  ;;  %v8399_v58 = vld [vmem:[#allocation21_spill] sm:$0xff] }
 0x1fd   :  { %v7007_v48 = vadd.f32 %v1933_v32, %v1845_v19  ;;  %v8396_v32 = vld [vmem:[#allocation41_spill] sm:$0xff]  ;;  %v4602_v19 = vor.u32 %v5073_v36, %v4599_v28  ;;  %2308 = vmatpush.bf16.msrb.mxu2 %v4538_v11  ;;  %v8400_v36 = vld [vmem:[#allocation19_spill] sm:$0xff]  ;;  %v8402_v28 = vld [vmem:[#allocation52_spill] sm:$0xff] }
 0x1fe   :  { %v1668_v29 = vpop.f32.mrf.mxu2 }
 0x1ff   :  { %v1669_v13 = vadd.f32 %v1668_v29, %v8393_v34  ;;  %v1757_v5 = vpop.f32.mrf.mxu3  ;;  %2397 = vmatpush.bf16.msrb.mxu3 %v4602_v19  ;;  %v4946_v29 = vld [vmem:[%s8222_s0 + $0x1b8] sm:$0xf0] }
 0x200   :  { %v1849_v41 = vpop.f32.mrf.mxu0 }
 0x201   :  { %v1758_v62 = vadd.f32 %v1757_v5, %v1669_v13  ;;  %v8398_v5 = vld [vmem:[#allocation50_spill] sm:$0xff] }
 0x202   :  { %v1938_v33 = vpop.f32.mrf.mxu1 }
 0x203   :  { %v1847_v59 = vadd.f32 %v1846_v53, %v1758_v62  ;;  %1986 = vmatmul.bf16.gmra.mxu2 %v7010_v8  ;;  %2164 = vmatmul.bf16.gmra.mxu0 %v8394_v27  ;;  %v7040_v27 = vor.u32 %v4946_v29, %v4089_v38  ;;  %v4751_v29 = vld [vmem:[%s8221_s1 + $0x368] sm:$0xf0] }
 0x204   :  { %2075 = vmatmul.bf16.gmra.mxu3 %v8395_v7 }
 0x205   :  { %v7015_v31 = vadd.f32 %v1935_v14, %v1847_v59  ;;  %2253 = vmatmul.bf16.gmra.mxu1 %v8396_v32 }
 0x206   :  { %v1671_v53 = vpop.f32.mrf.mxu2 }
 0x207   :  { %v1672_v14 = vadd.f32 %v1671_v53, %v8397_v57  ;;  %v1760_v55 = vpop.f32.mrf.mxu3 }
 0x208   :  { %v1851_v20 = vpop.f32.mrf.mxu0 }
 0x209   :  { %v1761_v17 = vadd.f32 %v1760_v55, %v1672_v14 }
 0x20a   :  { %v1940_v3 = vpop.f32.mrf.mxu1 }
 0x20b   :  { %v1850_v60 = vadd.f32 %v1849_v41, %v1761_v17  ;;  %v4687_v17 = vld [vmem:[%s8221_s1 + $0x2e8] sm:$0xf0] }
 0x20d   :  { %v7037_v34 = vadd.f32 %v1938_v33, %v1850_v60  ;;  %v8401_v33 = vld [vmem:[#allocation47_spill] sm:$0xff] }
 0x20e   :  { %v1673_v13 = vpop.f32.mrf.mxu2 }
 0x20f   :  { %v1674_v62 = vadd.f32 %v1673_v13, %v8398_v5  ;;  %v1762_v59 = vpop.f32.mrf.mxu3 }
 0x210   :  { %v1854_v7 = vpop.f32.mrf.mxu0 }
 0x211   :  { %v1763_v32 = vadd.f32 %v1762_v59, %v1674_v62  ;;  %v4117_v62 = vld [vmem:[%s8222_s0 + $0x1d8] sm:$0xf]  ;;  %v4953_v59 = vld [vmem:[%s8222_s0 + $0x1f0] sm:$0xf0] }
 0x212   :  { %v1943_v2 = vpop.f32.mrf.mxu1 }
 0x213   :  { %v1852_v41 = vadd.f32 %v1851_v20, %v1763_v32  ;;  %1991 = vmatmul.bf16.gmra.mxu2 %v7040_v27  ;;  %2169 = vmatmul.bf16.gmra.mxu0 %v8399_v58  ;;  %v5095_v20 = vld [vmem:[%s8221_s1 + $0x2e4] sm:$0xf]  ;;  %v8403_v58 = vld [vmem:[#allocation56_spill] sm:$0xff] }
 0x214   :  { %2080 = vmatmul.bf16.gmra.mxu3 %v8400_v36  ;;  %v4690_v38 = vor.u32 %v5095_v20, %v4687_v17  ;;  %v8405_v17 = vld [vmem:[#allocation2_spill] sm:$0xff] }
 0x215   :  { %v7045_v53 = vadd.f32 %v1940_v3, %v1852_v41  ;;  %2258 = vmatmul.bf16.gmra.mxu1 %v8401_v33  ;;  %v5111_v3 = vld [vmem:[%s8221_s1 + $0x364] sm:$0xf] }
 0x216   :  { %v1676_v11 = vpop.f32.mrf.mxu2  ;;  %v4754_v5 = vor.u32 %v5111_v3, %v4751_v29  ;;  %2483 = vmatpush.bf16.msrb.mxu0 %v4690_v38  ;;  %v5055_v38 = vld [vmem:[%s8221_s1 + $0x1a4] sm:$0xf] }
 0x217   :  { %v1677_v57 = vadd.f32 %v1676_v11, %v8402_v28  ;;  %v1765_v14 = vpop.f32.mrf.mxu3  ;;  %v7070_v11 = vor.u32 %v4953_v59, %v4117_v62  ;;  %v5071_v3 = vld [vmem:[%s8221_s1 + $0x224] sm:$0xf]  ;;  %v4591_v62 = vld [vmem:[%s8221_s1 + $0x228] sm:$0xf0] }
 0x218   :  { %v1856_v55 = vpop.f32.mrf.mxu0  ;;  %2572 = vmatpush.bf16.msrb.mxu1 %v4754_v5 }
 0x219   :  { %v1766_v19 = vadd.f32 %v1765_v14, %v1677_v57 }
 0x21a   :  { %v1945_v60 = vpop.f32.mrf.mxu1 }
 0x21b   :  { %v1855_v13 = vadd.f32 %v1854_v7, %v1766_v19  ;;  %v5294_v19 = vld [vmem:[%s8223_s2] sm:$0x3] }
 0x21c   :  { %v7076_v20 = vperm.slane %v5294_v19, 1 }
 0x21d   :  { %v7067_v32 = vadd.f32 %v1943_v2, %v1855_v13  ;;  %v8404_v2 = vld [vmem:[#allocation3_spill] sm:$0xff]  ;;  %v8406_v13 = vld [vmem:[#allocation53_spill] sm:$0xff] }
 0x21e   :  { %v1678_v41 = vpop.f32.mrf.mxu2 }
 0x21f   :  { %v1679_v36 = vadd.f32 %v1678_v41, %v8403_v58  ;;  %v1767_v33 = vpop.f32.mrf.mxu3  ;;  %v4594_v41 = vor.u32 %v5071_v3, %v4591_v62  ;;  %v8407_v58 = vld [vmem:[#allocation58_spill] sm:$0xff] }
 0x220   :  { %v2135_v7 = vpop.f32.mrf.mxu0 }
 0x221   :  { %v1768_v28 = vadd.f32 %v1767_v33, %v1679_v36  ;;  %2398 = vmatpush.bf16.msrb.mxu3 %v4594_v41 }
 0x222   :  { %v2224_v57 = vpop.f32.mrf.mxu1 }
 0x223   :  { %v1857_v14 = vadd.f32 %v1856_v55, %v1768_v28  ;;  %1996 = vmatmul.bf16.gmra.mxu2 %v7070_v11  ;;  %2174 = vmatmul.bf16.gmra.mxu0 %v8404_v2  ;;  %v4527_v55 = vld [vmem:[%s8221_s1 + $0x1a8] sm:$0xf0] }
 0x224   :  { %2085 = vmatmul.bf16.gmra.mxu3 %v8405_v17  ;;  %v4530_v5 = vor.u32 %v5055_v38, %v4527_v55  ;;  %v4145_v17 = vld [vmem:[%s8222_s0 + $0x210] sm:$0xf]  ;;  %v4960_v38 = vld [vmem:[%s8222_s0 + $0x228] sm:$0xf0] }
 0x225   :  { %v7089_v29 = vadd.f32 %v1945_v60, %v1857_v14  ;;  %2263 = vmatmul.bf16.gmra.mxu1 %v8406_v13 }
 0x226   :  { %v1957_v59 = vpop.f32.mrf.mxu2  ;;  %2309 = vmatpush.bf16.msrb.mxu2 %v4530_v5  ;;  %v7106_v5 = vor.u32 %v4960_v38, %v4145_v17  ;;  %v8412_v38 = vld [vmem:[#allocation63_spill] sm:$0xff] }
 0x227   :  { %v1958_v36 = vadd.f32 %v1957_v59, %v8407_v58  ;;  %v2046_v33 = vpop.f32.mrf.mxu3 }
 0x228   :  { %v2047_v28 = vadd.f32 %v2046_v33, %v7076_v20  ;;  %v2137_v19 = vpop.f32.mrf.mxu0 }
 0x229   :  { %v2660_v59 = vmax.f32 %v1958_v36, 0.0 }
 0x22a   :  { %v2136_v2 = vadd.f32 %v2135_v7, %v2047_v28  ;;  %v2226_v60 = vpop.f32.mrf.mxu1  ;;  %v8409_v28 = vld [vmem:[#allocation5_spill] sm:$0xff] }
 0x22c   :  { %v7097_v14 = vadd.f32 %v2224_v57, %v2136_v2 }
 0x22e   :  { %v1959_v55 = vpop.f32.mrf.mxu2 }
 0x22f   :  { %v1960_v3 = vadd.f32 %v1959_v55, %v6481_v37  ;;  %v2048_v13 = vpop.f32.mrf.mxu3  ;;  %v8411_v37 = vld [vmem:[#allocation59_spill] sm:$0xff] }
 0x230   :  { %v2049_v62 = vadd.f32 %v2048_v13, %v7076_v20  ;;  %v2140_v7 = vpop.f32.mrf.mxu0 }
 0x231   :  { %v2662_v57 = vmax.f32 %v1960_v3, 0.0  ;;  %v5093_v3 = vld [vmem:[%s8221_s1 + $0x2d4] sm:$0xf] }
 0x232   :  { %v2138_v41 = vadd.f32 %v2137_v19, %v2049_v62  ;;  %v2229_v58 = vpop.f32.mrf.mxu1 }
 0x233   :  { %v7109_v33 = vpack.c.bf16 %v2662_v57, %v2660_v59  ;;  %2001 = vmatmul.bf16.gmra.mxu2 %v7106_v5  ;;  %2179 = vmatmul.bf16.gmra.mxu0 %v8409_v28  ;;  %v5109_v57 = vld [vmem:[%s8221_s1 + $0x354] sm:$0xf] }
 0x234   :  { %v7113_v2 = vadd.f32 %v2226_v60, %v2138_v41  ;;  %2090 = vmatmul.bf16.gmra.mxu3 %v8410_v35  ;;  %v4679_v60 = vld [vmem:[%s8221_s1 + $0x2d8] sm:$0xf0] }
 0x235   :  { %8408 = vst [vmem:[#allocation40_spill] sm:$0xff] %v7109_v33  ;;  %2268 = vmatmul.bf16.gmra.mxu1 %v8411_v37  ;;  %v4682_v35 = vor.u32 %v5093_v3, %v4679_v60  ;;  %v4743_v41 = vld [vmem:[%s8221_s1 + $0x358] sm:$0xf0] }
 0x236   :  { %v1962_v17 = vpop.f32.mrf.mxu2  ;;  %v4746_v28 = vor.u32 %v5109_v57, %v4743_v41 }
 0x237   :  { %v1963_v55 = vadd.f32 %v1962_v17, %v8412_v38  ;;  %v2051_v13 = vpop.f32.mrf.mxu3  ;;  %v4173_v17 = vld [vmem:[%s8222_s0 + $0x248] sm:$0xf]  ;;  %2484 = vmatpush.bf16.msrb.mxu0 %v4682_v35 }
 0x238   :  { %v2052_v36 = vadd.f32 %v2051_v13, %v7076_v20  ;;  %v2142_v19 = vpop.f32.mrf.mxu0  ;;  %2573 = vmatpush.bf16.msrb.mxu1 %v4746_v28  ;;  %v8415_v28 = vld [vmem:[#allocation6_spill] sm:$0xff] }
 0x23a   :  { %v2141_v62 = vadd.f32 %v2140_v7, %v2052_v36  ;;  %v2231_v59 = vpop.f32.mrf.mxu1  ;;  %v4967_v7 = vld [vmem:[%s8222_s0 + $0x260] sm:$0xf0] }
 0x23b   :  { %v7140_v3 = vor.u32 %v4967_v7, %v4173_v17 }
 0x23c   :  { %v7131_v37 = vadd.f32 %v2229_v58, %v2141_v62  ;;  %v2664_v62 = vmax.f32 %v1963_v55, 0.0  ;;  %v4519_v55 = vld [vmem:[%s8221_s1 + $0x198] sm:$0xf0] }
 0x23e   :  { %v1964_v38 = vpop.f32.mrf.mxu2 }
 0x23f   :  { %v1965_v13 = vadd.f32 %v1964_v38, %v6535_v49  ;;  %v2053_v36 = vpop.f32.mrf.mxu3  ;;  %v5053_v49 = vld [vmem:[%s8221_s1 + $0x194] sm:$0xf] }
 0x240   :  { %v2054_v60 = vadd.f32 %v2053_v36, %v7076_v20  ;;  %v2145_v58 = vpop.f32.mrf.mxu0 }
 0x241   :  { %v2666_v57 = vmax.f32 %v1965_v13, 0.0 }
 0x242   :  { %v2143_v41 = vadd.f32 %v2142_v19, %v2054_v60  ;;  %v2234_v33 = vpop.f32.mrf.mxu1  ;;  %v5069_v19 = vld [vmem:[%s8221_s1 + $0x214] sm:$0xf] }
 0x243   :  { %2006 = vmatmul.bf16.gmra.mxu2 %v7140_v3  ;;  %2184 = vmatmul.bf16.gmra.mxu0 %v8413_v40  ;;  %v7145_v9 = vpack.c.bf16 %v2666_v57, %v2664_v62  ;;  %v4522_v40 = vor.u32 %v5053_v49, %v4519_v55 }
 0x244   :  { %v7147_v35 = vadd.f32 %v2231_v59, %v2143_v41  ;;  %2095 = vmatmul.bf16.gmra.mxu3 %v8415_v28  ;;  %v4583_v59 = vld [vmem:[%s8221_s1 + $0x218] sm:$0xf0] }
 0x245   :  { %8414 = vst [vmem:[#allocation44_spill] sm:$0xff] %v7145_v9  ;;  %2273 = vmatmul.bf16.gmra.mxu1 %v6524_v26  ;;  %v4586_v7 = vor.u32 %v5069_v19, %v4583_v59  ;;  %2310 = vmatpush.bf16.msrb.mxu2 %v4522_v40  ;;  %v4201_v26 = vld [vmem:[%s8222_s0 + $0x280] sm:$0xf]  ;;  %v4974_v28 = vld [vmem:[%s8222_s0 + $0x298] sm:$0xf0]  ;;  %v8418_v9 = vld [vmem:[#allocation8_spill] sm:$0xff] }
 0x246   :  { %v1967_v17 = vpop.f32.mrf.mxu2  ;;  %v7174_v19 = vor.u32 %v4974_v28, %v4201_v26  ;;  %v8420_v28 = vld [vmem:[#allocation71_spill] sm:$0xff] }
 0x247   :  { %v1968_v38 = vadd.f32 %v1967_v17, %v6563_v16  ;;  %v2056_v13 = vpop.f32.mrf.mxu3  ;;  %2399 = vmatpush.bf16.msrb.mxu3 %v4586_v7 }
 0x248   :  { %v2057_v36 = vadd.f32 %v2056_v13, %v7076_v20  ;;  %v2147_v60 = vpop.f32.mrf.mxu0  ;;  %v8416_v13 = vld [vmem:[#allocation9_spill] sm:$0xff] }
 0x249   :  { %v2668_v59 = vmax.f32 %v1968_v38, 0.0 }
 0x24a   :  { %v2146_v62 = vadd.f32 %v2145_v58, %v2057_v36  ;;  %v2236_v57 = vpop.f32.mrf.mxu1 }
 0x24c   :  { %v7165_v41 = vadd.f32 %v2234_v33, %v2146_v62 }
 0x24e   :  { %v1969_v49 = vpop.f32.mrf.mxu2 }
 0x24f   :  { %v1970_v16 = vadd.f32 %v1969_v49, %v6589_v47  ;;  %v2058_v55 = vpop.f32.mrf.mxu3  ;;  %v8419_v47 = vld [vmem:[#allocation67_spill] sm:$0xff] }
 0x250   :  { %v2059_v40 = vadd.f32 %v2058_v55, %v7076_v20  ;;  %v2150_v58 = vpop.f32.mrf.mxu0 }
 0x251   :  { %v2670_v33 = vmax.f32 %v1970_v16, 0.0  ;;  %v5091_v16 = vld [vmem:[%s8221_s1 + $0x2c4] sm:$0xf] }
 0x252   :  { %v2148_v17 = vadd.f32 %v2147_v60, %v2059_v40  ;;  %v2239_v7 = vpop.f32.mrf.mxu1 }
 0x253   :  { %2011 = vmatmul.bf16.gmra.mxu2 %v7174_v19  ;;  %2189 = vmatmul.bf16.gmra.mxu0 %v8416_v13  ;;  %v7179_v36 = vpack.c.bf16 %v2670_v33, %v2668_v59  ;;  %v5107_v33 = vld [vmem:[%s8221_s1 + $0x344] sm:$0xf] }
 0x254   :  { %v7181_v62 = vadd.f32 %v2236_v57, %v2148_v17  ;;  %2100 = vmatmul.bf16.gmra.mxu3 %v8418_v9  ;;  %v4671_v57 = vld [vmem:[%s8221_s1 + $0x2c8] sm:$0xf0] }
 0x255   :  { %8417 = vst [vmem:[#allocation17_spill] sm:$0xff] %v7179_v36  ;;  %2278 = vmatmul.bf16.gmra.mxu1 %v8419_v47  ;;  %v4674_v9 = vor.u32 %v5091_v16, %v4671_v57  ;;  %v4735_v17 = vld [vmem:[%s8221_s1 + $0x348] sm:$0xf0] }
 0x256   :  { %v1972_v26 = vpop.f32.mrf.mxu2  ;;  %v4738_v13 = vor.u32 %v5107_v33, %v4735_v17 }
 0x257   :  { %v1973_v49 = vadd.f32 %v1972_v26, %v8420_v28  ;;  %v2061_v55 = vpop.f32.mrf.mxu3  ;;  %v4229_v26 = vld [vmem:[%s8222_s0 + $0x2b8] sm:$0xf]  ;;  %2485 = vmatpush.bf16.msrb.mxu0 %v4674_v9 }
 0x258   :  { %v2062_v38 = vadd.f32 %v2061_v55, %v7076_v20  ;;  %v2152_v60 = vpop.f32.mrf.mxu0  ;;  %2574 = vmatpush.bf16.msrb.mxu1 %v4738_v13  ;;  %v8424_v13 = vld [vmem:[#allocation10_spill] sm:$0xff] }
 0x25a   :  { %v2151_v40 = vadd.f32 %v2150_v58, %v2062_v38  ;;  %v2241_v59 = vpop.f32.mrf.mxu1  ;;  %v4981_v58 = vld [vmem:[%s8222_s0 + $0x2d0] sm:$0xf0] }
 0x25b   :  { %v7208_v16 = vor.u32 %v4981_v58, %v4229_v26 }
 0x25c   :  { %v7199_v47 = vadd.f32 %v2239_v7, %v2151_v40  ;;  %v2672_v40 = vmax.f32 %v1973_v49, 0.0  ;;  %v4511_v49 = vld [vmem:[%s8221_s1 + $0x188] sm:$0xf0] }
 0x25d   :  { %8421 = vst [vmem:[#allocation15_spill] sm:$0xff] %v7208_v16 }
 0x25e   :  { %v1974_v28 = vpop.f32.mrf.mxu2 }
 0x25f   :  { %v1975_v55 = vadd.f32 %v1974_v28, %v6643_v6  ;;  %v2063_v38 = vpop.f32.mrf.mxu3  ;;  %v5051_v6 = vld [vmem:[%s8221_s1 + $0x184] sm:$0xf]  ;;  %v8425_v28 = vld [vmem:[#allocation75_spill] sm:$0xff] }
 0x260   :  { %v2064_v57 = vadd.f32 %v2063_v38, %v7076_v20  ;;  %v2155_v7 = vpop.f32.mrf.mxu0 }
 0x261   :  { %v2674_v33 = vmax.f32 %v1975_v55, 0.0 }
 0x262   :  { %v2153_v17 = vadd.f32 %v2152_v60, %v2064_v57  ;;  %v2244_v36 = vpop.f32.mrf.mxu1  ;;  %v5067_v60 = vld [vmem:[%s8221_s1 + $0x204] sm:$0xf] }
 0x263   :  { %2016 = vmatmul.bf16.gmra.mxu2 %v7208_v16  ;;  %2194 = vmatmul.bf16.gmra.mxu0 %v8422_v39  ;;  %v7213_v4 = vpack.c.bf16 %v2674_v33, %v2672_v40  ;;  %v4514_v39 = vor.u32 %v5051_v6, %v4511_v49  ;;  %v4988_v6 = vld [vmem:[%s8222_s0 + $0x308] sm:$0xf0]  ;;  %v8430_v16 = vld [vmem:[#allocation12_spill] sm:$0xff] }
 0x264   :  { %v7215_v9 = vadd.f32 %v2241_v59, %v2153_v17  ;;  %2105 = vmatmul.bf16.gmra.mxu3 %v8424_v13  ;;  %v4575_v59 = vld [vmem:[%s8221_s1 + $0x208] sm:$0xf0] }
 0x265   :  { %8423 = vst [vmem:[#allocation41_spill] sm:$0xff] %v7213_v4  ;;  %2283 = vmatmul.bf16.gmra.mxu1 %v6632_v24  ;;  %v4578_v58 = vor.u32 %v5067_v60, %v4575_v59  ;;  %2311 = vmatpush.bf16.msrb.mxu2 %v4514_v39  ;;  %v4257_v24 = vld [vmem:[%s8222_s0 + $0x2f0] sm:$0xf] }
 0x266   :  { %v1977_v26 = vpop.f32.mrf.mxu2  ;;  %v8427_v60 = vld [vmem:[#allocation80_spill] sm:$0xff] }
 0x267   :  { %v1978_v55 = vadd.f32 %v1977_v26, %v8425_v28  ;;  %v2066_v38 = vpop.f32.mrf.mxu3  ;;  %2400 = vmatpush.bf16.msrb.mxu3 %v4578_v58  ;;  %v7242_v26 = vor.u32 %v4988_v6, %v4257_v24  ;;  %v8432_v6 = vld [vmem:[#allocation81_spill] sm:$0xff] }
 0x268   :  { %v2067_v57 = vadd.f32 %v2066_v38, %v7076_v20  ;;  %v2157_v40 = vpop.f32.mrf.mxu0 }
 0x269   :  { %v2676_v28 = vmax.f32 %v1978_v55, 0.0 }
 0x26a   :  { %v2156_v33 = vadd.f32 %v2155_v7, %v2067_v57  ;;  %v2246_v17 = vpop.f32.mrf.mxu1 }
 0x26c   :  { %v7233_v13 = vadd.f32 %v2244_v36, %v2156_v33  ;;  %v8428_v33 = vld [vmem:[#allocation13_spill] sm:$0xff] }
 0x26e   :  { %8426 = vst [vmem:[#allocation46_spill] sm:$0xff] %v7233_v13  ;;  %v1979_v49 = vpop.f32.mrf.mxu2 }
 0x26f   :  { %v1980_v59 = vadd.f32 %v1979_v49, %v8427_v60  ;;  %v2068_v39 = vpop.f32.mrf.mxu3  ;;  %v8431_v49 = vld [vmem:[#allocation76_spill] sm:$0xff] }
 0x270   :  { %v2069_v58 = vadd.f32 %v2068_v39, %v7076_v20  ;;  %v2160_v7 = vpop.f32.mrf.mxu0 }
 0x271   :  { %v2678_v36 = vmax.f32 %v1980_v59, 0.0  ;;  %v5089_v59 = vld [vmem:[%s8221_s1 + $0x2b4] sm:$0xf] }
 0x272   :  { %v2158_v38 = vadd.f32 %v2157_v40, %v2069_v58  ;;  %v2249_v57 = vpop.f32.mrf.mxu1 }
 0x273   :  { %2021 = vmatmul.bf16.gmra.mxu2 %v7242_v26  ;;  %2199 = vmatmul.bf16.gmra.mxu0 %v8428_v33  ;;  %v7247_v4 = vpack.c.bf16 %v2678_v36, %v2676_v28  ;;  %v5105_v36 = vld [vmem:[%s8221_s1 + $0x334] sm:$0xf] }
 0x274   :  { %v7249_v13 = vadd.f32 %v2246_v17, %v2158_v38  ;;  %2110 = vmatmul.bf16.gmra.mxu3 %v8430_v16  ;;  %v4663_v17 = vld [vmem:[%s8221_s1 + $0x2b8] sm:$0xf0] }
 0x275   :  { %8429 = vst [vmem:[#allocation50_spill] sm:$0xff] %v7247_v4  ;;  %2288 = vmatmul.bf16.gmra.mxu1 %v8431_v49  ;;  %v4666_v16 = vor.u32 %v5089_v59, %v4663_v17  ;;  %v4727_v38 = vld [vmem:[%s8221_s1 + $0x338] sm:$0xf0] }
 0x276   :  { %v1982_v24 = vpop.f32.mrf.mxu2  ;;  %v4730_v33 = vor.u32 %v5105_v36, %v4727_v38  ;;  %v4655_v36 = vld [vmem:[%s8221_s1 + $0x2a8] sm:$0xf0] }
 0x277   :  { %v1983_v60 = vadd.f32 %v1982_v24, %v8432_v6  ;;  %v2071_v39 = vpop.f32.mrf.mxu3  ;;  %v4285_v24 = vld [vmem:[%s8222_s0 + $0x328] sm:$0xf]  ;;  %2486 = vmatpush.bf16.msrb.mxu0 %v4666_v16 }
 0x278   :  { %v2072_v55 = vadd.f32 %v2071_v39, %v7076_v20  ;;  %v2162_v40 = vpop.f32.mrf.mxu0  ;;  %2575 = vmatpush.bf16.msrb.mxu1 %v4730_v33 }
 0x279   :  { %v2680_v38 = vmax.f32 %v1983_v60, 0.0 }
 0x27a   :  { %v2161_v58 = vadd.f32 %v2160_v7, %v2072_v55  ;;  %v2251_v28 = vpop.f32.mrf.mxu1  ;;  %v4995_v7 = vld [vmem:[%s8222_s0 + $0x340] sm:$0xf0] }
 0x27b   :  { %v7276_v59 = vor.u32 %v4995_v7, %v4285_v24  ;;  %v4719_v24 = vld [vmem:[%s8221_s1 + $0x328] sm:$0xf0]  ;;  %v8434_v7 = vld [vmem:[#allocation16_spill] sm:$0xff] }
 0x27c   :  { %v7267_v49 = vadd.f32 %v2249_v57, %v2161_v58  ;;  %v5087_v58 = vld [vmem:[%s8221_s1 + $0x2a4] sm:$0xf] }
 0x27d   :  { %v4658_v33 = vor.u32 %v5087_v58, %v4655_v36  ;;  %v5085_v58 = vld [vmem:[%s8221_s1 + $0x294] sm:$0xf] }
 0x27e   :  { %8433 = vst [vmem:[#allocation21_spill] sm:$0xff] %v7267_v49  ;;  %v1984_v6 = vpop.f32.mrf.mxu2 }
 0x27f   :  { %v1985_v39 = vadd.f32 %v1984_v6, %v6775_v18  ;;  %v2073_v55 = vpop.f32.mrf.mxu3  ;;  %v5103_v18 = vld [vmem:[%s8221_s1 + $0x324] sm:$0xf]  ;;  %2487 = vmatpush.bf16.msrb.mxu0 %v4658_v33 }
 0x280   :  { %v2074_v17 = vadd.f32 %v2073_v55, %v7076_v20  ;;  %v2165_v57 = vpop.f32.mrf.mxu0  ;;  %v4722_v6 = vor.u32 %v5103_v18, %v4719_v24 }
 0x281   :  { %v2682_v16 = vmax.f32 %v1985_v39, 0.0  ;;  %v8436_v39 = vld [vmem:[#allocation14_spill] sm:$0xff] }
 0x282   :  { %v2163_v4 = vadd.f32 %v2162_v40, %v2074_v17  ;;  %v2254_v49 = vpop.f32.mrf.mxu1  ;;  %v5122_v40 = vld [vmem:[%s8224_s3 + $0x38] sm:$0xff]  ;;  %2576 = vmatpush.bf16.msrb.mxu1 %v4722_v6  ;;  %v5083_v6 = vld [vmem:[%s8221_s1 + $0x284] sm:$0xf] }
 0x283   :  { %2026 = vmatmul.bf16.gmra.mxu2 %v7276_v59  ;;  %2204 = vmatmul.bf16.gmra.mxu0 %v8434_v7  ;;  %v7293_v55 = vpack.c.bf16 %v2682_v16, %v2680_v38  ;;  %v5130_v17 = vld [vmem:[%s8224_s3 + $0x78] sm:$0xff]  ;;  %v5101_v38 = vld [vmem:[%s8221_s1 + $0x314] sm:$0xf] }
 0x284   :  { %v7295_v60 = vadd.f32 %v2251_v28, %v2163_v4  ;;  %2115 = vmatmul.bf16.gmra.mxu3 %v8436_v39  ;;  %v4647_v4 = vld [vmem:[%s8221_s1 + $0x298] sm:$0xf0]  ;;  %2888 = vmatpush.bf16.msra.mxu2 %v5122_v40  ;;  %v4639_v39 = vld [vmem:[%s8221_s1 + $0x288] sm:$0xf0] }
 0x285   :  { %8435 = vst [vmem:[#allocation19_spill] sm:$0xff] %v7293_v55  ;;  %2293 = vmatmul.bf16.gmra.mxu1 %v6746_v63  ;;  %v4650_v36 = vor.u32 %v5085_v58, %v4647_v4  ;;  %v4711_v16 = vld [vmem:[%s8221_s1 + $0x318] sm:$0xf0]  ;;  %2977 = vmatpush.bf16.msra.mxu3 %v5130_v17  ;;  %v4642_v40 = vor.u32 %v5083_v6, %v4639_v39  ;;  %v4703_v17 = vld [vmem:[%s8221_s1 + $0x308] sm:$0xf0]  ;;  %v8438_v55 = vld [vmem:[#allocation20_spill] sm:$0xff] }
 0x286   :  { %v1987_v28 = vpop.f32.mrf.mxu2  ;;  %v4714_v63 = vor.u32 %v5101_v38, %v4711_v16  ;;  %v4313_v38 = vld [vmem:[%s8222_s0 + $0x360] sm:$0xf] }
 0x287   :  { %v1988_v33 = vadd.f32 %v1987_v28, %v6815_v56  ;;  %v2076_v18 = vpop.f32.mrf.mxu3  ;;  %2488 = vmatpush.bf16.msrb.mxu0 %v4650_v36  ;;  %v5099_v56 = vld [vmem:[%s8221_s1 + $0x304] sm:$0xf] }
 0x288   :  { %v2077_v24 = vadd.f32 %v2076_v18, %v7076_v20  ;;  %v2167_v7 = vpop.f32.mrf.mxu0  ;;  %2577 = vmatpush.bf16.msrb.mxu1 %v4714_v63  ;;  %v4706_v28 = vor.u32 %v5099_v56, %v4703_v17 }
 0x289   :  { %v2684_v39 = vmax.f32 %v1988_v33, 0.0 }
 0x28a   :  { %v2166_v58 = vadd.f32 %v2165_v57, %v2077_v24  ;;  %v2256_v4 = vpop.f32.mrf.mxu1  ;;  %v5002_v57 = vld [vmem:[%s8222_s0 + $0x378] sm:$0xf0] }
 0x28b   :  { %2489 = vmatpush.bf16.msrb.mxu0 %v4642_v40  ;;  %v7340_v24 = vor.u32 %v5002_v57, %v4313_v38 }
 0x28c   :  { %v7331_v36 = vadd.f32 %v2254_v49, %v2166_v58  ;;  %2578 = vmatpush.bf16.msrb.mxu1 %v4706_v28  ;;  %v8440_v28 = vld [vmem:[#allocation18_spill] sm:$0xff] }
 0x28e   :  { %8437 = vst [vmem:[#allocation47_spill] sm:$0xff] %v7331_v36  ;;  %v1989_v16 = vpop.f32.mrf.mxu2 }
 0x28f   :  { %v1990_v18 = vadd.f32 %v1989_v16, %v6841_v30  ;;  %v2078_v63 = vpop.f32.mrf.mxu3 }
 0x290   :  { %v2079_v6 = vadd.f32 %v2078_v63, %v7076_v20  ;;  %v2170_v49 = vpop.f32.mrf.mxu0 }
 0x291   :  { %v2686_v58 = vmax.f32 %v1990_v18, 0.0 }
 0x292   :  { %v2168_v56 = vadd.f32 %v2167_v7, %v2079_v6  ;;  %v2259_v17 = vpop.f32.mrf.mxu1 }
 0x293   :  { %2031 = vmatmul.bf16.gmra.mxu2 %v7340_v24  ;;  %2209 = vmatmul.bf16.gmra.mxu0 %v8438_v55  ;;  %v7345_v36 = vpack.c.bf16 %v2686_v58, %v2684_v39 }
 0x294   :  { %v7347_v40 = vadd.f32 %v2256_v4, %v2168_v56  ;;  %2120 = vmatmul.bf16.gmra.mxu3 %v8440_v28 }
 0x295   :  { %8439 = vst [vmem:[#allocation52_spill] sm:$0xff] %v7345_v36  ;;  %2298 = vmatmul.bf16.gmra.mxu1 %v6830_v50 }
 0x296   :  { %v1992_v30 = vpop.f32.mrf.mxu2 }
 0x297   :  { %v1993_v38 = vadd.f32 %v1992_v30, %v6851_v15  ;;  %v2081_v57 = vpop.f32.mrf.mxu3  ;;  %v8441_v15 = vld [vmem:[#allocation23_spill] sm:$0xff]  ;;  %v8442_v30 = vld [vmem:[#allocation24_spill] sm:$0xff] }
 0x298   :  { %v2082_v33 = vadd.f32 %v2081_v57, %v7076_v20  ;;  %v2172_v7 = vpop.f32.mrf.mxu0 }
 0x299   :  { %v2688_v56 = vmax.f32 %v1993_v38, 0.0  ;;  %v5129_v38 = vld [vmem:[%s8224_s3 + $0x70] sm:$0xff] }
 0x29a   :  { %v2171_v16 = vadd.f32 %v2170_v49, %v2082_v33  ;;  %v2261_v18 = vpop.f32.mrf.mxu1  ;;  %2978 = vmatpush.bf16.msra.mxu3 %v5129_v38 }
 0x29c   :  { %v7353_v63 = vadd.f32 %v2259_v17, %v2171_v16  ;;  %v8443_v17 = vld [vmem:[#allocation22_spill] sm:$0xff] }
 0x29e   :  { %v1994_v55 = vpop.f32.mrf.mxu2 }
 0x29f   :  { %v1995_v6 = vadd.f32 %v1994_v55, %v6859_v54  ;;  %v2083_v4 = vpop.f32.mrf.mxu3  ;;  %v5121_v54 = vld [vmem:[%s8224_s3 + $0x30] sm:$0xff] }
 0x2a0   :  { %v2084_v39 = vadd.f32 %v2083_v4, %v7076_v20  ;;  %v2175_v58 = vpop.f32.mrf.mxu0  ;;  %2889 = vmatpush.bf16.msra.mxu2 %v5121_v54 }
 0x2a1   :  { %v2690_v50 = vmax.f32 %v1995_v6, 0.0 }
 0x2a2   :  { %v2173_v28 = vadd.f32 %v2172_v7, %v2084_v39  ;;  %v2264_v36 = vpop.f32.mrf.mxu1 }
 0x2a3   :  { %2312 = vmatmul.bf16.vlgmr.msrb.gmra.mxu2 %v8441_v15  ;;  %2490 = vmatmul.bf16.vlgmr.msrb.gmra.mxu0 %v8442_v30  ;;  %v7359_v57 = vpack.c.bf16 %v2690_v50, %v2688_v56 }
 0x2a4   :  { %v7361_v49 = vadd.f32 %v2261_v18, %v2173_v28  ;;  %2401 = vmatmul.bf16.vlgmr.msrb.gmra.mxu3 %v8443_v17 }
 0x2a5   :  { %2579 = vmatmul.bf16.vlgmr.msrb.gmra.mxu1 %v6854_v44 }
 0x2a6   :  { %v1997_v33 = vpop.f32.mrf.mxu2 }
 0x2a7   :  { %v1998_v7 = vadd.f32 %v1997_v33, %v6881_v51  ;;  %v2086_v16 = vpop.f32.mrf.mxu3  ;;  %v8444_v51 = vld [vmem:[#allocation26_spill] sm:$0xff]  ;;  %v8445_v33 = vld [vmem:[#allocation27_spill] sm:$0xff] }
 0x2a8   :  { %v2087_v18 = vadd.f32 %v2086_v16, %v7076_v20  ;;  %v2177_v55 = vpop.f32.mrf.mxu0 }
 0x2a9   :  { %v2692_v30 = vmax.f32 %v1998_v7, 0.0 }
 0x2aa   :  { %v2176_v6 = vadd.f32 %v2175_v58, %v2087_v18  ;;  %v2266_v4 = vpop.f32.mrf.mxu1 }
 0x2ac   :  { %v7373_v39 = vadd.f32 %v2264_v36, %v2176_v6  ;;  %v8446_v36 = vld [vmem:[#allocation25_spill] sm:$0xff] }
 0x2ae   :  { %v1999_v56 = vpop.f32.mrf.mxu2 }
 0x2af   :  { %v2000_v50 = vadd.f32 %v1999_v56, %v6889_v1  ;;  %v2088_v28 = vpop.f32.mrf.mxu3 }
 0x2b0   :  { %v2089_v15 = vadd.f32 %v2088_v28, %v7076_v20  ;;  %v2180_v44 = vpop.f32.mrf.mxu0 }
 0x2b1   :  { %v2694_v17 = vmax.f32 %v2000_v50, 0.0 }
 0x2b2   :  { %v2178_v54 = vadd.f32 %v2177_v55, %v2089_v15  ;;  %v2269_v38 = vpop.f32.mrf.mxu1 }
 0x2b3   :  { %2317 = vmatmul.bf16.gmra.mxu2 %v8444_v51  ;;  %2495 = vmatmul.bf16.gmra.mxu0 %v8445_v33  ;;  %v7379_v16 = vpack.c.bf16 %v2694_v17, %v2692_v30 }
 0x2b4   :  { %v7381_v58 = vadd.f32 %v2266_v4, %v2178_v54  ;;  %2406 = vmatmul.bf16.gmra.mxu3 %v8446_v36 }
 0x2b5   :  { %2584 = vmatmul.bf16.gmra.mxu1 %v6884_v45 }
 0x2b6   :  { %v2002_v1 = vpop.f32.mrf.mxu2 }
 0x2b7   :  { %v2003_v18 = vadd.f32 %v2002_v1, %v6899_v25  ;;  %v2091_v6 = vpop.f32.mrf.mxu3  ;;  %v8447_v25 = vld [vmem:[#allocation29_spill] sm:$0xff]  ;;  %v8448_v1 = vld [vmem:[#allocation30_spill] sm:$0xff] }
 0x2b8   :  { %v2092_v7 = vadd.f32 %v2091_v6, %v7076_v20  ;;  %v2182_v55 = vpop.f32.mrf.mxu0 }
 0x2b9   :  { %v2696_v51 = vmax.f32 %v2003_v18, 0.0  ;;  %v5128_v18 = vld [vmem:[%s8224_s3 + $0x68] sm:$0xff] }
 0x2ba   :  { %v2181_v56 = vadd.f32 %v2180_v44, %v2092_v7  ;;  %v2271_v50 = vpop.f32.mrf.mxu1  ;;  %2979 = vmatpush.bf16.msra.mxu3 %v5128_v18 }
 0x2bc   :  { %v7387_v28 = vadd.f32 %v2269_v38, %v2181_v56  ;;  %v8449_v38 = vld [vmem:[#allocation28_spill] sm:$0xff] }
 0x2be   :  { %v2004_v15 = vpop.f32.mrf.mxu2 }
 0x2bf   :  { %v2005_v30 = vadd.f32 %v2004_v15, %v6907_v12  ;;  %v2093_v4 = vpop.f32.mrf.mxu3  ;;  %v5120_v12 = vld [vmem:[%s8224_s3 + $0x28] sm:$0xff] }
 0x2c0   :  { %v2094_v17 = vadd.f32 %v2093_v4, %v7076_v20  ;;  %v2185_v54 = vpop.f32.mrf.mxu0  ;;  %2890 = vmatpush.bf16.msra.mxu2 %v5120_v12 }
 0x2c1   :  { %v2698_v45 = vmax.f32 %v2005_v30, 0.0 }
 0x2c2   :  { %v2183_v33 = vadd.f32 %v2182_v55, %v2094_v17  ;;  %v2274_v36 = vpop.f32.mrf.mxu1 }
 0x2c3   :  { %2322 = vmatmul.bf16.gmra.mxu2 %v8447_v25  ;;  %2500 = vmatmul.bf16.gmra.mxu0 %v8448_v1  ;;  %v7393_v6 = vpack.c.bf16 %v2698_v45, %v2696_v51 }
 0x2c4   :  { %v7395_v44 = vadd.f32 %v2271_v50, %v2183_v33  ;;  %2411 = vmatmul.bf16.gmra.mxu3 %v8449_v38 }
 0x2c5   :  { %2589 = vmatmul.bf16.gmra.mxu1 %v6902_v46 }
 0x2c6   :  { %v2007_v7 = vpop.f32.mrf.mxu2 }
 0x2c7   :  { %v2008_v55 = vadd.f32 %v2007_v7, %v6929_v23  ;;  %v2096_v56 = vpop.f32.mrf.mxu3  ;;  %v8450_v23 = vld [vmem:[#allocation32_spill] sm:$0xff]  ;;  %v8451_v7 = vld [vmem:[#allocation33_spill] sm:$0xff] }
 0x2c8   :  { %v2097_v50 = vadd.f32 %v2096_v56, %v7076_v20  ;;  %v2187_v15 = vpop.f32.mrf.mxu0 }
 0x2c9   :  { %v2700_v1 = vmax.f32 %v2008_v55, 0.0 }
 0x2ca   :  { %v2186_v30 = vadd.f32 %v2185_v54, %v2097_v50  ;;  %v2276_v4 = vpop.f32.mrf.mxu1 }
 0x2cc   :  { %v7407_v17 = vadd.f32 %v2274_v36, %v2186_v30  ;;  %v8452_v36 = vld [vmem:[#allocation31_spill] sm:$0xff] }
 0x2ce   :  { %v2009_v51 = vpop.f32.mrf.mxu2 }
 0x2cf   :  { %v2010_v45 = vadd.f32 %v2009_v51, %v6937_v52  ;;  %v2098_v33 = vpop.f32.mrf.mxu3 }
 0x2d0   :  { %v2099_v25 = vadd.f32 %v2098_v33, %v7076_v20  ;;  %v2190_v46 = vpop.f32.mrf.mxu0 }
 0x2d1   :  { %v2702_v38 = vmax.f32 %v2010_v45, 0.0 }
 0x2d2   :  { %v2188_v12 = vadd.f32 %v2187_v15, %v2099_v25  ;;  %v2279_v18 = vpop.f32.mrf.mxu1 }
 0x2d3   :  { %2327 = vmatmul.bf16.gmra.mxu2 %v8450_v23  ;;  %2505 = vmatmul.bf16.gmra.mxu0 %v8451_v7  ;;  %v7413_v56 = vpack.c.bf16 %v2702_v38, %v2700_v1 }
 0x2d4   :  { %v7415_v54 = vadd.f32 %v2276_v4, %v2188_v12  ;;  %2416 = vmatmul.bf16.gmra.mxu3 %v8452_v36 }
 0x2d5   :  { %2594 = vmatmul.bf16.gmra.mxu1 %v6932_v22 }
 0x2d6   :  { %v2012_v52 = vpop.f32.mrf.mxu2 }
 0x2d7   :  { %v2013_v50 = vadd.f32 %v2012_v52, %v6947_v61  ;;  %v2101_v30 = vpop.f32.mrf.mxu3  ;;  %v8453_v61 = vld [vmem:[#allocation35_spill] sm:$0xff]  ;;  %v8454_v52 = vld [vmem:[#allocation36_spill] sm:$0xff] }
 0x2d8   :  { %v2102_v55 = vadd.f32 %v2101_v30, %v7076_v20  ;;  %v2192_v15 = vpop.f32.mrf.mxu0 }
 0x2d9   :  { %v2704_v23 = vmax.f32 %v2013_v50, 0.0  ;;  %v5127_v50 = vld [vmem:[%s8224_s3 + $0x60] sm:$0xff] }
 0x2da   :  { %v2191_v51 = vadd.f32 %v2190_v46, %v2102_v55  ;;  %v2281_v45 = vpop.f32.mrf.mxu1  ;;  %2980 = vmatpush.bf16.msra.mxu3 %v5127_v50 }
 0x2dc   :  { %v7421_v33 = vadd.f32 %v2279_v18, %v2191_v51  ;;  %v8455_v18 = vld [vmem:[#allocation34_spill] sm:$0xff] }
 0x2de   :  { %v2014_v25 = vpop.f32.mrf.mxu2 }
 0x2df   :  { %v2015_v1 = vadd.f32 %v2014_v25, %v6955_v10  ;;  %v2103_v4 = vpop.f32.mrf.mxu3  ;;  %v5119_v10 = vld [vmem:[%s8224_s3 + $0x20] sm:$0xff] }
 0x2e0   :  { %v2104_v38 = vadd.f32 %v2103_v4, %v7076_v20  ;;  %v2195_v12 = vpop.f32.mrf.mxu0  ;;  %2891 = vmatpush.bf16.msra.mxu2 %v5119_v10 }
 0x2e1   :  { %v2706_v22 = vmax.f32 %v2015_v1, 0.0 }
 0x2e2   :  { %v2193_v7 = vadd.f32 %v2192_v15, %v2104_v38  ;;  %v2284_v36 = vpop.f32.mrf.mxu1 }
 0x2e3   :  { %2332 = vmatmul.bf16.gmra.mxu2 %v8453_v61  ;;  %2510 = vmatmul.bf16.gmra.mxu0 %v8454_v52  ;;  %v7427_v30 = vpack.c.bf16 %v2706_v22, %v2704_v23 }
 0x2e4   :  { %v7429_v46 = vadd.f32 %v2281_v45, %v2193_v7  ;;  %2421 = vmatmul.bf16.gmra.mxu3 %v8455_v18 }
 0x2e5   :  { %2599 = vmatmul.bf16.gmra.mxu1 %v6950_v21 }
 0x2e6   :  { %v2017_v55 = vpop.f32.mrf.mxu2 }
 0x2e7   :  { %v2018_v15 = vadd.f32 %v2017_v55, %v6977_v43  ;;  %v2106_v51 = vpop.f32.mrf.mxu3  ;;  %v8456_v43 = vld [vmem:[#allocation38_spill] sm:$0xff]  ;;  %v8457_v55 = vld [vmem:[#allocation39_spill] sm:$0xff] }
 0x2e8   :  { %v2107_v45 = vadd.f32 %v2106_v51, %v7076_v20  ;;  %v2197_v25 = vpop.f32.mrf.mxu0 }
 0x2e9   :  { %v2708_v52 = vmax.f32 %v2018_v15, 0.0 }
 0x2ea   :  { %v2196_v1 = vadd.f32 %v2195_v12, %v2107_v45  ;;  %v2286_v4 = vpop.f32.mrf.mxu1 }
 0x2ec   :  { %v7441_v38 = vadd.f32 %v2284_v36, %v2196_v1  ;;  %v8458_v36 = vld [vmem:[#allocation37_spill] sm:$0xff] }
 0x2ee   :  { %v2019_v23 = vpop.f32.mrf.mxu2 }
 0x2ef   :  { %v2020_v22 = vadd.f32 %v2019_v23, %v6985_v0  ;;  %v2108_v7 = vpop.f32.mrf.mxu3 }
 0x2f0   :  { %v2109_v61 = vadd.f32 %v2108_v7, %v7076_v20  ;;  %v2200_v21 = vpop.f32.mrf.mxu0 }
 0x2f1   :  { %v2710_v18 = vmax.f32 %v2020_v22, 0.0 }
 0x2f2   :  { %v2198_v10 = vadd.f32 %v2197_v25, %v2109_v61  ;;  %v2289_v50 = vpop.f32.mrf.mxu1 }
 0x2f3   :  { %2337 = vmatmul.bf16.gmra.mxu2 %v8456_v43  ;;  %2515 = vmatmul.bf16.gmra.mxu0 %v8457_v55  ;;  %v7447_v51 = vpack.c.bf16 %v2710_v18, %v2708_v52 }
 0x2f4   :  { %v7449_v12 = vadd.f32 %v2286_v4, %v2198_v10  ;;  %2426 = vmatmul.bf16.gmra.mxu3 %v8458_v36 }
 0x2f5   :  { %2604 = vmatmul.bf16.gmra.mxu1 %v6980_v42 }
 0x2f6   :  { %v2022_v0 = vpop.f32.mrf.mxu2 }
 0x2f7   :  { %v2023_v45 = vadd.f32 %v2022_v0, %v7007_v48  ;;  %v2111_v1 = vpop.f32.mrf.mxu3  ;;  %v8459_v48 = vld [vmem:[#allocation43_spill] sm:$0xff]  ;;  %v8460_v0 = vld [vmem:[#allocation45_spill] sm:$0xff] }
 0x2f8   :  { %v2112_v15 = vadd.f32 %v2111_v1, %v7076_v20  ;;  %v2202_v25 = vpop.f32.mrf.mxu0 }
 0x2f9   :  { %v2712_v43 = vmax.f32 %v2023_v45, 0.0  ;;  %v5126_v45 = vld [vmem:[%s8224_s3 + $0x58] sm:$0xff] }
 0x2fa   :  { %v2201_v23 = vadd.f32 %v2200_v21, %v2112_v15  ;;  %v2291_v22 = vpop.f32.mrf.mxu1  ;;  %2981 = vmatpush.bf16.msra.mxu3 %v5126_v45 }
 0x2fc   :  { %v7455_v7 = vadd.f32 %v2289_v50, %v2201_v23  ;;  %v8461_v50 = vld [vmem:[#allocation42_spill] sm:$0xff] }
 0x2fe   :  { %v2024_v61 = vpop.f32.mrf.mxu2 }
 0x2ff   :  { %v2025_v52 = vadd.f32 %v2024_v61, %v7015_v31  ;;  %v2113_v4 = vpop.f32.mrf.mxu3  ;;  %v5118_v31 = vld [vmem:[%s8224_s3 + $0x18] sm:$0xff] }
 0x300   :  { %v2114_v18 = vadd.f32 %v2113_v4, %v7076_v20  ;;  %v2205_v10 = vpop.f32.mrf.mxu0  ;;  %2892 = vmatpush.bf16.msra.mxu2 %v5118_v31 }
 0x301   :  { %v2714_v42 = vmax.f32 %v2025_v52, 0.0 }
 0x302   :  { %v2203_v55 = vadd.f32 %v2202_v25, %v2114_v18  ;;  %v2294_v36 = vpop.f32.mrf.mxu1 }
 0x303   :  { %2342 = vmatmul.bf16.gmra.mxu2 %v8459_v48  ;;  %2520 = vmatmul.bf16.gmra.mxu0 %v8460_v0  ;;  %v7461_v1 = vpack.c.bf16 %v2714_v42, %v2712_v43 }
 0x304   :  { %v7463_v21 = vadd.f32 %v2291_v22, %v2203_v55  ;;  %2431 = vmatmul.bf16.gmra.mxu3 %v8461_v50 }
 0x305   :  { %2609 = vmatmul.bf16.gmra.mxu1 %v7010_v8 }
 0x306   :  { %v2027_v15 = vpop.f32.mrf.mxu2 }
 0x307   :  { %v2028_v25 = vadd.f32 %v2027_v15, %v7037_v34  ;;  %v2116_v23 = vpop.f32.mrf.mxu3  ;;  %v8462_v34 = vld [vmem:[#allocation49_spill] sm:$0xff]  ;;  %v8463_v15 = vld [vmem:[#allocation51_spill] sm:$0xff] }
 0x308   :  { %v2117_v22 = vadd.f32 %v2116_v23, %v7076_v20  ;;  %v2207_v61 = vpop.f32.mrf.mxu0 }
 0x309   :  { %v2716_v0 = vmax.f32 %v2028_v25, 0.0 }
 0x30a   :  { %v2206_v52 = vadd.f32 %v2205_v10, %v2117_v22  ;;  %v2296_v4 = vpop.f32.mrf.mxu1 }
 0x30c   :  { %v7475_v18 = vadd.f32 %v2294_v36, %v2206_v52  ;;  %v8464_v36 = vld [vmem:[#allocation48_spill] sm:$0xff] }
 0x30e   :  { %v2029_v43 = vpop.f32.mrf.mxu2 }
 0x30f   :  { %v2030_v42 = vadd.f32 %v2029_v43, %v7045_v53  ;;  %v2118_v55 = vpop.f32.mrf.mxu3  ;;  %v5138_v43 = vld [vmem:[%s8225_s5 + $0x38] sm:$0xff] }
 0x310   :  { %v2119_v48 = vadd.f32 %v2118_v55, %v7076_v20  ;;  %v2210_v8 = vpop.f32.mrf.mxu0  ;;  %3182 = vmatpush.bf16.msra.mxu0 %v5138_v43  ;;  %v5125_v43 = vld [vmem:[%s8224_s3 + $0x50] sm:$0xff] }
 0x311   :  { %v2718_v50 = vmax.f32 %v2030_v42, 0.0  ;;  %2982 = vmatpush.bf16.msra.mxu3 %v5125_v43 }
 0x312   :  { %v2208_v31 = vadd.f32 %v2207_v61, %v2119_v48  ;;  %v2299_v45 = vpop.f32.mrf.mxu1 }
 0x313   :  { %2347 = vmatmul.bf16.gmra.mxu2 %v8462_v34  ;;  %2525 = vmatmul.bf16.gmra.mxu0 %v8463_v15  ;;  %v7481_v23 = vpack.c.bf16 %v2718_v50, %v2716_v0 }
 0x314   :  { %v7483_v10 = vadd.f32 %v2296_v4, %v2208_v31  ;;  %2436 = vmatmul.bf16.gmra.mxu3 %v8464_v36 }
 0x315   :  { %2614 = vmatmul.bf16.gmra.mxu1 %v7040_v27 }
 0x316   :  { %v2032_v53 = vpop.f32.mrf.mxu2 }
 0x317   :  { %v2033_v22 = vadd.f32 %v2032_v53, %v7067_v32  ;;  %v2121_v52 = vpop.f32.mrf.mxu3  ;;  %v8465_v53 = vld [vmem:[#allocation55_spill] sm:$0xff] }
 0x318   :  { %v2122_v25 = vadd.f32 %v2121_v52, %v7076_v20  ;;  %v2212_v61 = vpop.f32.mrf.mxu0  ;;  %v8466_v52 = vld [vmem:[#allocation57_spill] sm:$0xff] }
 0x319   :  { %v2720_v31 = vmax.f32 %v2033_v22, 0.0 }
 0x31a   :  { %v2211_v42 = vadd.f32 %v2210_v8, %v2122_v25  ;;  %v2301_v55 = vpop.f32.mrf.mxu1 }
 0x31c   :  { %v7492_v4 = vadd.f32 %v2299_v45, %v2211_v42  ;;  %v8467_v45 = vld [vmem:[#allocation54_spill] sm:$0xff] }
 0x31e   :  { %v2034_v48 = vpop.f32.mrf.mxu2 }
 0x31f   :  { %v2035_v0 = vadd.f32 %v2034_v48, %v7089_v29  ;;  %v2123_v27 = vpop.f32.mrf.mxu3  ;;  %v5117_v29 = vld [vmem:[%s8224_s3 + $0x10] sm:$0xff] }
 0x320   :  { %v2124_v50 = vadd.f32 %v2123_v27, %v7076_v20  ;;  %v2491_v32 = vpop.f32.mrf.mxu0  ;;  %2893 = vmatpush.bf16.msra.mxu2 %v5117_v29  ;;  %v8470_v29 = vld [vmem:[#allocation60_spill] sm:$0xff] }
 0x321   :  { %v2722_v34 = vmax.f32 %v2035_v0, 0.0 }
 0x322   :  { %v2213_v15 = vadd.f32 %v2212_v61, %v2124_v50  ;;  %v2580_v36 = vpop.f32.mrf.mxu1 }
 0x323   :  { %2352 = vmatmul.bf16.gmra.mxu2 %v8465_v53  ;;  %2530 = vmatmul.bf16.gmra.mxu0 %v8466_v52  ;;  %v7498_v8 = vpack.c.bf16 %v2722_v34, %v2720_v31 }
 0x324   :  { %v7500_v25 = vadd.f32 %v2301_v55, %v2213_v15  ;;  %2441 = vmatmul.bf16.gmra.mxu3 %v8467_v45  ;;  %v8469_v45 = vld [vmem:[#allocation62_spill] sm:$0xff] }
 0x325   :  { %2619 = vmatmul.bf16.gmra.mxu1 %v7070_v11 }
 0x326   :  { %v2313_v20 = vpop.f32.mrf.mxu2 }
 0x327   :  { %v2314_v22 = vadd.f32 %v2313_v20, %v7097_v14  ;;  %v2402_v61 = vpop.f32.mrf.mxu3  ;;  %v8468_v14 = vld [vmem:[#allocation61_spill] sm:$0xff] }
 0x328   :  { %v2493_v42 = vpop.f32.mrf.mxu0 }
 0x329   :  { %v2403_v55 = vadd.f32 %v2402_v61, %v2314_v22 }
 0x32a   :  { %v2582_v48 = vpop.f32.mrf.mxu1 }
 0x32b   :  { %v2492_v0 = vadd.f32 %v2491_v32, %v2403_v55 }
 0x32d   :  { %v2581_v27 = vadd.f32 %v2580_v36, %v2492_v0 }
 0x32e   :  { %v2315_v50 = vpop.f32.mrf.mxu2 }
 0x32f   :  { %v2316_v31 = vadd.f32 %v2315_v50, %v7113_v2  ;;  %v2404_v34 = vpop.f32.mrf.mxu3  ;;  %v2661_v32 = vmax.f32 %v2581_v27, 0.0 }
 0x330   :  { %v2496_v11 = vpop.f32.mrf.mxu0 }
 0x331   :  { %v2405_v15 = vadd.f32 %v2404_v34, %v2316_v31 }
 0x332   :  { %v2585_v53 = vpop.f32.mrf.mxu1 }
 0x333   :  { %v2494_v52 = vadd.f32 %v2493_v42, %v2405_v15  ;;  %2357 = vmatmul.bf16.gmra.mxu2 %v8468_v14  ;;  %2535 = vmatmul.bf16.gmra.mxu0 %v8469_v45  ;;  %v5137_v42 = vld [vmem:[%s8225_s5 + $0x30] sm:$0xff]  ;;  %v8471_v45 = vld [vmem:[#allocation65_spill] sm:$0xff] }
 0x334   :  { %2446 = vmatmul.bf16.gmra.mxu3 %v8470_v29  ;;  %3183 = vmatpush.bf16.msra.mxu0 %v5137_v42  ;;  %v8472_v29 = vld [vmem:[#allocation66_spill] sm:$0xff] }
 0x335   :  { %v2583_v20 = vadd.f32 %v2582_v48, %v2494_v52  ;;  %2624 = vmatmul.bf16.gmra.mxu1 %v7106_v5 }
 0x336   :  { %v2318_v22 = vpop.f32.mrf.mxu2 }
 0x337   :  { %v2663_v36 = vmax.f32 %v2583_v20, 0.0  ;;  %v2319_v61 = vadd.f32 %v2318_v22, %v7131_v37  ;;  %v2407_v2 = vpop.f32.mrf.mxu3  ;;  %v8473_v20 = vld [vmem:[#allocation64_spill] sm:$0xff] }
 0x338   :  { %v2498_v43 = vpop.f32.mrf.mxu0 }
 0x339   :  { %v7517_v55 = vpack.c.bf16 %v2663_v36, %v2661_v32  ;;  %v2408_v0 = vadd.f32 %v2407_v2, %v2319_v61  ;;  %v5124_v2 = vld [vmem:[%s8224_s3 + $0x48] sm:$0xff] }
 0x33a   :  { %v2587_v50 = vpop.f32.mrf.mxu1  ;;  %2983 = vmatpush.bf16.msra.mxu3 %v5124_v2 }
 0x33b   :  { %v2497_v31 = vadd.f32 %v2496_v11, %v2408_v0  ;;  %v5116_v11 = vld [vmem:[%s8224_s3 + $0x8] sm:$0xff] }
 0x33c   :  { %2894 = vmatpush.bf16.msra.mxu2 %v5116_v11 }
 0x33d   :  { %v2586_v48 = vadd.f32 %v2585_v53, %v2497_v31 }
 0x33e   :  { %v2320_v34 = vpop.f32.mrf.mxu2 }
 0x33f   :  { %v2321_v5 = vadd.f32 %v2320_v34, %v7147_v35  ;;  %v2409_v27 = vpop.f32.mrf.mxu3  ;;  %v2665_v35 = vmax.f32 %v2586_v48, 0.0 }
 0x340   :  { %v2501_v15 = vpop.f32.mrf.mxu0 }
 0x341   :  { %v2410_v52 = vadd.f32 %v2409_v27, %v2321_v5 }
 0x342   :  { %v2590_v37 = vpop.f32.mrf.mxu1 }
 0x343   :  { %v2499_v14 = vadd.f32 %v2498_v43, %v2410_v52  ;;  %2362 = vmatmul.bf16.gmra.mxu2 %v8471_v45  ;;  %2540 = vmatmul.bf16.gmra.mxu0 %v8472_v29  ;;  %v8474_v45 = vld [vmem:[#allocation69_spill] sm:$0xff]  ;;  %v8475_v29 = vld [vmem:[#allocation70_spill] sm:$0xff] }
 0x344   :  { %2451 = vmatmul.bf16.gmra.mxu3 %v8473_v20  ;;  %v8476_v20 = vld [vmem:[#allocation68_spill] sm:$0xff] }
 0x345   :  { %v2588_v22 = vadd.f32 %v2587_v50, %v2499_v14  ;;  %2629 = vmatmul.bf16.gmra.mxu1 %v7140_v3 }
 0x346   :  { %v2323_v53 = vpop.f32.mrf.mxu2 }
 0x347   :  { %v2667_v32 = vmax.f32 %v2588_v22, 0.0  ;;  %v2324_v36 = vadd.f32 %v2323_v53, %v7165_v41  ;;  %v2412_v61 = vpop.f32.mrf.mxu3 }
 0x348   :  { %v2503_v43 = vpop.f32.mrf.mxu0 }
 0x349   :  { %v2413_v0 = vadd.f32 %v2412_v61, %v2324_v36  ;;  %v7534_v42 = vpack.c.bf16 %v2667_v32, %v2665_v35  ;;  %v5136_v36 = vld [vmem:[%s8225_s5 + $0x28] sm:$0xff] }
 0x34a   :  { %v2592_v31 = vpop.f32.mrf.mxu1  ;;  %3184 = vmatpush.bf16.msra.mxu0 %v5136_v36 }
 0x34b   :  { %v2502_v50 = vadd.f32 %v2501_v15, %v2413_v0 }
 0x34d   :  { %v2591_v34 = vadd.f32 %v2590_v37, %v2502_v50 }
 0x34e   :  { %v2325_v3 = vpop.f32.mrf.mxu2 }
 0x34f   :  { %v2326_v5 = vadd.f32 %v2325_v3, %v7181_v62  ;;  %v2414_v48 = vpop.f32.mrf.mxu3  ;;  %v2669_v15 = vmax.f32 %v2591_v34, 0.0 }
 0x350   :  { %v2506_v27 = vpop.f32.mrf.mxu0 }
 0x351   :  { %v2415_v52 = vadd.f32 %v2414_v48, %v2326_v5  ;;  %v8477_v48 = vld [vmem:[#allocation73_spill] sm:$0xff] }
 0x352   :  { %v2595_v41 = vpop.f32.mrf.mxu1 }
 0x353   :  { %v2504_v14 = vadd.f32 %v2503_v43, %v2415_v52  ;;  %2367 = vmatmul.bf16.gmra.mxu2 %v8474_v45  ;;  %2545 = vmatmul.bf16.gmra.mxu0 %v8475_v29  ;;  %v8478_v52 = vld [vmem:[#allocation74_spill] sm:$0xff] }
 0x354   :  { %2456 = vmatmul.bf16.gmra.mxu3 %v8476_v20 }
 0x355   :  { %v2593_v11 = vadd.f32 %v2592_v31, %v2504_v14  ;;  %2634 = vmatmul.bf16.gmra.mxu1 %v7174_v19  ;;  %v8479_v14 = vld [vmem:[#allocation72_spill] sm:$0xff] }
 0x356   :  { %v2328_v22 = vpop.f32.mrf.mxu2 }
 0x357   :  { %v2671_v37 = vmax.f32 %v2593_v11, 0.0  ;;  %v2329_v53 = vadd.f32 %v2328_v22, %v7199_v47  ;;  %v2417_v62 = vpop.f32.mrf.mxu3  ;;  %v8481_v11 = vld [vmem:[#allocation46_spill] sm:$0xff] }
 0x358   :  { %v2508_v35 = vpop.f32.mrf.mxu0 }
 0x359   :  { %v2418_v32 = vadd.f32 %v2417_v62, %v2329_v53  ;;  %v7545_v61 = vpack.c.bf16 %v2671_v37, %v2669_v15  ;;  %v5123_v37 = vld [vmem:[%s8224_s3 + $0x40] sm:$0xff] }
 0x35a   :  { %v2597_v2 = vpop.f32.mrf.mxu1  ;;  %2984 = vmatpush.bf16.msra.mxu3 %v5123_v37 }
 0x35b   :  { %v2507_v43 = vadd.f32 %v2506_v27, %v2418_v32  ;;  %v5115_v27 = vld [vmem:[%s8224_s3] sm:$0xff] }
 0x35c   :  { %2895 = vmatpush.bf16.msra.mxu2 %v5115_v27 }
 0x35d   :  { %v2596_v0 = vadd.f32 %v2595_v41, %v2507_v43  ;;  %v8480_v41 = vld [vmem:[#allocation15_spill] sm:$0xff] }
 0x35e   :  { %v2330_v31 = vpop.f32.mrf.mxu2 }
 0x35f   :  { %v2331_v19 = vadd.f32 %v2330_v31, %v7215_v9  ;;  %v2419_v50 = vpop.f32.mrf.mxu3  ;;  %v2673_v9 = vmax.f32 %v2596_v0, 0.0 }
 0x360   :  { %v2511_v34 = vpop.f32.mrf.mxu0 }
 0x361   :  { %v2420_v3 = vadd.f32 %v2419_v50, %v2331_v19 }
 0x362   :  { %v2600_v47 = vpop.f32.mrf.mxu1 }
 0x363   :  { %v2509_v5 = vadd.f32 %v2508_v35, %v2420_v3  ;;  %2372 = vmatmul.bf16.gmra.mxu2 %v8477_v48  ;;  %2550 = vmatmul.bf16.gmra.mxu0 %v8478_v52  ;;  %v8482_v48 = vld [vmem:[#allocation78_spill] sm:$0xff]  ;;  %v8483_v52 = vld [vmem:[#allocation79_spill] sm:$0xff] }
 0x364   :  { %2461 = vmatmul.bf16.gmra.mxu3 %v8479_v14  ;;  %v8484_v14 = vld [vmem:[#allocation77_spill] sm:$0xff] }
 0x365   :  { %v2598_v45 = vadd.f32 %v2597_v2, %v2509_v5  ;;  %2639 = vmatmul.bf16.gmra.mxu1 %v8480_v41 }
 0x366   :  { %v2333_v29 = vpop.f32.mrf.mxu2 }
 0x367   :  { %v2675_v20 = vmax.f32 %v2598_v45, 0.0  ;;  %v2334_v22 = vadd.f32 %v2333_v29, %v8481_v11  ;;  %v2422_v15 = vpop.f32.mrf.mxu3  ;;  %v8485_v29 = vld [vmem:[#allocation21_spill] sm:$0xff] }
 0x368   :  { %v2513_v53 = vpop.f32.mrf.mxu0 }
 0x369   :  { %v2423_v62 = vadd.f32 %v2422_v15, %v2334_v22  ;;  %v7559_v35 = vpack.c.bf16 %v2675_v20, %v2673_v9 }
 0x36a   :  { %v2602_v32 = vpop.f32.mrf.mxu1 }
 0x36b   :  { %v2512_v2 = vadd.f32 %v2511_v34, %v2423_v62 }
 0x36d   :  { %v2601_v3 = vadd.f32 %v2600_v47, %v2512_v2  ;;  %v5135_v47 = vld [vmem:[%s8225_s5 + $0x20] sm:$0xff] }
 0x36e   :  { %v2335_v36 = vpop.f32.mrf.mxu2  ;;  %3185 = vmatpush.bf16.msra.mxu0 %v5135_v47 }
 0x36f   :  { %v2336_v43 = vadd.f32 %v2335_v36, %v7249_v13  ;;  %v2424_v31 = vpop.f32.mrf.mxu3  ;;  %v2677_v41 = vmax.f32 %v2601_v3, 0.0  ;;  %v8487_v3 = vld [vmem:[#allocation84_spill] sm:$0xff] }
 0x370   :  { %v2516_v0 = vpop.f32.mrf.mxu0 }
 0x371   :  { %v2425_v19 = vadd.f32 %v2424_v31, %v2336_v43 }
 0x372   :  { %v2605_v50 = vpop.f32.mrf.mxu1 }
 0x373   :  { %v2514_v5 = vadd.f32 %v2513_v53, %v2425_v19  ;;  %2377 = vmatmul.bf16.gmra.mxu2 %v8482_v48  ;;  %2555 = vmatmul.bf16.gmra.mxu0 %v8483_v52  ;;  %v8486_v19 = vld [vmem:[#allocation83_spill] sm:$0xff] }
 0x374   :  { %2466 = vmatmul.bf16.gmra.mxu3 %v8484_v14 }
 0x375   :  { %v2603_v27 = vadd.f32 %v2602_v32, %v2514_v5  ;;  %2644 = vmatmul.bf16.gmra.mxu1 %v7242_v26  ;;  %v8488_v5 = vld [vmem:[#allocation82_spill] sm:$0xff] }
 0x376   :  { %v2338_v45 = vpop.f32.mrf.mxu2 }
 0x377   :  { %v2679_v34 = vmax.f32 %v2603_v27, 0.0  ;;  %v2339_v13 = vadd.f32 %v2338_v45, %v8485_v29  ;;  %v2427_v9 = vpop.f32.mrf.mxu3  ;;  %v8489_v27 = vld [vmem:[#allocation47_spill] sm:$0xff] }
 0x378   :  { %v2518_v20 = vpop.f32.mrf.mxu0 }
 0x379   :  { %v2428_v11 = vadd.f32 %v2427_v9, %v2339_v13  ;;  %v7570_v22 = vpack.c.bf16 %v2679_v34, %v2677_v41 }
 0x37a   :  { %v2607_v15 = vpop.f32.mrf.mxu1 }
 0x37b   :  { %v2517_v53 = vadd.f32 %v2516_v0, %v2428_v11 }
 0x37d   :  { %v2606_v43 = vadd.f32 %v2605_v50, %v2517_v53 }
 0x37e   :  { %v2340_v37 = vpop.f32.mrf.mxu2 }
 0x37f   :  { %v2341_v26 = vadd.f32 %v2340_v37, %v7295_v60  ;;  %v2429_v62 = vpop.f32.mrf.mxu3  ;;  %v2681_v14 = vmax.f32 %v2606_v43, 0.0 }
 0x380   :  { %v2521_v32 = vpop.f32.mrf.mxu0 }
 0x381   :  { %v2430_v36 = vadd.f32 %v2429_v62, %v2341_v26  ;;  %v8490_v26 = vld [vmem:[#allocation86_spill] sm:$0xff]  ;;  %v8491_v62 = vld [vmem:[#allocation87_spill] sm:$0xff] }
 0x382   :  { %v2610_v2 = vpop.f32.mrf.mxu1 }
 0x383   :  { %v2519_v31 = vadd.f32 %v2518_v20, %v2430_v36  ;;  %2382 = vmatmul.bf16.gmra.mxu2 %v8486_v19  ;;  %2560 = vmatmul.bf16.gmra.mxu0 %v8487_v3  ;;  %v8492_v36 = vld [vmem:[#allocation85_spill] sm:$0xff] }
 0x384   :  { %2471 = vmatmul.bf16.gmra.mxu3 %v8488_v5 }
 0x385   :  { %v2608_v48 = vadd.f32 %v2607_v15, %v2519_v31  ;;  %2649 = vmatmul.bf16.gmra.mxu1 %v7276_v59 }
 0x386   :  { %v2343_v52 = vpop.f32.mrf.mxu2 }
 0x387   :  { %v2683_v0 = vmax.f32 %v2608_v48, 0.0  ;;  %v2344_v60 = vadd.f32 %v2343_v52, %v8489_v27  ;;  %v2432_v45 = vpop.f32.mrf.mxu3 }
 0x388   :  { %v2523_v41 = vpop.f32.mrf.mxu0 }
 0x389   :  { %v2433_v34 = vadd.f32 %v2432_v45, %v2344_v60  ;;  %v7578_v29 = vpack.c.bf16 %v2683_v0, %v2681_v14 }
 0x38a   :  { %v2612_v50 = vpop.f32.mrf.mxu1 }
 0x38b   :  { %v2522_v9 = vadd.f32 %v2521_v32, %v2433_v34 }
 0x38d   :  { %v2611_v59 = vadd.f32 %v2610_v2, %v2522_v9  ;;  %v5134_v2 = vld [vmem:[%s8225_s5 + $0x18] sm:$0xff] }
 0x38e   :  { %v2345_v13 = vpop.f32.mrf.mxu2  ;;  %3186 = vmatpush.bf16.msra.mxu0 %v5134_v2  ;;  %v5146_v9 = vld [vmem:[%s8226_s7 + $0x38] sm:$0xff] }
 0x38f   :  { %v2346_v20 = vadd.f32 %v2345_v13, %v7347_v40  ;;  %v2434_v11 = vpop.f32.mrf.mxu3  ;;  %v2685_v19 = vmax.f32 %v2611_v59, 0.0  ;;  %v8493_v13 = vld [vmem:[#allocation40_spill] sm:$0xff]  ;;  %3387 = vmatpush.bf16.msra.mxu1 %v5146_v9 }
 0x390   :  { %v2526_v47 = vpop.f32.mrf.mxu0 }
 0x391   :  { %v2435_v15 = vadd.f32 %v2434_v11, %v2346_v20 }
 0x392   :  { %v2615_v37 = vpop.f32.mrf.mxu1 }
 0x393   :  { %v2524_v53 = vadd.f32 %v2523_v41, %v2435_v15  ;;  %2387 = vmatmul.bf16.gmra.mxu2 %v8490_v26  ;;  %2565 = vmatmul.bf16.gmra.mxu0 %v8491_v62 }
 0x394   :  { %2476 = vmatmul.bf16.gmra.mxu3 %v8492_v36 }
 0x395   :  { %v2613_v43 = vadd.f32 %v2612_v50, %v2524_v53  ;;  %2654 = vmatmul.bf16.gmra.mxu1 %v7340_v24 }
 0x396   :  { %v2348_v31 = vpop.f32.mrf.mxu2 }
 0x397   :  { %v2687_v32 = vmax.f32 %v2613_v43, 0.0  ;;  %v2349_v40 = vadd.f32 %v2348_v31, %v7353_v63  ;;  %v2437_v3 = vpop.f32.mrf.mxu3 }
 0x398   :  { %v2528_v5 = vpop.f32.mrf.mxu0 }
 0x399   :  { %v2438_v48 = vadd.f32 %v2437_v3, %v2349_v40  ;;  %v7589_v52 = vpack.c.bf16 %v2687_v32, %v2685_v19 }
 0x39a   :  { %v2617_v14 = vpop.f32.mrf.mxu1 }
 0x39b   :  { %v2527_v27 = vadd.f32 %v2526_v47, %v2438_v48  ;;  %v8494_v48 = vld [vmem:[#allocation44_spill] sm:$0xff] }
 0x39d   :  { %v2616_v63 = vadd.f32 %v2615_v37, %v2527_v27 }
 0x39e   :  { %v2350_v0 = vpop.f32.mrf.mxu2 }
 0x39f   :  { %v2351_v24 = vadd.f32 %v2350_v0, %v7361_v49  ;;  %v2439_v60 = vpop.f32.mrf.mxu3  ;;  %v2689_v47 = vmax.f32 %v2616_v63, 0.0 }
 0x3a0   :  { %v2531_v45 = vpop.f32.mrf.mxu0 }
 0x3a1   :  { %v2440_v41 = vadd.f32 %v2439_v60, %v2351_v24 }
 0x3a2   :  { %v2620_v34 = vpop.f32.mrf.mxu1 }
 0x3a3   :  { %v2529_v50 = vadd.f32 %v2528_v5, %v2440_v41  ;;  %2896 = vmatmul.bf16.vlgmr.msra.gmra.mxu2 %v8493_v13 }
 0x3a4   :  { %2985 = vmatmul.bf16.vlgmr.msra.gmra.mxu3 %v7517_v55 }
 0x3a5   :  { %v2618_v20 = vadd.f32 %v2617_v14, %v2529_v50 }
 0x3a6   :  { %v2353_v11 = vpop.f32.mrf.mxu2 }
 0x3a7   :  { %v2691_v15 = vmax.f32 %v2618_v20, 0.0  ;;  %v2354_v49 = vadd.f32 %v2353_v11, %v7373_v39  ;;  %v2442_v59 = vpop.f32.mrf.mxu3 }
 0x3a8   :  { %v2533_v53 = vpop.f32.mrf.mxu0 }
 0x3a9   :  { %v2443_v26 = vadd.f32 %v2442_v59, %v2354_v49  ;;  %v7598_v37 = vpack.c.bf16 %v2691_v15, %v2689_v47  ;;  %v8495_v15 = vld [vmem:[#allocation17_spill] sm:$0xff]  ;;  %v5145_v49 = vld [vmem:[%s8226_s7 + $0x30] sm:$0xff] }
 0x3aa   :  { %v2622_v62 = vpop.f32.mrf.mxu1  ;;  %3388 = vmatpush.bf16.msra.mxu1 %v5145_v49  ;;  %v8497_v49 = vld [vmem:[#allocation50_spill] sm:$0xff] }
 0x3ab   :  { %v2532_v43 = vadd.f32 %v2531_v45, %v2443_v26 }
 0x3ad   :  { %v2621_v3 = vadd.f32 %v2620_v34, %v2532_v43 }
 0x3ae   :  { %v2355_v36 = vpop.f32.mrf.mxu2 }
 0x3af   :  { %v2356_v55 = vadd.f32 %v2355_v36, %v7381_v58  ;;  %v2444_v31 = vpop.f32.mrf.mxu3  ;;  %v2693_v14 = vmax.f32 %v2621_v3, 0.0  ;;  %v5133_v58 = vld [vmem:[%s8225_s5 + $0x10] sm:$0xff] }
 0x3b0   :  { %v2536_v19 = vpop.f32.mrf.mxu0  ;;  %3187 = vmatpush.bf16.msra.mxu0 %v5133_v58 }
 0x3b1   :  { %v2445_v32 = vadd.f32 %v2444_v31, %v2356_v55 }
 0x3b2   :  { %v2625_v40 = vpop.f32.mrf.mxu1 }
 0x3b3   :  { %v2534_v5 = vadd.f32 %v2533_v53, %v2445_v32  ;;  %2901 = vmatmul.bf16.gmra.mxu2 %v8494_v48 }
 0x3b4   :  { %2990 = vmatmul.bf16.gmra.mxu3 %v7534_v42 }
 0x3b5   :  { %v2623_v39 = vadd.f32 %v2622_v62, %v2534_v5 }
 0x3b6   :  { %v2358_v2 = vpop.f32.mrf.mxu2 }
 0x3b7   :  { %v2695_v0 = vmax.f32 %v2623_v39, 0.0  ;;  %v2359_v27 = vadd.f32 %v2358_v2, %v7387_v28  ;;  %v2447_v24 = vpop.f32.mrf.mxu3 }
 0x3b8   :  { %v2538_v60 = vpop.f32.mrf.mxu0 }
 0x3b9   :  { %v2448_v45 = vadd.f32 %v2447_v24, %v2359_v27  ;;  %v7607_v41 = vpack.c.bf16 %v2695_v0, %v2693_v14  ;;  %v8496_v0 = vld [vmem:[#allocation41_spill] sm:$0xff] }
 0x3ba   :  { %v2627_v34 = vpop.f32.mrf.mxu1 }
 0x3bb   :  { %v2537_v50 = vadd.f32 %v2536_v19, %v2448_v45 }
 0x3bd   :  { %v2626_v28 = vadd.f32 %v2625_v40, %v2537_v50 }
 0x3be   :  { %v2360_v63 = vpop.f32.mrf.mxu2 }
 0x3bf   :  { %v2361_v42 = vadd.f32 %v2360_v63, %v7395_v44  ;;  %v2449_v13 = vpop.f32.mrf.mxu3  ;;  %v2697_v26 = vmax.f32 %v2626_v28, 0.0 }
 0x3c0   :  { %v2541_v9 = vpop.f32.mrf.mxu0 }
 0x3c1   :  { %v2450_v20 = vadd.f32 %v2449_v13, %v2361_v42 }
 0x3c2   :  { %v2630_v11 = vpop.f32.mrf.mxu1 }
 0x3c3   :  { %v2539_v47 = vadd.f32 %v2538_v60, %v2450_v20  ;;  %2906 = vmatmul.bf16.gmra.mxu2 %v8495_v15 }
 0x3c4   :  { %2995 = vmatmul.bf16.gmra.mxu3 %v7545_v61 }
 0x3c5   :  { %v2628_v59 = vadd.f32 %v2627_v34, %v2539_v47 }
 0x3c6   :  { %v2363_v53 = vpop.f32.mrf.mxu2 }
 0x3c7   :  { %v2699_v62 = vmax.f32 %v2628_v59, 0.0  ;;  %v2364_v44 = vadd.f32 %v2363_v53, %v7407_v17  ;;  %v2452_v36 = vpop.f32.mrf.mxu3  ;;  %v5144_v59 = vld [vmem:[%s8226_s7 + $0x28] sm:$0xff] }
 0x3c8   :  { %v2543_v43 = vpop.f32.mrf.mxu0  ;;  %3389 = vmatpush.bf16.msra.mxu1 %v5144_v59 }
 0x3c9   :  { %v2453_v55 = vadd.f32 %v2452_v36, %v2364_v44  ;;  %v7616_v31 = vpack.c.bf16 %v2699_v62, %v2697_v26 }
 0x3ca   :  { %v2632_v19 = vpop.f32.mrf.mxu1 }
 0x3cb   :  { %v2542_v40 = vadd.f32 %v2541_v9, %v2453_v55 }
 0x3cd   :  { %v2631_v2 = vadd.f32 %v2630_v11, %v2542_v40 }
 0x3ce   :  { %v2365_v32 = vpop.f32.mrf.mxu2 }
 0x3cf   :  { %v2366_v61 = vadd.f32 %v2365_v32, %v7415_v54  ;;  %v2454_v3 = vpop.f32.mrf.mxu3  ;;  %v2701_v24 = vmax.f32 %v2631_v2, 0.0  ;;  %v5132_v54 = vld [vmem:[%s8225_s5 + $0x8] sm:$0xff] }
 0x3d0   :  { %v2546_v5 = vpop.f32.mrf.mxu0  ;;  %3188 = vmatpush.bf16.msra.mxu0 %v5132_v54 }
 0x3d1   :  { %v2455_v48 = vadd.f32 %v2454_v3, %v2366_v61 }
 0x3d2   :  { %v2635_v39 = vpop.f32.mrf.mxu1 }
 0x3d3   :  { %v2544_v14 = vadd.f32 %v2543_v43, %v2455_v48  ;;  %2911 = vmatmul.bf16.gmra.mxu2 %v8496_v0  ;;  %v8498_v0 = vld [vmem:[#allocation19_spill] sm:$0xff] }
 0x3d4   :  { %3000 = vmatmul.bf16.gmra.mxu3 %v7559_v35 }
 0x3d5   :  { %v2633_v17 = vadd.f32 %v2632_v19, %v2544_v14 }
 0x3d6   :  { %v2368_v27 = vpop.f32.mrf.mxu2 }
 0x3d7   :  { %v2703_v60 = vmax.f32 %v2633_v17, 0.0  ;;  %v2369_v45 = vadd.f32 %v2368_v27, %v7421_v33  ;;  %v2457_v58 = vpop.f32.mrf.mxu3 }
 0x3d8   :  { %v2548_v34 = vpop.f32.mrf.mxu0 }
 0x3d9   :  { %v2458_v63 = vadd.f32 %v2457_v58, %v2369_v45  ;;  %v7625_v50 = vpack.c.bf16 %v2703_v60, %v2701_v24 }
 0x3da   :  { %v2637_v42 = vpop.f32.mrf.mxu1 }
 0x3db   :  { %v2547_v9 = vadd.f32 %v2546_v5, %v2458_v63 }
 0x3dd   :  { %v2636_v33 = vadd.f32 %v2635_v39, %v2547_v9 }
 0x3de   :  { %v2370_v13 = vpop.f32.mrf.mxu2 }
 0x3df   :  { %v2371_v35 = vadd.f32 %v2370_v13, %v7429_v46  ;;  %v2459_v20 = vpop.f32.mrf.mxu3  ;;  %v2705_v62 = vmax.f32 %v2636_v33, 0.0  ;;  %v5143_v33 = vld [vmem:[%s8226_s7 + $0x20] sm:$0xff] }
 0x3e0   :  { %v2551_v11 = vpop.f32.mrf.mxu0  ;;  %3390 = vmatpush.bf16.msra.mxu1 %v5143_v33 }
 0x3e1   :  { %v2460_v28 = vadd.f32 %v2459_v20, %v2371_v35 }
 0x3e2   :  { %v2640_v47 = vpop.f32.mrf.mxu1 }
 0x3e3   :  { %v2549_v15 = vadd.f32 %v2548_v34, %v2460_v28  ;;  %2916 = vmatmul.bf16.gmra.mxu2 %v8497_v49  ;;  %v8499_v28 = vld [vmem:[#allocation52_spill] sm:$0xff] }
 0x3e4   :  { %3005 = vmatmul.bf16.gmra.mxu3 %v7570_v22 }
 0x3e5   :  { %v2638_v53 = vadd.f32 %v2637_v42, %v2549_v15 }
 0x3e6   :  { %v2373_v26 = vpop.f32.mrf.mxu2 }
 0x3e7   :  { %v2707_v44 = vmax.f32 %v2638_v53, 0.0  ;;  %v2374_v46 = vadd.f32 %v2373_v26, %v7441_v38  ;;  %v2462_v36 = vpop.f32.mrf.mxu3 }
 0x3e8   :  { %v2553_v43 = vpop.f32.mrf.mxu0 }
 0x3e9   :  { %v2463_v55 = vadd.f32 %v2462_v36, %v2374_v46  ;;  %v7634_v19 = vpack.c.bf16 %v2707_v44, %v2705_v62 }
 0x3ea   :  { %v2642_v32 = vpop.f32.mrf.mxu1 }
 0x3eb   :  { %v2552_v61 = vadd.f32 %v2551_v11, %v2463_v55 }
 0x3ed   :  { %v2641_v2 = vadd.f32 %v2640_v47, %v2552_v61 }
 0x3ee   :  { %v2375_v40 = vpop.f32.mrf.mxu2 }
 0x3ef   :  { %v2376_v22 = vadd.f32 %v2375_v40, %v7449_v12  ;;  %v2464_v3 = vpop.f32.mrf.mxu3  ;;  %v2709_v27 = vmax.f32 %v2641_v2, 0.0  ;;  %v5131_v12 = vld [vmem:[%s8225_s5] sm:$0xff] }
 0x3f0   :  { %v2556_v5 = vpop.f32.mrf.mxu0  ;;  %3189 = vmatpush.bf16.msra.mxu0 %v5131_v12 }
 0x3f1   :  { %v2465_v48 = vadd.f32 %v2464_v3, %v2376_v22 }
 0x3f2   :  { %v2645_v39 = vpop.f32.mrf.mxu1 }
 0x3f3   :  { %v2554_v14 = vadd.f32 %v2553_v43, %v2465_v48  ;;  %2921 = vmatmul.bf16.gmra.mxu2 %v8498_v0 }
 0x3f4   :  { %3010 = vmatmul.bf16.gmra.mxu3 %v7578_v29 }
 0x3f5   :  { %v2643_v38 = vadd.f32 %v2642_v32, %v2554_v14 }
 0x3f6   :  { %v2378_v17 = vpop.f32.mrf.mxu2 }
 0x3f7   :  { %v2711_v24 = vmax.f32 %v2643_v38, 0.0  ;;  %v2379_v60 = vadd.f32 %v2378_v17, %v7455_v7  ;;  %v2467_v45 = vpop.f32.mrf.mxu3 }
 0x3f8   :  { %v2558_v58 = vpop.f32.mrf.mxu0 }
 0x3f9   :  { %v2468_v34 = vadd.f32 %v2467_v45, %v2379_v60  ;;  %v7643_v63 = vpack.c.bf16 %v2711_v24, %v2709_v27 }
 0x3fa   :  { %v2647_v54 = vpop.f32.mrf.mxu1 }
 0x3fb   :  { %v2557_v13 = vadd.f32 %v2556_v5, %v2468_v34 }
 0x3fd   :  { %v2646_v11 = vadd.f32 %v2645_v39, %v2557_v13 }
 0x3fe   :  { %v2380_v42 = vpop.f32.mrf.mxu2 }
 0x3ff   :  { %v2381_v29 = vadd.f32 %v2380_v42, %v7463_v21  ;;  %v2469_v9 = vpop.f32.mrf.mxu3  ;;  %v2713_v59 = vmax.f32 %v2646_v11, 0.0 }
 0x400   :  { %v2561_v20 = vpop.f32.mrf.mxu0 }
 0x401   :  { %v2470_v35 = vadd.f32 %v2469_v9, %v2381_v29 }
 0x402   :  { %v2650_v47 = vpop.f32.mrf.mxu1 }
 0x403   :  { %v2559_v7 = vadd.f32 %v2558_v58, %v2470_v35  ;;  %2926 = vmatmul.bf16.gmra.mxu2 %v8499_v28 }
 0x404   :  { %3015 = vmatmul.bf16.gmra.mxu3 %v7589_v52 }
 0x405   :  { %v2648_v15 = vadd.f32 %v2647_v54, %v2559_v7 }
 0x406   :  { %v2383_v49 = vpop.f32.mrf.mxu2 }
 0x407   :  { %v2715_v53 = vmax.f32 %v2648_v15, 0.0  ;;  %v2384_v21 = vadd.f32 %v2383_v49, %v7475_v18  ;;  %v2472_v26 = vpop.f32.mrf.mxu3 }
 0x408   :  { %v2563_v46 = vpop.f32.mrf.mxu0 }
 0x409   :  { %v2473_v62 = vadd.f32 %v2472_v26, %v2384_v21  ;;  %v7652_v44 = vpack.c.bf16 %v2715_v53, %v2713_v59 }
 0x40a   :  { %v2652_v43 = vpop.f32.mrf.mxu1 }
 0x40b   :  { %v2562_v52 = vadd.f32 %v2561_v20, %v2473_v62 }
 0x40d   :  { %v2651_v61 = vadd.f32 %v2650_v47, %v2562_v52 }
 0x40e   :  { %v2385_v36 = vpop.f32.mrf.mxu2 }
 0x40f   :  { %v2386_v55 = vadd.f32 %v2385_v36, %v7483_v10  ;;  %v2474_v32 = vpop.f32.mrf.mxu3  ;;  %v2717_v48 = vmax.f32 %v2651_v61, 0.0 }
 0x410   :  { %v2566_v5 = vpop.f32.mrf.mxu0 }
 0x411   :  { %v2475_v40 = vadd.f32 %v2474_v32, %v2386_v55 }
 0x412   :  { %v2655_v0 = vpop.f32.mrf.mxu1 }
 0x413   :  { %v2564_v22 = vadd.f32 %v2563_v46, %v2475_v40  ;;  %2931 = vmatmul.bf16.gmra.mxu2 %v7359_v57 }
 0x414   :  { %3020 = vmatmul.bf16.gmra.mxu3 %v7598_v37 }
 0x415   :  { %v2653_v3 = vadd.f32 %v2652_v43, %v2564_v22 }
 0x416   :  { %v2388_v18 = vpop.f32.mrf.mxu2 }
 0x417   :  { %v2719_v39 = vmax.f32 %v2653_v3, 0.0  ;;  %v2389_v2 = vadd.f32 %v2388_v18, %v7492_v4  ;;  %v2477_v14 = vpop.f32.mrf.mxu3  ;;  %v5142_v4 = vld [vmem:[%s8226_s7 + $0x18] sm:$0xff] }
 0x418   :  { %v2568_v57 = vpop.f32.mrf.mxu0  ;;  %3391 = vmatpush.bf16.msra.mxu1 %v5142_v4 }
 0x419   :  { %v2478_v38 = vadd.f32 %v2477_v14, %v2389_v2  ;;  %v7658_v17 = vpack.c.bf16 %v2719_v39, %v2717_v48 }
 0x41a   :  { %v2657_v37 = vpop.f32.mrf.mxu1 }
 0x41b   :  { %v2567_v27 = vadd.f32 %v2566_v5, %v2478_v38 }
 0x41d   :  { %v2656_v58 = vadd.f32 %v2655_v0, %v2567_v27 }
 0x41e   :  { %v2390_v10 = vpop.f32.mrf.mxu2 }
 0x41f   :  { %v2391_v24 = vadd.f32 %v2390_v10, %v7500_v25  ;;  %v2479_v60 = vpop.f32.mrf.mxu3  ;;  %v2721_v42 = vmax.f32 %v2656_v58, 0.0  ;;  %v7669_v25 = vld [vmem:[%s8227_s4] ss:$0 sm:$0xff] }
 0x421   :  { %v2480_v45 = vadd.f32 %v2479_v60, %v2391_v24 }
 0x423   :  { %v2569_v34 = vadd.f32 %v2568_v57, %v2480_v45  ;;  %2936 = vmatmul.bf16.gmra.mxu2 %v7379_v16 }
 0x424   :  { %3025 = vmatmul.bf16.gmra.mxu3 %v7607_v41 }
 0x425   :  { %v2658_v12 = vadd.f32 %v2657_v37, %v2569_v34 }
 0x426   :  { %v2897_v54 = vpop.f32.mrf.mxu2 }
 0x427   :  { %v2723_v13 = vmax.f32 %v2658_v12, 0.0  ;;  %v2986_v29 = vpop.f32.mrf.mxu3  ;;  %v2898_v16 = vadd.f32 %v7669_v25, %v2897_v54 }
 0x429   :  { %v7671_v9 = vpack.c.bf16 %v2723_v13, %v2721_v42  ;;  %v2987_v35 = vadd.f32 %v2986_v29, %v2898_v16 }
 0x42b   :  { %v3066_v28 = vmax.f32 %v2987_v35, 0.0 }
 0x42e   :  { %v2899_v41 = vpop.f32.mrf.mxu2 }
 0x42f   :  { %v2900_v20 = vadd.f32 %v7669_v25, %v2899_v41  ;;  %v2988_v11 = vpop.f32.mrf.mxu3 }
 0x431   :  { %v2989_v7 = vadd.f32 %v2988_v11, %v2900_v20 }
 0x433   :  { %v3067_v47 = vmax.f32 %v2989_v7, 0.0  ;;  %2941 = vmatmul.bf16.gmra.mxu2 %v7393_v6  ;;  %v5141_v6 = vld [vmem:[%s8226_s7 + $0x10] sm:$0xff] }
 0x434   :  { %3030 = vmatmul.bf16.gmra.mxu3 %v7616_v31  ;;  %3392 = vmatpush.bf16.msra.mxu1 %v5141_v6 }
 0x435   :  { %v3098_v33 = vpack.c.bf16 %v3067_v47, %v3066_v28 }
 0x436   :  { %v2902_v15 = vpop.f32.mrf.mxu2 }
 0x437   :  { %v2991_v49 = vpop.f32.mrf.mxu3  ;;  %3190 = vmatmul.bf16.vlgmr.msra.gmra.mxu0 %v3098_v33  ;;  %v2903_v59 = vadd.f32 %v7669_v25, %v2902_v15 }
 0x439   :  { %v2992_v21 = vadd.f32 %v2991_v49, %v2903_v59 }
 0x43b   :  { %v3068_v36 = vmax.f32 %v2992_v21, 0.0 }
 0x43e   :  { %v2904_v53 = vpop.f32.mrf.mxu2 }
 0x43f   :  { %v2905_v26 = vadd.f32 %v7669_v25, %v2904_v53  ;;  %v2993_v62 = vpop.f32.mrf.mxu3 }
 0x441   :  { %v2994_v46 = vadd.f32 %v2993_v62, %v2905_v26 }
 0x443   :  { %v3069_v43 = vmax.f32 %v2994_v46, 0.0  ;;  %2946 = vmatmul.bf16.gmra.mxu2 %v7413_v56 }
 0x444   :  { %3035 = vmatmul.bf16.gmra.mxu3 %v7625_v50 }
 0x445   :  { %v3099_v31 = vpack.c.bf16 %v3069_v43, %v3068_v36 }
 0x446   :  { %v2907_v52 = vpop.f32.mrf.mxu2 }
 0x447   :  { %v2996_v55 = vpop.f32.mrf.mxu3  ;;  %3195 = vmatmul.bf16.gmra.mxu0 %v3099_v31  ;;  %v2908_v32 = vadd.f32 %v7669_v25, %v2907_v52 }
 0x449   :  { %v2997_v61 = vadd.f32 %v2996_v55, %v2908_v32 }
 0x44b   :  { %v3070_v56 = vmax.f32 %v2997_v61, 0.0 }
 0x44e   :  { %v2909_v40 = vpop.f32.mrf.mxu2 }
 0x44f   :  { %v2910_v22 = vadd.f32 %v7669_v25, %v2909_v40  ;;  %v2998_v3 = vpop.f32.mrf.mxu3 }
 0x451   :  { %v2999_v18 = vadd.f32 %v2998_v3, %v2910_v22 }
 0x453   :  { %v3071_v5 = vmax.f32 %v2999_v18, 0.0  ;;  %2951 = vmatmul.bf16.gmra.mxu2 %v7427_v30 }
 0x454   :  { %3040 = vmatmul.bf16.gmra.mxu3 %v7634_v19  ;;  %v5140_v19 = vld [vmem:[%s8226_s7 + $0x8] sm:$0xff] }
 0x455   :  { %v3100_v50 = vpack.c.bf16 %v3071_v5, %v3070_v56  ;;  %3393 = vmatpush.bf16.msra.mxu1 %v5140_v19 }
 0x456   :  { %v2912_v48 = vpop.f32.mrf.mxu2 }
 0x457   :  { %v3001_v39 = vpop.f32.mrf.mxu3  ;;  %3200 = vmatmul.bf16.gmra.mxu0 %v3100_v50  ;;  %v2913_v2 = vadd.f32 %v7669_v25, %v2912_v48 }
 0x459   :  { %v3002_v0 = vadd.f32 %v3001_v39, %v2913_v2 }
 0x45b   :  { %v3072_v24 = vmax.f32 %v3002_v0, 0.0 }
 0x45e   :  { %v2914_v14 = vpop.f32.mrf.mxu2 }
 0x45f   :  { %v2915_v38 = vadd.f32 %v7669_v25, %v2914_v14  ;;  %v3003_v10 = vpop.f32.mrf.mxu3 }
 0x461   :  { %v3004_v27 = vadd.f32 %v3003_v10, %v2915_v38 }
 0x463   :  { %v3073_v60 = vmax.f32 %v3004_v27, 0.0  ;;  %2956 = vmatmul.bf16.gmra.mxu2 %v7447_v51  ;;  %v7717_v27 = vld [vmem:[%s8228_s6] ss:$0 sm:$0xff] }
 0x464   :  { %3045 = vmatmul.bf16.gmra.mxu3 %v7643_v63 }
 0x465   :  { %v3101_v30 = vpack.c.bf16 %v3073_v60, %v3072_v24 }
 0x466   :  { %v2917_v57 = vpop.f32.mrf.mxu2 }
 0x467   :  { %v3006_v45 = vpop.f32.mrf.mxu3  ;;  %3205 = vmatmul.bf16.gmra.mxu0 %v3101_v30  ;;  %v2918_v37 = vadd.f32 %v7669_v25, %v2917_v57 }
 0x469   :  { %v3007_v34 = vadd.f32 %v3006_v45, %v2918_v37 }
 0x46b   :  { %v3074_v51 = vmax.f32 %v3007_v34, 0.0 }
 0x46e   :  { %v2919_v58 = vpop.f32.mrf.mxu2 }
 0x46f   :  { %v2920_v4 = vadd.f32 %v7669_v25, %v2919_v58  ;;  %v3008_v12 = vpop.f32.mrf.mxu3 }
 0x471   :  { %v3009_v54 = vadd.f32 %v3008_v12, %v2920_v4 }
 0x473   :  { %v3075_v42 = vmax.f32 %v3009_v54, 0.0  ;;  %2961 = vmatmul.bf16.gmra.mxu2 %v7461_v1 }
 0x474   :  { %3050 = vmatmul.bf16.gmra.mxu3 %v7652_v44  ;;  %v5139_v44 = vld [vmem:[%s8226_s7] sm:$0xff] }
 0x475   :  { %v3102_v63 = vpack.c.bf16 %v3075_v42, %v3074_v51  ;;  %3394 = vmatpush.bf16.msra.mxu1 %v5139_v44 }
 0x476   :  { %v2922_v13 = vpop.f32.mrf.mxu2 }
 0x477   :  { %v3011_v29 = vpop.f32.mrf.mxu3  ;;  %3210 = vmatmul.bf16.gmra.mxu0 %v3102_v63  ;;  %v2923_v16 = vadd.f32 %v7669_v25, %v2922_v13 }
 0x479   :  { %v3012_v35 = vadd.f32 %v3011_v29, %v2923_v16 }
 0x47b   :  { %v3076_v28 = vmax.f32 %v3012_v35, 0.0 }
 0x47e   :  { %v2924_v41 = vpop.f32.mrf.mxu2 }
 0x47f   :  { %v2925_v20 = vadd.f32 %v7669_v25, %v2924_v41  ;;  %v3013_v11 = vpop.f32.mrf.mxu3 }
 0x481   :  { %v3014_v7 = vadd.f32 %v3013_v11, %v2925_v20 }
 0x483   :  { %v3077_v47 = vmax.f32 %v3014_v7, 0.0  ;;  %2966 = vmatmul.bf16.gmra.mxu2 %v7481_v23 }
 0x484   :  { %3055 = vmatmul.bf16.gmra.mxu3 %v7658_v17 }
 0x485   :  { %v3103_v1 = vpack.c.bf16 %v3077_v47, %v3076_v28 }
 0x486   :  { %v2927_v33 = vpop.f32.mrf.mxu2 }
 0x487   :  { %v3016_v15 = vpop.f32.mrf.mxu3  ;;  %3215 = vmatmul.bf16.gmra.mxu0 %v3103_v1  ;;  %v2928_v49 = vadd.f32 %v7669_v25, %v2927_v33 }
 0x489   :  { %v3017_v53 = vadd.f32 %v3016_v15, %v2928_v49 }
 0x48b   :  { %v3078_v23 = vmax.f32 %v3017_v53, 0.0 }
 0x48e   :  { %v2929_v59 = vpop.f32.mrf.mxu2 }
 0x48f   :  { %v2930_v21 = vadd.f32 %v7669_v25, %v2929_v59  ;;  %v3018_v26 = vpop.f32.mrf.mxu3 }
 0x491   :  { %v3019_v62 = vadd.f32 %v3018_v26, %v2930_v21 }
 0x493   :  { %v3079_v46 = vmax.f32 %v3019_v62, 0.0  ;;  %2971 = vmatmul.bf16.gmra.mxu2 %v7498_v8 }
 0x494   :  { %3060 = vmatmul.bf16.gmra.mxu3 %v7671_v9 }
 0x495   :  { %v3104_v17 = vpack.c.bf16 %v3079_v46, %v3078_v23 }
 0x496   :  { %v2932_v36 = vpop.f32.mrf.mxu2 }
 0x497   :  { %v3021_v43 = vpop.f32.mrf.mxu3  ;;  %3220 = vmatmul.bf16.gmra.mxu0 %v3104_v17  ;;  %v2933_v6 = vadd.f32 %v7669_v25, %v2932_v36 }
 0x499   :  { %v3022_v52 = vadd.f32 %v3021_v43, %v2933_v6 }
 0x49b   :  { %v3080_v61 = vmax.f32 %v3022_v52, 0.0 }
 0x49e   :  { %v2934_v31 = vpop.f32.mrf.mxu2 }
 0x49f   :  { %v2935_v55 = vadd.f32 %v7669_v25, %v2934_v31  ;;  %v3023_v32 = vpop.f32.mrf.mxu3 }
 0x4a1   :  { %v3024_v40 = vadd.f32 %v3023_v32, %v2935_v55 }
 0x4a3   :  { %v3081_v22 = vmax.f32 %v3024_v40, 0.0 }
 0x4a5   :  { %v3105_v3 = vpack.c.bf16 %v3081_v22, %v3080_v61 }
 0x4a6   :  { %v2937_v18 = vpop.f32.mrf.mxu2 }
 0x4a7   :  { %v3026_v56 = vpop.f32.mrf.mxu3  ;;  %3225 = vmatmul.bf16.gmra.mxu0 %v3105_v3  ;;  %v2938_v8 = vadd.f32 %v7669_v25, %v2937_v18 }
 0x4a9   :  { %v3027_v5 = vadd.f32 %v3026_v56, %v2938_v8 }
 0x4ab   :  { %v3082_v2 = vmax.f32 %v3027_v5, 0.0 }
 0x4ae   :  { %v2939_v9 = vpop.f32.mrf.mxu2 }
 0x4af   :  { %v2940_v50 = vadd.f32 %v7669_v25, %v2939_v9  ;;  %v3028_v48 = vpop.f32.mrf.mxu3 }
 0x4b1   :  { %v3029_v39 = vadd.f32 %v3028_v48, %v2940_v50 }
 0x4b3   :  { %v3083_v14 = vmax.f32 %v3029_v39, 0.0 }
 0x4b4   :  { %v3191_v0 = vpop.f32.mrf.mxu0 }
 0x4b5   :  { %v3106_v38 = vpack.c.bf16 %v3083_v14, %v3082_v2  ;;  %v3192_v60 = vadd.f32 %v7717_v27, %v3191_v0 }
 0x4b6   :  { %v2942_v10 = vpop.f32.mrf.mxu2 }
 0x4b7   :  { %v3031_v24 = vpop.f32.mrf.mxu3  ;;  %3230 = vmatmul.bf16.gmra.mxu0 %v3106_v38  ;;  %v2943_v30 = vadd.f32 %v7669_v25, %v2942_v10  ;;  %v3271_v37 = vmax.f32 %v3192_v60, 0.0 }
 0x4b9   :  { %v3032_v58 = vadd.f32 %v3031_v24, %v2943_v30 }
 0x4bb   :  { %v3084_v42 = vmax.f32 %v3032_v58, 0.0 }
 0x4bc   :  { %v3193_v19 = vpop.f32.mrf.mxu0 }
 0x4bd   :  { %v3194_v57 = vadd.f32 %v7717_v27, %v3193_v19 }
 0x4be   :  { %v2944_v45 = vpop.f32.mrf.mxu2 }
 0x4bf   :  { %v3272_v34 = vmax.f32 %v3194_v57, 0.0  ;;  %v2945_v4 = vadd.f32 %v7669_v25, %v2944_v45  ;;  %v3033_v12 = vpop.f32.mrf.mxu3 }
 0x4c1   :  { %v3303_v54 = vpack.c.bf16 %v3272_v34, %v3271_v37  ;;  %v3034_v51 = vadd.f32 %v3033_v12, %v2945_v4 }
 0x4c3   :  { %v3085_v63 = vmax.f32 %v3034_v51, 0.0  ;;  %3395 = vmatmul.bf16.vlgmr.msra.gmra.mxu1 %v3303_v54 }
 0x4c4   :  { %v3196_v13 = vpop.f32.mrf.mxu0 }
 0x4c5   :  { %v3107_v29 = vpack.c.bf16 %v3085_v63, %v3084_v42  ;;  %v3197_v35 = vadd.f32 %v7717_v27, %v3196_v13 }
 0x4c6   :  { %v2947_v16 = vpop.f32.mrf.mxu2 }
 0x4c7   :  { %v3036_v41 = vpop.f32.mrf.mxu3  ;;  %3235 = vmatmul.bf16.gmra.mxu0 %v3107_v29  ;;  %v2948_v20 = vadd.f32 %v7669_v25, %v2947_v16  ;;  %v3273_v47 = vmax.f32 %v3197_v35, 0.0 }
 0x4c9   :  { %v3037_v1 = vadd.f32 %v3036_v41, %v2948_v20 }
 0x4cb   :  { %v3086_v53 = vmax.f32 %v3037_v1, 0.0 }
 0x4cc   :  { %v3198_v11 = vpop.f32.mrf.mxu0 }
 0x4cd   :  { %v3199_v7 = vadd.f32 %v7717_v27, %v3198_v11 }
 0x4ce   :  { %v2949_v28 = vpop.f32.mrf.mxu2 }
 0x4cf   :  { %v3274_v44 = vmax.f32 %v3199_v7, 0.0  ;;  %v2950_v33 = vadd.f32 %v7669_v25, %v2949_v28  ;;  %v3038_v15 = vpop.f32.mrf.mxu3 }
 0x4d1   :  { %v3039_v49 = vadd.f32 %v3038_v15, %v2950_v33  ;;  %v3304_v59 = vpack.c.bf16 %v3274_v44, %v3273_v47 }
 0x4d3   :  { %v3087_v21 = vmax.f32 %v3039_v49, 0.0  ;;  %3400 = vmatmul.bf16.gmra.mxu1 %v3304_v59 }
 0x4d4   :  { %v3201_v26 = vpop.f32.mrf.mxu0 }
 0x4d5   :  { %v3108_v62 = vpack.c.bf16 %v3087_v21, %v3086_v53  ;;  %v3202_v17 = vadd.f32 %v7717_v27, %v3201_v26 }
 0x4d6   :  { %v2952_v23 = vpop.f32.mrf.mxu2 }
 0x4d7   :  { %v3041_v46 = vpop.f32.mrf.mxu3  ;;  %3240 = vmatmul.bf16.gmra.mxu0 %v3108_v62  ;;  %v2953_v36 = vadd.f32 %v7669_v25, %v2952_v23  ;;  %v3275_v52 = vmax.f32 %v3202_v17, 0.0 }
 0x4d9   :  { %v3042_v55 = vadd.f32 %v3041_v46, %v2953_v36 }
 0x4db   :  { %v3088_v18 = vmax.f32 %v3042_v55, 0.0 }
 0x4dc   :  { %v3203_v43 = vpop.f32.mrf.mxu0 }
 0x4dd   :  { %v3204_v6 = vadd.f32 %v7717_v27, %v3203_v43 }
 0x4de   :  { %v2954_v31 = vpop.f32.mrf.mxu2 }
 0x4df   :  { %v3276_v32 = vmax.f32 %v3204_v6, 0.0  ;;  %v2955_v40 = vadd.f32 %v7669_v25, %v2954_v31  ;;  %v3043_v61 = vpop.f32.mrf.mxu3 }
 0x4e1   :  { %v3044_v22 = vadd.f32 %v3043_v61, %v2955_v40  ;;  %v3305_v3 = vpack.c.bf16 %v3276_v32, %v3275_v52 }
 0x4e3   :  { %v3089_v56 = vmax.f32 %v3044_v22, 0.0  ;;  %3405 = vmatmul.bf16.gmra.mxu1 %v3305_v3 }
 0x4e4   :  { %v3206_v8 = vpop.f32.mrf.mxu0 }
 0x4e5   :  { %v3109_v9 = vpack.c.bf16 %v3089_v56, %v3088_v18  ;;  %v3207_v48 = vadd.f32 %v7717_v27, %v3206_v8 }
 0x4e6   :  { %v2957_v5 = vpop.f32.mrf.mxu2 }
 0x4e7   :  { %v3046_v50 = vpop.f32.mrf.mxu3  ;;  %3245 = vmatmul.bf16.gmra.mxu0 %v3109_v9  ;;  %v2958_v39 = vadd.f32 %v7669_v25, %v2957_v5  ;;  %v3277_v38 = vmax.f32 %v3207_v48, 0.0 }
 0x4e9   :  { %v3047_v10 = vadd.f32 %v3046_v50, %v2958_v39 }
 0x4eb   :  { %v3090_v45 = vmax.f32 %v3047_v10, 0.0 }
 0x4ec   :  { %v3208_v2 = vpop.f32.mrf.mxu0 }
 0x4ed   :  { %v3209_v14 = vadd.f32 %v7717_v27, %v3208_v2 }
 0x4ee   :  { %v2959_v0 = vpop.f32.mrf.mxu2 }
 0x4ef   :  { %v3278_v24 = vmax.f32 %v3209_v14, 0.0  ;;  %v2960_v60 = vadd.f32 %v7669_v25, %v2959_v0  ;;  %v3048_v30 = vpop.f32.mrf.mxu3 }
 0x4f1   :  { %v3049_v19 = vadd.f32 %v3048_v30, %v2960_v60  ;;  %v3306_v57 = vpack.c.bf16 %v3278_v24, %v3277_v38 }
 0x4f3   :  { %v3091_v37 = vmax.f32 %v3049_v19, 0.0  ;;  %3410 = vmatmul.bf16.gmra.mxu1 %v3306_v57 }
 0x4f4   :  { %v3211_v58 = vpop.f32.mrf.mxu0 }
 0x4f5   :  { %v3110_v34 = vpack.c.bf16 %v3091_v37, %v3090_v45  ;;  %v3212_v54 = vadd.f32 %v7717_v27, %v3211_v58 }
 0x4f6   :  { %v2962_v4 = vpop.f32.mrf.mxu2 }
 0x4f7   :  { %v3051_v12 = vpop.f32.mrf.mxu3  ;;  %3250 = vmatmul.bf16.gmra.mxu0 %v3110_v34  ;;  %v2963_v51 = vadd.f32 %v7669_v25, %v2962_v4  ;;  %v3279_v29 = vmax.f32 %v3212_v54, 0.0 }
 0x4f9   :  { %v3052_v16 = vadd.f32 %v3051_v12, %v2963_v51  ;;  %v7756_v51 = vld [vmem:[%s8229_s8] ss:$0 sm:$0xff] }
 0x4fb   :  { %v3092_v28 = vmax.f32 %v3052_v16, 0.0 }
 0x4fc   :  { %v3213_v42 = vpop.f32.mrf.mxu0 }
 0x4fd   :  { %v3214_v63 = vadd.f32 %v7717_v27, %v3213_v42 }
 0x4fe   :  { %v2964_v13 = vpop.f32.mrf.mxu2 }
 0x4ff   :  { %v3280_v41 = vmax.f32 %v3214_v63, 0.0  ;;  %v2965_v35 = vadd.f32 %v7669_v25, %v2964_v13  ;;  %v3053_v20 = vpop.f32.mrf.mxu3 }
 0x501   :  { %v3307_v11 = vpack.c.bf16 %v3280_v41, %v3279_v29  ;;  %v3054_v7 = vadd.f32 %v3053_v20, %v2965_v35 }
 0x503   :  { %v3093_v47 = vmax.f32 %v3054_v7, 0.0  ;;  %3415 = vmatmul.bf16.gmra.mxu1 %v3307_v11 }
 0x504   :  { %v3216_v1 = vpop.f32.mrf.mxu0 }
 0x505   :  { %v3111_v44 = vpack.c.bf16 %v3093_v47, %v3092_v28  ;;  %v3217_v49 = vadd.f32 %v7717_v27, %v3216_v1 }
 0x506   :  { %v2967_v33 = vpop.f32.mrf.mxu2 }
 0x507   :  { %v3056_v15 = vpop.f32.mrf.mxu3  ;;  %3255 = vmatmul.bf16.gmra.mxu0 %v3111_v44  ;;  %v2968_v59 = vadd.f32 %v7669_v25, %v2967_v33  ;;  %v3281_v62 = vmax.f32 %v3217_v49, 0.0 }
 0x509   :  { %v3057_v23 = vadd.f32 %v3056_v15, %v2968_v59 }
 0x50b   :  { %v3094_v31 = vmax.f32 %v3057_v23, 0.0 }
 0x50c   :  { %v3218_v53 = vpop.f32.mrf.mxu0 }
 0x50d   :  { %v3219_v21 = vadd.f32 %v7717_v27, %v3218_v53 }
 0x50e   :  { %v2969_v26 = vpop.f32.mrf.mxu2 }
 0x50f   :  { %v3282_v46 = vmax.f32 %v3219_v21, 0.0  ;;  %v2970_v17 = vadd.f32 %v7669_v25, %v2969_v26  ;;  %v3058_v36 = vpop.f32.mrf.mxu3 }
 0x511   :  { %v3308_v43 = vpack.c.bf16 %v3282_v46, %v3281_v62  ;;  %v3059_v6 = vadd.f32 %v3058_v36, %v2970_v17 }
 0x513   :  { %v3095_v52 = vmax.f32 %v3059_v6, 0.0  ;;  %3420 = vmatmul.bf16.gmra.mxu1 %v3308_v43 }
 0x514   :  { %v3221_v55 = vpop.f32.mrf.mxu0 }
 0x515   :  { %v3112_v32 = vpack.c.bf16 %v3095_v52, %v3094_v31  ;;  %v3222_v22 = vadd.f32 %v7717_v27, %v3221_v55 }
 0x516   :  { %v2972_v40 = vpop.f32.mrf.mxu2 }
 0x517   :  { %v3061_v61 = vpop.f32.mrf.mxu3  ;;  %3260 = vmatmul.bf16.gmra.mxu0 %v3112_v32  ;;  %v2973_v3 = vadd.f32 %v7669_v25, %v2972_v40  ;;  %v3283_v9 = vmax.f32 %v3222_v22, 0.0 }
 0x519   :  { %v3062_v5 = vadd.f32 %v3061_v61, %v2973_v3 }
 0x51b   :  { %v3096_v0 = vmax.f32 %v3062_v5, 0.0 }
 0x51c   :  { %v3223_v18 = vpop.f32.mrf.mxu0 }
 0x51d   :  { %v3224_v56 = vadd.f32 %v7717_v27, %v3223_v18 }
 0x51e   :  { %v2974_v8 = vpop.f32.mrf.mxu2 }
 0x51f   :  { %v3284_v50 = vmax.f32 %v3224_v56, 0.0  ;;  %v2975_v48 = vadd.f32 %v7669_v25, %v2974_v8  ;;  %v3063_v39 = vpop.f32.mrf.mxu3  ;;  %v3476_v25 = vlaneseq }
 0x521   :  { %v3309_v2 = vpack.c.bf16 %v3284_v50, %v3283_v9  ;;  %v3064_v14 = vadd.f32 %v3063_v39, %v2975_v48  ;;  %v7750_v12 = vand.u32 127, %v3476_v25 }
 0x523   :  { %v3097_v38 = vmax.f32 %v3064_v14, 0.0  ;;  %3425 = vmatmul.bf16.gmra.mxu1 %v3309_v2  ;;  %vm3478_vm0 = vcmp.lt.s32.totalorder %v7750_v12, 10 }
 0x524   :  { %v3226_v10 = vpop.f32.mrf.mxu0 }
 0x525   :  { %v3113_v24 = vpack.c.bf16 %v3097_v38, %v3096_v0  ;;  %v3227_v60 = vadd.f32 %v7717_v27, %v3226_v10 }
 0x527   :  { %3265 = vmatmul.bf16.gmra.mxu0 %v3113_v24  ;;  %v3285_v57 = vmax.f32 %v3227_v60, 0.0 }
 0x52c   :  { %v3228_v30 = vpop.f32.mrf.mxu0 }
 0x52d   :  { %v3229_v19 = vadd.f32 %v7717_v27, %v3228_v30 }
 0x52f   :  { %v3286_v45 = vmax.f32 %v3229_v19, 0.0 }
 0x531   :  { %v3310_v37 = vpack.c.bf16 %v3286_v45, %v3285_v57 }
 0x533   :  { %3430 = vmatmul.bf16.gmra.mxu1 %v3310_v37 }
 0x534   :  { %v3231_v58 = vpop.f32.mrf.mxu0 }
 0x535   :  { %v3232_v34 = vadd.f32 %v7717_v27, %v3231_v58 }
 0x537   :  { %v3287_v42 = vmax.f32 %v3232_v34, 0.0 }
 0x53c   :  { %v3233_v4 = vpop.f32.mrf.mxu0 }
 0x53d   :  { %v3234_v54 = vadd.f32 %v7717_v27, %v3233_v4 }
 0x53f   :  { %v3288_v63 = vmax.f32 %v3234_v54, 0.0 }
 0x540   :  { %v3396_v13 = vpop.f32.mrf.mxu1 }
 0x541   :  { %v3311_v29 = vpack.c.bf16 %v3288_v63, %v3287_v42  ;;  %v3397_v16 = vadd.f32 %v7756_v51, %v3396_v13 }
 0x543   :  { %3435 = vmatmul.bf16.gmra.mxu1 %v3311_v29  ;;  %v7762_v41 = vsel %vm3478_vm0, %v3397_v16, -inf }
 0x544   :  { %v3236_v35 = vpop.f32.mrf.mxu0  ;;  %3511 = vmax.xlane.f32.xlu0 %v7762_v41 }
 0x545   :  { %v3237_v7 = vadd.f32 %v7717_v27, %v3236_v35 }
 0x547   :  { %v3289_v44 = vmax.f32 %v3237_v7, 0.0 }
 0x548   :  { %v3398_v20 = vpop.f32.mrf.mxu1 }
 0x549   :  { %v3399_v11 = vadd.f32 %v7756_v51, %v3398_v20 }
 0x54b   :  { %v7769_v28 = vsel %vm3478_vm0, %v3399_v11, -inf }
 0x54c   :  { %v3238_v47 = vpop.f32.mrf.mxu0  ;;  %3513 = vmax.xlane.f32.xlu0 %v7769_v28 }
 0x54d   :  { %v3239_v1 = vadd.f32 %v7717_v27, %v3238_v47 }
 0x54f   :  { %v3290_v33 = vmax.f32 %v3239_v1, 0.0 }
 0x550   :  { %v3401_v15 = vpop.f32.mrf.mxu1 }
 0x551   :  { %v3312_v49 = vpack.c.bf16 %v3290_v33, %v3289_v44  ;;  %v3402_v59 = vadd.f32 %v7756_v51, %v3401_v15 }
 0x553   :  { %3440 = vmatmul.bf16.gmra.mxu1 %v3312_v49  ;;  %v7776_v53 = vsel %vm3478_vm0, %v3402_v59, -inf }
 0x554   :  { %v3241_v21 = vpop.f32.mrf.mxu0  ;;  %3515 = vmax.xlane.f32.xlu1 %v7776_v53 }
 0x555   :  { %v3242_v23 = vadd.f32 %v7717_v27, %v3241_v21 }
 0x557   :  { %v3291_v43 = vmax.f32 %v3242_v23, 0.0 }
 0x558   :  { %v3403_v26 = vpop.f32.mrf.mxu1 }
 0x559   :  { %v3404_v62 = vadd.f32 %v7756_v51, %v3403_v26 }
 0x55b   :  { %v7783_v46 = vsel %vm3478_vm0, %v3404_v62, -inf }
 0x55c   :  { %v3243_v17 = vpop.f32.mrf.mxu0  ;;  %3517 = vmax.xlane.f32.xlu1 %v7783_v46 }
 0x55d   :  { %v3244_v36 = vadd.f32 %v7717_v27, %v3243_v17 }
 0x55f   :  { %v3292_v6 = vmax.f32 %v3244_v36, 0.0 }
 0x560   :  { %v3406_v31 = vpop.f32.mrf.mxu1 }
 0x561   :  { %v3313_v52 = vpack.c.bf16 %v3292_v6, %v3291_v43  ;;  %v3407_v55 = vadd.f32 %v7756_v51, %v3406_v31 }
 0x563   :  { %3445 = vmatmul.bf16.gmra.mxu1 %v3313_v52  ;;  %v7790_v32 = vsel %vm3478_vm0, %v3407_v55, -inf }
 0x564   :  { %v3246_v40 = vpop.f32.mrf.mxu0  ;;  %3519 = vmax.xlane.f32.xlu2 %v7790_v32 }
 0x565   :  { %v3247_v3 = vadd.f32 %v7717_v27, %v3246_v40 }
 0x567   :  { %v3293_v9 = vmax.f32 %v3247_v3, 0.0 }
 0x568   :  { %v3408_v61 = vpop.f32.mrf.mxu1 }
 0x569   :  { %v3409_v22 = vadd.f32 %v7756_v51, %v3408_v61 }
 0x56b   :  { %v7797_v18 = vsel %vm3478_vm0, %v3409_v22, -inf }
 0x56c   :  { %v3248_v56 = vpop.f32.mrf.mxu0  ;;  %3521 = vmax.xlane.f32.xlu2 %v7797_v18 }
 0x56d   :  { %v3249_v8 = vadd.f32 %v7717_v27, %v3248_v56 }
 0x56f   :  { %v3294_v5 = vmax.f32 %v3249_v8, 0.0 }
 0x570   :  { %v3411_v50 = vpop.f32.mrf.mxu1 }
 0x571   :  { %v3314_v48 = vpack.c.bf16 %v3294_v5, %v3293_v9  ;;  %v3412_v39 = vadd.f32 %v7756_v51, %v3411_v50 }
 0x573   :  { %3450 = vmatmul.bf16.gmra.mxu1 %v3314_v48  ;;  %v7804_v2 = vsel %vm3478_vm0, %v3412_v39, -inf }
 0x574   :  { %v3251_v14 = vpop.f32.mrf.mxu0  ;;  %3523 = vmax.xlane.f32.xlu0 %v7804_v2 }
 0x575   :  { %v3252_v10 = vadd.f32 %v7717_v27, %v3251_v14 }
 0x577   :  { %v3295_v19 = vmax.f32 %v3252_v10, 0.0 }
 0x578   :  { %v3413_v0 = vpop.f32.mrf.mxu1 }
 0x579   :  { %v3414_v38 = vadd.f32 %v7756_v51, %v3413_v0 }
 0x57b   :  { %v7811_v24 = vsel %vm3478_vm0, %v3414_v38, -inf }
 0x57c   :  { %v3253_v60 = vpop.f32.mrf.mxu0  ;;  %3525 = vmax.xlane.f32.xlu1 %v7811_v24 }
 0x57d   :  { %v3254_v30 = vadd.f32 %v7717_v27, %v3253_v60 }
 0x57f   :  { %v3296_v57 = vmax.f32 %v3254_v30, 0.0 }
 0x580   :  { %v3416_v45 = vpop.f32.mrf.mxu1 }
 0x581   :  { %v3315_v37 = vpack.c.bf16 %v3296_v57, %v3295_v19  ;;  %v3417_v58 = vadd.f32 %v7756_v51, %v3416_v45 }
 0x583   :  { %3455 = vmatmul.bf16.gmra.mxu1 %v3315_v37  ;;  %v7818_v25 = vsel %vm3478_vm0, %v3417_v58, -inf }
 0x584   :  { %v3256_v34 = vpop.f32.mrf.mxu0  ;;  %3527 = vmax.xlane.f32.xlu2 %v7818_v25 }
 0x585   :  { %v3257_v42 = vadd.f32 %v7717_v27, %v3256_v34 }
 0x587   :  { %v3297_v16 = vmax.f32 %v3257_v42, 0.0 }
 0x588   :  { %v3418_v4 = vpop.f32.mrf.mxu1 }
 0x589   :  { %v3419_v54 = vadd.f32 %v7756_v51, %v3418_v4 }
 0x58b   :  { %v7825_v63 = vsel %vm3478_vm0, %v3419_v54, -inf }
 0x58c   :  { %v3258_v13 = vpop.f32.mrf.mxu0  ;;  %3529 = vmax.xlane.f32.xlu0 %v7825_v63 }
 0x58d   :  { %v3259_v29 = vadd.f32 %v7717_v27, %v3258_v13 }
 0x58f   :  { %v3298_v35 = vmax.f32 %v3259_v29, 0.0 }
 0x590   :  { %v3421_v20 = vpop.f32.mrf.mxu1 }
 0x591   :  { %v3316_v11 = vpack.c.bf16 %v3298_v35, %v3297_v16  ;;  %v3422_v7 = vadd.f32 %v7756_v51, %v3421_v20 }
 0x593   :  { %3460 = vmatmul.bf16.gmra.mxu1 %v3316_v11  ;;  %v7832_v47 = vsel %vm3478_vm0, %v3422_v7, -inf }
 0x594   :  { %v3261_v1 = vpop.f32.mrf.mxu0  ;;  %3531 = vmax.xlane.f32.xlu1 %v7832_v47 }
 0x595   :  { %v3262_v15 = vadd.f32 %v7717_v27, %v3261_v1 }
 0x597   :  { %v3299_v26 = vmax.f32 %v3262_v15, 0.0 }
 0x598   :  { %v3423_v44 = vpop.f32.mrf.mxu1 }
 0x599   :  { %v3424_v33 = vadd.f32 %v7756_v51, %v3423_v44 }
 0x59b   :  { %v7839_v49 = vsel %vm3478_vm0, %v3424_v33, -inf }
 0x59c   :  { %v3263_v59 = vpop.f32.mrf.mxu0  ;;  %3533 = vmax.xlane.f32.xlu2 %v7839_v49 }
 0x59d   :  { %v3264_v21 = vadd.f32 %v7717_v27, %v3263_v59 }
 0x59f   :  { %v3300_v62 = vmax.f32 %v3264_v21, 0.0 }
 0x5a0   :  { %v3426_v23 = vpop.f32.mrf.mxu1 }
 0x5a1   :  { %v3317_v17 = vpack.c.bf16 %v3300_v62, %v3299_v26  ;;  %v3427_v36 = vadd.f32 %v7756_v51, %v3426_v23 }
 0x5a3   :  { %3465 = vmatmul.bf16.gmra.mxu1 %v3317_v17  ;;  %v7846_v43 = vsel %vm3478_vm0, %v3427_v36, -inf }
 0x5a4   :  { %v3266_v6 = vpop.f32.mrf.mxu0  ;;  %3535 = vmax.xlane.f32.xlu0 %v7846_v43 }
 0x5a5   :  { %v3267_v55 = vadd.f32 %v7717_v27, %v3266_v6 }
 0x5a7   :  { %v3301_v3 = vmax.f32 %v3267_v55, 0.0 }
 0x5a8   :  { %v3428_v31 = vpop.f32.mrf.mxu1 }
 0x5a9   :  { %v3429_v52 = vadd.f32 %v7756_v51, %v3428_v31 }
 0x5ab   :  { %v7853_v40 = vsel %vm3478_vm0, %v3429_v52, -inf }
 0x5ac   :  { %v3268_v61 = vpop.f32.mrf.mxu0  ;;  %3537 = vmax.xlane.f32.xlu1 %v7853_v40 }
 0x5ad   :  { %v3269_v22 = vadd.f32 %v7717_v27, %v3268_v61 }
 0x5af   :  { %v3302_v56 = vmax.f32 %v3269_v22, 0.0 }
 0x5b0   :  { %v3431_v8 = vpop.f32.mrf.mxu1 }
 0x5b1   :  { %v3318_v9 = vpack.c.bf16 %v3302_v56, %v3301_v3  ;;  %v3432_v5 = vadd.f32 %v7756_v51, %v3431_v8 }
 0x5b3   :  { %3470 = vmatmul.bf16.gmra.mxu1 %v3318_v9  ;;  %v7860_v50 = vsel %vm3478_vm0, %v3432_v5, -inf }
 0x5b4   :  { %3539 = vmax.xlane.f32.xlu2 %v7860_v50 }
 0x5b7   :  { %v3512_v48 = vpop.xlane.xlu0 %3511 }
 0x5b8   :  { %v7864_v39 = vsub.f32 %v7762_v41, %v3512_v48  ;;  %v3433_v14 = vpop.f32.mrf.mxu1 }
 0x5b9   :  { %v3434_v27 = vadd.f32 %v7756_v51, %v3433_v14 }
 0x5ba   :  { %v3607_v0 = vmul.f32 1.442695, %v7864_v39 }
 0x5bb   :  { %v7870_v38 = vsel %vm3478_vm0, %v3434_v27, -inf }
 0x5bc   :  { %5166 = vpow2.f32 %v3607_v0  ;;  %3541 = vmax.xlane.f32.xlu0 %v7870_v38 }
 0x5bf   :  { %v3514_v10 = vpop.xlane.xlu0 %3513 }
 0x5c0   :  { %v7874_v60 = vsub.f32 %v7769_v28, %v3514_v10  ;;  %v3436_v30 = vpop.f32.mrf.mxu1 }
 0x5c1   :  { %v3437_v41 = vadd.f32 %v7756_v51, %v3436_v30 }
 0x5c2   :  { %v5167_v19 = vpop.eup %5166  ;;  %v3609_v57 = vmul.f32 1.442695, %v7874_v60 }
 0x5c3   :  { %3671 = vadd.xlane.f32.xlu2 %v5167_v19  ;;  %v7880_v45 = vsel %vm3478_vm0, %v3437_v41, -inf }
 0x5c4   :  { %5168 = vpow2.f32 %v3609_v57  ;;  %3543 = vmax.xlane.f32.xlu1 %v7880_v45 }
 0x5c7   :  { %v3516_v37 = vpop.xlane.xlu1 %3515 }
 0x5c8   :  { %v7884_v58 = vsub.f32 %v7776_v53, %v3516_v37  ;;  %v3438_v28 = vpop.f32.mrf.mxu1 }
 0x5c9   :  { %v3439_v34 = vadd.f32 %v7756_v51, %v3438_v28 }
 0x5ca   :  { %v5169_v4 = vpop.eup %5168  ;;  %v3611_v54 = vmul.f32 1.442695, %v7884_v58 }
 0x5cb   :  { %3673 = vadd.xlane.f32.xlu0 %v5169_v4  ;;  %v7890_v42 = vsel %vm3478_vm0, %v3439_v34, -inf }
 0x5cc   :  { %5170 = vpow2.f32 %v3611_v54  ;;  %3545 = vmax.xlane.f32.xlu2 %v7890_v42 }
 0x5cf   :  { %v3518_v13 = vpop.xlane.xlu1 %3517 }
 0x5d0   :  { %v7894_v29 = vsub.f32 %v7783_v46, %v3518_v13  ;;  %v3441_v53 = vpop.f32.mrf.mxu1 }
 0x5d1   :  { %v3442_v16 = vadd.f32 %v7756_v51, %v3441_v53 }
 0x5d2   :  { %v5171_v35 = vpop.eup %5170  ;;  %v3613_v20 = vmul.f32 1.442695, %v7894_v29 }
 0x5d3   :  { %3675 = vadd.xlane.f32.xlu1 %v5171_v35  ;;  %v7900_v11 = vsel %vm3478_vm0, %v3442_v16, -inf }
 0x5d4   :  { %5172 = vpow2.f32 %v3613_v20  ;;  %3547 = vmax.xlane.f32.xlu0 %v7900_v11 }
 0x5d7   :  { %v3520_v7 = vpop.xlane.xlu2 %3519 }
 0x5d8   :  { %v7904_v1 = vsub.f32 %v7790_v32, %v3520_v7  ;;  %v3443_v46 = vpop.f32.mrf.mxu1 }
 0x5d9   :  { %v3444_v44 = vadd.f32 %v7756_v51, %v3443_v46 }
 0x5da   :  { %v5173_v33 = vpop.eup %5172  ;;  %v3615_v15 = vmul.f32 1.442695, %v7904_v1 }
 0x5db   :  { %3677 = vadd.xlane.f32.xlu2 %v5173_v33  ;;  %v7910_v59 = vsel %vm3478_vm0, %v3444_v44, -inf }
 0x5dc   :  { %5174 = vpow2.f32 %v3615_v15  ;;  %3549 = vmax.xlane.f32.xlu1 %v7910_v59 }
 0x5df   :  { %v3522_v21 = vpop.xlane.xlu2 %3521 }
 0x5e0   :  { %v7914_v26 = vsub.f32 %v7797_v18, %v3522_v21  ;;  %v3446_v32 = vpop.f32.mrf.mxu1 }
 0x5e1   :  { %v3447_v62 = vadd.f32 %v7756_v51, %v3446_v32 }
 0x5e2   :  { %v5175_v23 = vpop.eup %5174  ;;  %v3617_v17 = vmul.f32 1.442695, %v7914_v26 }
 0x5e3   :  { %3679 = vadd.xlane.f32.xlu0 %v5175_v23  ;;  %v7920_v36 = vsel %vm3478_vm0, %v3447_v62, -inf }
 0x5e4   :  { %5176 = vpow2.f32 %v3617_v17  ;;  %3551 = vmax.xlane.f32.xlu2 %v7920_v36 }
 0x5e7   :  { %v3524_v6 = vpop.xlane.xlu0 %3523 }
 0x5e8   :  { %v7924_v31 = vsub.f32 %v7804_v2, %v3524_v6  ;;  %v3448_v18 = vpop.f32.mrf.mxu1 }
 0x5e9   :  { %v3449_v52 = vadd.f32 %v7756_v51, %v3448_v18 }
 0x5ea   :  { %v5177_v55 = vpop.eup %5176  ;;  %v3619_v61 = vmul.f32 1.442695, %v7924_v31 }
 0x5eb   :  { %3681 = vadd.xlane.f32.xlu1 %v5177_v55  ;;  %v7930_v22 = vsel %vm3478_vm0, %v3449_v52, -inf }
 0x5ec   :  { %5178 = vpow2.f32 %v3619_v61  ;;  %3553 = vmax.xlane.f32.xlu0 %v7930_v22 }
 0x5ef   :  { %v3526_v3 = vpop.xlane.xlu1 %3525 }
 0x5f0   :  { %v7934_v56 = vsub.f32 %v7811_v24, %v3526_v3  ;;  %v3451_v2 = vpop.f32.mrf.mxu1 }
 0x5f1   :  { %v3452_v8 = vadd.f32 %v7756_v51, %v3451_v2 }
 0x5f2   :  { %v5179_v9 = vpop.eup %5178  ;;  %v3621_v5 = vmul.f32 1.442695, %v7934_v56 }
 0x5f3   :  { %3683 = vadd.xlane.f32.xlu2 %v5179_v9  ;;  %v7940_v48 = vsel %vm3478_vm0, %v3452_v8, -inf }
 0x5f4   :  { %5180 = vpow2.f32 %v3621_v5  ;;  %3555 = vmax.xlane.f32.xlu1 %v7940_v48 }
 0x5f7   :  { %v3528_v14 = vpop.xlane.xlu2 %3527 }
 0x5f8   :  { %v7944_v27 = vsub.f32 %v7818_v25, %v3528_v14  ;;  %v3453_v24 = vpop.f32.mrf.mxu1 }
 0x5f9   :  { %v3454_v0 = vadd.f32 %v7756_v51, %v3453_v24 }
 0x5fa   :  { %v5181_v10 = vpop.eup %5180  ;;  %v3623_v30 = vmul.f32 1.442695, %v7944_v27 }
 0x5fb   :  { %3685 = vadd.xlane.f32.xlu0 %v5181_v10  ;;  %v7950_v41 = vsel %vm3478_vm0, %v3454_v0, -inf }
 0x5fc   :  { %5182 = vpow2.f32 %v3623_v30  ;;  %3557 = vmax.xlane.f32.xlu2 %v7950_v41 }
 0x5ff   :  { %v3530_v19 = vpop.xlane.xlu0 %3529 }
 0x600   :  { %v7954_v57 = vsub.f32 %v7825_v63, %v3530_v19  ;;  %v3456_v25 = vpop.f32.mrf.mxu1 }
 0x601   :  { %v3457_v37 = vadd.f32 %v7756_v51, %v3456_v25 }
 0x602   :  { %v5183_v28 = vpop.eup %5182  ;;  %v3625_v34 = vmul.f32 1.442695, %v7954_v57 }
 0x603   :  { %3687 = vadd.xlane.f32.xlu1 %v5183_v28  ;;  %v7960_v4 = vsel %vm3478_vm0, %v3457_v37, -inf }
 0x604   :  { %5184 = vpow2.f32 %v3625_v34  ;;  %3559 = vmax.xlane.f32.xlu0 %v7960_v4 }
 0x607   :  { %v3532_v54 = vpop.xlane.xlu1 %3531 }
 0x608   :  { %v7964_v13 = vsub.f32 %v7832_v47, %v3532_v54  ;;  %v3458_v63 = vpop.f32.mrf.mxu1 }
 0x609   :  { %v3459_v53 = vadd.f32 %v7756_v51, %v3458_v63 }
 0x60a   :  { %v5185_v16 = vpop.eup %5184  ;;  %v3627_v35 = vmul.f32 1.442695, %v7964_v13 }
 0x60b   :  { %3689 = vadd.xlane.f32.xlu2 %v5185_v16  ;;  %v7970_v20 = vsel %vm3478_vm0, %v3459_v53, -inf }
 0x60c   :  { %5186 = vpow2.f32 %v3627_v35  ;;  %3561 = vmax.xlane.f32.xlu1 %v7970_v20 }
 0x60f   :  { %v3534_v18 = vpop.xlane.xlu2 %3533 }
 0x610   :  { %v3461_v7 = vpop.f32.mrf.mxu1 }
 0x611   :  { %v3462_v46 = vadd.f32 %v7756_v51, %v3461_v7 }
 0x612   :  { %v5187_v44 = vpop.eup %5186 }
 0x613   :  { %3691 = vadd.xlane.f32.xlu0 %v5187_v44  ;;  %v7976_v47 = vsel %vm3478_vm0, %v3462_v46, -inf }
 0x614   :  { %3563 = vmax.xlane.f32.xlu2 %v7976_v47 }
 0x617   :  { %v3536_v23 = vpop.xlane.xlu0 %3535 }
 0x618   :  { %v3463_v33 = vpop.f32.mrf.mxu1  ;;  %v7992_v6 = vsub.f32 %v7846_v43, %v3536_v23 }
 0x619   :  { %v3464_v15 = vadd.f32 %v7756_v51, %v3463_v33 }
 0x61a   :  { %v3631_v55 = vmul.f32 1.442695, %v7992_v6 }
 0x61b   :  { %v7982_v21 = vsel %vm3478_vm0, %v3464_v15, -inf }
 0x61c   :  { %3565 = vmax.xlane.f32.xlu0 %v7982_v21  ;;  %5188 = vpow2.f32 %v3631_v55 }
 0x61f   :  { %v3538_v3 = vpop.xlane.xlu1 %3537 }
 0x620   :  { %v3466_v32 = vpop.f32.mrf.mxu1  ;;  %v8002_v8 = vsub.f32 %v7853_v40, %v3538_v3  ;;  %v8016_v40 = vsub.f32 %v7839_v49, %v3534_v18 }
 0x621   :  { %v3467_v62 = vadd.f32 %v7756_v51, %v3466_v32 }
 0x622   :  { %v3633_v24 = vmul.f32 1.442695, %v8002_v8  ;;  %v5189_v30 = vpop.eup %5188  ;;  %v3629_v34 = vmul.f32 1.442695, %v8016_v40 }
 0x623   :  { %v7988_v17 = vsel %vm3478_vm0, %v3467_v62, -inf }
 0x624   :  { %3567 = vmax.xlane.f32.xlu1 %v7988_v17 }
 0x627   :  { %v3540_v9 = vpop.xlane.xlu2 %3539 }
 0x628   :  { %v3468_v52 = vpop.f32.mrf.mxu1 }
 0x629   :  { %v3469_v61 = vadd.f32 %v7756_v51, %v3468_v52 }
 0x62b   :  { %v7998_v2 = vsel %vm3478_vm0, %v3469_v61, -inf }
 0x62c   :  { %3569 = vmax.xlane.f32.xlu2 %v7998_v2 }
 0x62f   :  { %v3542_v43 = vpop.xlane.xlu0 %3541 }
 0x630   :  { %v8005_v5 = vsub.f32 %v7870_v38, %v3542_v43  ;;  %v3471_v14 = vpop.f32.mrf.mxu1 }
 0x631   :  { %v3472_v0 = vadd.f32 %v7756_v51, %v3471_v14 }
 0x632   :  { %v3637_v10 = vmul.f32 1.442695, %v8005_v5 }
 0x633   :  { %v8012_v19 = vsel %vm3478_vm0, %v3472_v0, -inf }
 0x634   :  { %5190 = vpow2.f32 %v3637_v10  ;;  %3571 = vmax.xlane.f32.xlu0 %v8012_v19  ;;  %3695 = vadd.xlane.f32.xlu2 %v5189_v30 }
 0x635   :  { %5192 = vpow2.f32 %v3633_v24 }
 0x636   :  { %v3672_v38 = vpop.xlane.xlu2 %3671 }
 0x637   :  { %5194 = vlog2.f32 %v3672_v38  ;;  %v3544_v25 = vpop.xlane.xlu1 %3543 }
 0x638   :  { %v8019_v37 = vsub.f32 %v7880_v45, %v3544_v25  ;;  %v3473_v28 = vpop.f32.mrf.mxu1  ;;  %v8030_v45 = vsub.f32 %v7860_v50, %v3540_v9 }
 0x639   :  { %v3474_v54 = vadd.f32 %v7756_v51, %v3473_v28 }
 0x63a   :  { %v5191_v63 = vpop.eup %5190  ;;  %v3639_v53 = vmul.f32 1.442695, %v8019_v37  ;;  %v3635_v44 = vmul.f32 1.442695, %v8030_v45 }
 0x63b   :  { %v5193_v16 = vpop.eup %5192  ;;  %v8026_v49 = vsel %vm3478_vm0, %v3474_v54, -inf }
 0x63c   :  { %5196 = vpow2.f32 %v3639_v53  ;;  %3573 = vmax.xlane.f32.xlu1 %v8026_v49  ;;  %3697 = vadd.xlane.f32.xlu0 %v5193_v16 }
 0x63d   :  { %v5195_v35 = vpop.eup %5194  ;;  %5198 = vpow2.f32 %v3629_v34  ;;  %3701 = vadd.xlane.f32.xlu2 %v5191_v63 }
 0x63e   :  { %v3736_v7 = vmul.f32 0.6931472, %v5195_v35  ;;  %v3674_v51 = vpop.xlane.xlu0 %3673 }
 0x63f   :  { %5200 = vlog2.f32 %v3674_v51  ;;  %v3546_v33 = vpop.xlane.xlu2 %3545 }
 0x640   :  { %v3799_v46 = vsub.f32 %v7864_v39, %v3736_v7  ;;  %5202 = vpow2.f32 %v3635_v44  ;;  %v8038_v50 = vsub.f32 %v7890_v42, %v3546_v33 }
 0x642   :  { %v5197_v12 = vpop.eup %5196  ;;  %3831 = vst [vmem:[%s8230_s9] sm:$0xff] %v3799_v46  ;;  %v3641_v55 = vmul.f32 1.442695, %v8038_v50 }
 0x643   :  { %v5199_v15 = vpop.eup %5198 }
 0x644   :  { %3693 = vadd.xlane.f32.xlu1 %v5199_v15  ;;  %3703 = vadd.xlane.f32.xlu0 %v5197_v12 }
 0x645   :  { %v5201_v32 = vpop.eup %5200 }
 0x646   :  { %v3738_v62 = vmul.f32 0.6931472, %v5201_v32  ;;  %v3676_v23 = vpop.xlane.xlu1 %3675  ;;  %v5203_v3 = vpop.eup %5202 }
 0x647   :  { %5204 = vlog2.f32 %v3676_v23  ;;  %v3548_v39 = vpop.xlane.xlu0 %3547 }
 0x648   :  { %v3800_v18 = vsub.f32 %v7874_v60, %v3738_v62  ;;  %v8042_v52 = vsub.f32 %v7900_v11, %v3548_v39 }
 0x64a   :  { %3832 = vst [vmem:[%s8230_s9 + $0x8] sm:$0xff] %v3800_v18  ;;  %v3643_v61 = vmul.f32 1.442695, %v8042_v52 }
 0x64c   :  { %5206 = vpow2.f32 %v3643_v61  ;;  %3699 = vadd.xlane.f32.xlu1 %v5203_v3 }
 0x64d   :  { %v5205_v42 = vpop.eup %5204  ;;  %5208 = vpow2.f32 %v3641_v55 }
 0x64e   :  { %v3740_v9 = vmul.f32 0.6931472, %v5205_v42  ;;  %v3678_v43 = vpop.xlane.xlu2 %3677 }
 0x64f   :  { %5210 = vlog2.f32 %v3678_v43  ;;  %v3550_v60 = vpop.xlane.xlu1 %3549 }
 0x650   :  { %v3801_v11 = vsub.f32 %v7884_v58, %v3740_v9  ;;  %v8051_v14 = vsub.f32 %v7910_v59, %v3550_v60 }
 0x652   :  { %v5207_v24 = vpop.eup %5206  ;;  %3833 = vst [vmem:[%s8230_s9 + $0x10] sm:$0xff] %v3801_v11  ;;  %v3645_v0 = vmul.f32 1.442695, %v8051_v14 }
 0x653   :  { %v5209_v10 = vpop.eup %5208  ;;  %3707 = vadd.xlane.f32.xlu2 %v5207_v24 }
 0x654   :  { %5212 = vpow2.f32 %v3645_v0  ;;  %3705 = vadd.xlane.f32.xlu1 %v5209_v10 }
 0x655   :  { %v5211_v30 = vpop.eup %5210 }
 0x656   :  { %v3742_v38 = vmul.f32 0.6931472, %v5211_v30  ;;  %v3680_v25 = vpop.xlane.xlu0 %3679 }
 0x657   :  { %5214 = vlog2.f32 %v3680_v25  ;;  %v3552_v28 = vpop.xlane.xlu2 %3551 }
 0x658   :  { %v3802_v58 = vsub.f32 %v7894_v29, %v3742_v38  ;;  %v8059_v59 = vsub.f32 %v7920_v36, %v3552_v28 }
 0x65a   :  { %v5213_v34 = vpop.eup %5212  ;;  %3834 = vst [vmem:[%s8230_s9 + $0x18] sm:$0xff] %v3802_v58  ;;  %v3647_v54 = vmul.f32 1.442695, %v8059_v59 }
 0x65b   :  { %3709 = vadd.xlane.f32.xlu0 %v5213_v34 }
 0x65c   :  { %5216 = vpow2.f32 %v3647_v54 }
 0x65d   :  { %v5215_v63 = vpop.eup %5214 }
 0x65e   :  { %v3744_v53 = vmul.f32 0.6931472, %v5215_v63  ;;  %v3682_v16 = vpop.xlane.xlu1 %3681 }
 0x65f   :  { %5218 = vlog2.f32 %v3682_v16  ;;  %v3554_v35 = vpop.xlane.xlu0 %3553 }
 0x660   :  { %v3803_v7 = vsub.f32 %v7904_v1, %v3744_v53  ;;  %v8067_v29 = vsub.f32 %v7930_v22, %v3554_v35 }
 0x662   :  { %v5217_v36 = vpop.eup %5216  ;;  %3835 = vst [vmem:[%s8230_s9 + $0x20] sm:$0xff] %v3803_v7  ;;  %v3649_v51 = vmul.f32 1.442695, %v8067_v29 }
 0x663   :  { %3711 = vadd.xlane.f32.xlu1 %v5217_v36 }
 0x664   :  { %5220 = vpow2.f32 %v3649_v51 }
 0x665   :  { %v5219_v46 = vpop.eup %5218 }
 0x666   :  { %v3746_v44 = vmul.f32 0.6931472, %v5219_v46  ;;  %v3684_v12 = vpop.xlane.xlu2 %3683 }
 0x667   :  { %5222 = vlog2.f32 %v3684_v12  ;;  %v3556_v33 = vpop.xlane.xlu1 %3555 }
 0x668   :  { %v3804_v15 = vsub.f32 %v7914_v26, %v3746_v44  ;;  %v8075_v1 = vsub.f32 %v7940_v48, %v3556_v33 }
 0x66a   :  { %v5221_v22 = vpop.eup %5220  ;;  %3836 = vst [vmem:[%s8230_s9 + $0x28] sm:$0xff] %v3804_v15  ;;  %v3651_v32 = vmul.f32 1.442695, %v8075_v1 }
 0x66b   :  { %3713 = vadd.xlane.f32.xlu2 %v5221_v22 }
 0x66c   :  { %5224 = vpow2.f32 %v3651_v32 }
 0x66d   :  { %v5223_v62 = vpop.eup %5222 }
 0x66e   :  { %v3748_v23 = vmul.f32 0.6931472, %v5223_v62  ;;  %v3686_v39 = vpop.xlane.xlu0 %3685 }
 0x66f   :  { %5226 = vlog2.f32 %v3686_v39  ;;  %v3558_v18 = vpop.xlane.xlu2 %3557 }
 0x670   :  { %v3805_v55 = vsub.f32 %v7924_v31, %v3748_v23  ;;  %v8083_v26 = vsub.f32 %v7950_v41, %v3558_v18 }
 0x672   :  { %v5225_v48 = vpop.eup %5224  ;;  %3837 = vst [vmem:[%s8230_s9 + $0x30] sm:$0xff] %v3805_v55  ;;  %v3653_v61 = vmul.f32 1.442695, %v8083_v26 }
 0x673   :  { %3715 = vadd.xlane.f32.xlu0 %v5225_v48 }
 0x674   :  { %5228 = vpow2.f32 %v3653_v61 }
 0x675   :  { %v5227_v3 = vpop.eup %5226 }
 0x676   :  { %v3750_v42 = vmul.f32 0.6931472, %v5227_v3  ;;  %v3688_v9 = vpop.xlane.xlu1 %3687 }
 0x677   :  { %5230 = vlog2.f32 %v3688_v9  ;;  %v3560_v43 = vpop.xlane.xlu0 %3559 }
 0x678   :  { %v3806_v60 = vsub.f32 %v7934_v56, %v3750_v42  ;;  %v8091_v31 = vsub.f32 %v7960_v4, %v3560_v43 }
 0x67a   :  { %v5229_v41 = vpop.eup %5228  ;;  %3838 = vst [vmem:[%s8230_s9 + $0x38] sm:$0xff] %v3806_v60  ;;  %v3655_v11 = vmul.f32 1.442695, %v8091_v31 }
 0x67b   :  { %3717 = vadd.xlane.f32.xlu1 %v5229_v41 }
 0x67c   :  { %5232 = vpow2.f32 %v3655_v11 }
 0x67d   :  { %v5231_v24 = vpop.eup %5230 }
 0x67e   :  { %v3752_v0 = vmul.f32 0.6931472, %v5231_v24  ;;  %v3690_v10 = vpop.xlane.xlu2 %3689 }
 0x67f   :  { %5234 = vlog2.f32 %v3690_v10  ;;  %v3562_v30 = vpop.xlane.xlu1 %3561 }
 0x680   :  { %v3807_v38 = vsub.f32 %v7944_v27, %v3752_v0  ;;  %v8099_v56 = vsub.f32 %v7970_v20, %v3562_v30 }
 0x682   :  { %v5233_v4 = vpop.eup %5232  ;;  %3839 = vst [vmem:[%s8230_s9 + $0x40] sm:$0xff] %v3807_v38  ;;  %v3657_v25 = vmul.f32 1.442695, %v8099_v56 }
 0x683   :  { %3719 = vadd.xlane.f32.xlu2 %v5233_v4 }
 0x684   :  { %5236 = vpow2.f32 %v3657_v25 }
 0x685   :  { %v5235_v28 = vpop.eup %5234 }
 0x686   :  { %v3754_v58 = vmul.f32 0.6931472, %v5235_v28  ;;  %v3692_v34 = vpop.xlane.xlu0 %3691 }
 0x687   :  { %5238 = vlog2.f32 %v3692_v34  ;;  %v3564_v54 = vpop.xlane.xlu2 %3563 }
 0x688   :  { %v3808_v63 = vsub.f32 %v7954_v57, %v3754_v58  ;;  %v8107_v27 = vsub.f32 %v7976_v47, %v3564_v54 }
 0x68a   :  { %v5237_v20 = vpop.eup %5236  ;;  %3840 = vst [vmem:[%s8230_s9 + $0x48] sm:$0xff] %v3808_v63  ;;  %v3659_v53 = vmul.f32 1.442695, %v8107_v27 }
 0x68b   :  { %3721 = vadd.xlane.f32.xlu0 %v5237_v20 }
 0x68c   :  { %5240 = vpow2.f32 %v3659_v53 }
 0x68d   :  { %v5239_v16 = vpop.eup %5238 }
 0x68e   :  { %v3756_v35 = vmul.f32 0.6931472, %v5239_v16 }
 0x68f   :  { %v3566_v7 = vpop.xlane.xlu0 %3565 }
 0x690   :  { %v3809_v36 = vsub.f32 %v7964_v13, %v3756_v35  ;;  %v8115_v51 = vsub.f32 %v7982_v21, %v3566_v7 }
 0x692   :  { %v5241_v57 = vpop.eup %5240  ;;  %3841 = vst [vmem:[%s8230_s9 + $0x50] sm:$0xff] %v3809_v36  ;;  %v3661_v47 = vmul.f32 1.442695, %v8115_v51 }
 0x693   :  { %3723 = vadd.xlane.f32.xlu1 %v5241_v57 }
 0x694   :  { %5242 = vpow2.f32 %v3661_v47 }
 0x697   :  { %v3568_v46 = vpop.xlane.xlu1 %3567 }
 0x698   :  { %v8122_v44 = vsub.f32 %v7988_v17, %v3568_v46 }
 0x69a   :  { %v5243_v12 = vpop.eup %5242  ;;  %v3663_v33 = vmul.f32 1.442695, %v8122_v44 }
 0x69b   :  { %3725 = vadd.xlane.f32.xlu2 %v5243_v12 }
 0x69c   :  { %5244 = vpow2.f32 %v3663_v33 }
 0x69f   :  { %v3570_v13 = vpop.xlane.xlu2 %3569 }
 0x6a0   :  { %v8126_v21 = vsub.f32 %v7998_v2, %v3570_v13 }
 0x6a2   :  { %v5245_v15 = vpop.eup %5244  ;;  %v3665_v22 = vmul.f32 1.442695, %v8126_v21 }
 0x6a3   :  { %3727 = vadd.xlane.f32.xlu0 %v5245_v15 }
 0x6a4   :  { %5246 = vpow2.f32 %v3665_v22 }
 0x6a7   :  { %v3696_v32 = vpop.xlane.xlu2 %3695  ;;  %v3572_v62 = vpop.xlane.xlu0 %3571 }
 0x6a8   :  { %5248 = vlog2.f32 %v3696_v32  ;;  %v8130_v17 = vsub.f32 %v8012_v19, %v3572_v62 }
 0x6aa   :  { %v5247_v23 = vpop.eup %5246  ;;  %v3667_v39 = vmul.f32 1.442695, %v8130_v17 }
 0x6ab   :  { %3729 = vadd.xlane.f32.xlu1 %v5247_v23 }
 0x6ac   :  { %5250 = vpow2.f32 %v3667_v39 }
 0x6ae   :  { %v5249_v18 = vpop.eup %5248 }
 0x6af   :  { %v3760_v55 = vmul.f32 0.6931472, %v5249_v18  ;;  %v3574_v2 = vpop.xlane.xlu1 %3573  ;;  %v3698_v48 = vpop.xlane.xlu0 %3697 }
 0x6b0   :  { %v8134_v61 = vsub.f32 %v8026_v49, %v3574_v2  ;;  %v3702_v3 = vpop.xlane.xlu2 %3701  ;;  %5252 = vlog2.f32 %v3698_v48 }
 0x6b1   :  { %v3811_v42 = vsub.f32 %v7992_v6, %v3760_v55  ;;  %5254 = vlog2.f32 %v3702_v3 }
 0x6b2   :  { %v5251_v9 = vpop.eup %5250  ;;  %v3669_v19 = vmul.f32 1.442695, %v8134_v61 }
 0x6b3   :  { %3843 = vst [vmem:[%s8230_s9 + $0x60] sm:$0xff] %v3811_v42  ;;  %3731 = vadd.xlane.f32.xlu2 %v5251_v9 }
 0x6b4   :  { %5256 = vpow2.f32 %v3669_v19 }
 0x6b6   :  { %v5253_v43 = vpop.eup %5252 }
 0x6b7   :  { %v5255_v60 = vpop.eup %5254  ;;  %v3762_v41 = vmul.f32 0.6931472, %v5253_v43  ;;  %v3694_v11 = vpop.xlane.xlu1 %3693 }
 0x6b8   :  { %v3704_v49 = vpop.xlane.xlu0 %3703  ;;  %v3766_v24 = vmul.f32 0.6931472, %v5255_v60  ;;  %5258 = vlog2.f32 %v3694_v11 }
 0x6b9   :  { %v3812_v0 = vsub.f32 %v8002_v8, %v3762_v41  ;;  %5260 = vlog2.f32 %v3704_v49 }
 0x6ba   :  { %v5257_v6 = vpop.eup %5256  ;;  %v3814_v10 = vsub.f32 %v8005_v5, %v3766_v24 }
 0x6bb   :  { %3844 = vst [vmem:[%s8230_s9 + $0x68] sm:$0xff] %v3812_v0  ;;  %3733 = vadd.xlane.f32.xlu0 %v5257_v6 }
 0x6bc   :  { %3846 = vst [vmem:[%s8230_s9 + $0x78] sm:$0xff] %v3814_v10 }
 0x6be   :  { %v5259_v30 = vpop.eup %5258 }
 0x6bf   :  { %v5261_v38 = vpop.eup %5260  ;;  %v3758_v4 = vmul.f32 0.6931472, %v5259_v30  ;;  %v3700_v25 = vpop.xlane.xlu1 %3699 }
 0x6c0   :  { %v3768_v28 = vmul.f32 0.6931472, %v5261_v38  ;;  %5262 = vlog2.f32 %v3700_v25 }
 0x6c1   :  { %v3810_v8 = vsub.f32 %v8016_v40, %v3758_v4 }
 0x6c2   :  { %v3815_v58 = vsub.f32 %v8019_v37, %v3768_v28 }
 0x6c3   :  { %3842 = vst [vmem:[%s8230_s9 + $0x58] sm:$0xff] %v3810_v8 }
 0x6c4   :  { %3847 = vst [vmem:[%s8230_s9 + $0x80] sm:$0xff] %v3815_v58 }
 0x6c6   :  { %v5263_v5 = vpop.eup %5262  ;;  %v3708_v34 = vpop.xlane.xlu2 %3707 }
 0x6c7   :  { %v3764_v54 = vmul.f32 0.6931472, %v5263_v5  ;;  %5264 = vlog2.f32 %v3708_v34  ;;  %v3706_v63 = vpop.xlane.xlu1 %3705 }
 0x6c8   :  { %5266 = vlog2.f32 %v3706_v63 }
 0x6c9   :  { %v3813_v20 = vsub.f32 %v8030_v45, %v3764_v54 }
 0x6cb   :  { %3845 = vst [vmem:[%s8230_s9 + $0x70] sm:$0xff] %v3813_v20 }
 0x6cd   :  { %v5265_v40 = vpop.eup %5264 }
 0x6ce   :  { %v5267_v37 = vpop.eup %5266  ;;  %v3772_v53 = vmul.f32 0.6931472, %v5265_v40  ;;  %v3710_v16 = vpop.xlane.xlu0 %3709 }
 0x6cf   :  { %v3770_v35 = vmul.f32 0.6931472, %v5267_v37  ;;  %5268 = vlog2.f32 %v3710_v16 }
 0x6d0   :  { %v3817_v7 = vsub.f32 %v8042_v52, %v3772_v53 }
 0x6d1   :  { %v3816_v36 = vsub.f32 %v8038_v50, %v3770_v35 }
 0x6d2   :  { %3849 = vst [vmem:[%s8230_s9 + $0x90] sm:$0xff] %v3817_v7 }
 0x6d3   :  { %3848 = vst [vmem:[%s8230_s9 + $0x88] sm:$0xff] %v3816_v36 }
 0x6d5   :  { %v5269_v45 = vpop.eup %5268 }
 0x6d6   :  { %v3774_v57 = vmul.f32 0.6931472, %v5269_v45  ;;  %v3712_v47 = vpop.xlane.xlu1 %3711 }
 0x6d7   :  { %5270 = vlog2.f32 %v3712_v47 }
 0x6d8   :  { %v3818_v46 = vsub.f32 %v8051_v14, %v3774_v57 }
 0x6da   :  { %3850 = vst [vmem:[%s8230_s9 + $0x98] sm:$0xff] %v3818_v46 }
 0x6dd   :  { %v5271_v52 = vpop.eup %5270 }
 0x6de   :  { %v3776_v50 = vmul.f32 0.6931472, %v5271_v52  ;;  %v3714_v12 = vpop.xlane.xlu2 %3713 }
 0x6df   :  { %5272 = vlog2.f32 %v3714_v12 }
 0x6e0   :  { %v3819_v33 = vsub.f32 %v8059_v59, %v3776_v50 }
 0x6e2   :  { %3851 = vst [vmem:[%s8230_s9 + $0xa0] sm:$0xff] %v3819_v33 }
 0x6e5   :  { %v5273_v13 = vpop.eup %5272 }
 0x6e6   :  { %v3778_v15 = vmul.f32 0.6931472, %v5273_v13  ;;  %v3716_v22 = vpop.xlane.xlu0 %3715 }
 0x6e7   :  { %5274 = vlog2.f32 %v3716_v22 }
 0x6e8   :  { %v3820_v14 = vsub.f32 %v8067_v29, %v3778_v15 }
 0x6ea   :  { %3852 = vst [vmem:[%s8230_s9 + $0xa8] sm:$0xff] %v3820_v14 }
 0x6ed   :  { %v5275_v32 = vpop.eup %5274 }
 0x6ee   :  { %v3780_v62 = vmul.f32 0.6931472, %v5275_v32  ;;  %v3718_v23 = vpop.xlane.xlu1 %3717 }
 0x6ef   :  { %5276 = vlog2.f32 %v3718_v23 }
 0x6f0   :  { %v3821_v59 = vsub.f32 %v8075_v1, %v3780_v62 }
 0x6f2   :  { %3853 = vst [vmem:[%s8230_s9 + $0xb0] sm:$0xff] %v3821_v59 }
 0x6f5   :  { %v5277_v39 = vpop.eup %5276 }
 0x6f6   :  { %v3782_v18 = vmul.f32 0.6931472, %v5277_v39  ;;  %v3720_v55 = vpop.xlane.xlu2 %3719 }
 0x6f7   :  { %5278 = vlog2.f32 %v3720_v55 }
 0x6f8   :  { %v3822_v29 = vsub.f32 %v8083_v26, %v3782_v18 }
 0x6fa   :  { %3854 = vst [vmem:[%s8230_s9 + $0xb8] sm:$0xff] %v3822_v29 }
 0x6fd   :  { %v5279_v2 = vpop.eup %5278 }
 0x6fe   :  { %v3784_v48 = vmul.f32 0.6931472, %v5279_v2  ;;  %v3722_v3 = vpop.xlane.xlu0 %3721 }
 0x6ff   :  { %5280 = vlog2.f32 %v3722_v3 }
 0x700   :  { %v3823_v1 = vsub.f32 %v8091_v31, %v3784_v48 }
 0x702   :  { %3855 = vst [vmem:[%s8230_s9 + $0xc0] sm:$0xff] %v3823_v1 }
 0x705   :  { %v5281_v42 = vpop.eup %5280 }
 0x706   :  { %v3786_v9 = vmul.f32 0.6931472, %v5281_v42  ;;  %v3724_v19 = vpop.xlane.xlu1 %3723 }
 0x707   :  { %5282 = vlog2.f32 %v3724_v19 }
 0x708   :  { %v3824_v26 = vsub.f32 %v8099_v56, %v3786_v9 }
 0x70a   :  { %3856 = vst [vmem:[%s8230_s9 + $0xc8] sm:$0xff] %v3824_v26 }
 0x70d   :  { %v5283_v43 = vpop.eup %5282 }
 0x70e   :  { %v3788_v60 = vmul.f32 0.6931472, %v5283_v43  ;;  %v3726_v41 = vpop.xlane.xlu2 %3725 }
 0x70f   :  { %5284 = vlog2.f32 %v3726_v41 }
 0x710   :  { %v3825_v31 = vsub.f32 %v8107_v27, %v3788_v60 }
 0x712   :  { %3857 = vst [vmem:[%s8230_s9 + $0xd0] sm:$0xff] %v3825_v31 }
 0x715   :  { %v5285_v11 = vpop.eup %5284 }
 0x716   :  { %v3790_v49 = vmul.f32 0.6931472, %v5285_v11  ;;  %v3728_v24 = vpop.xlane.xlu0 %3727 }
 0x717   :  { %5286 = vlog2.f32 %v3728_v24 }
 0x718   :  { %v3826_v56 = vsub.f32 %v8115_v51, %v3790_v49 }
 0x71a   :  { %3858 = vst [vmem:[%s8230_s9 + $0xd8] sm:$0xff] %v3826_v56 }
 0x71d   :  { %v5287_v0 = vpop.eup %5286 }
 0x71e   :  { %v3792_v6 = vmul.f32 0.6931472, %v5287_v0  ;;  %v3730_v10 = vpop.xlane.xlu1 %3729 }
 0x71f   :  { %5288 = vlog2.f32 %v3730_v10 }
 0x720   :  { %v3827_v27 = vsub.f32 %v8122_v44, %v3792_v6 }
 0x722   :  { %3859 = vst [vmem:[%s8230_s9 + $0xe0] sm:$0xff] %v3827_v27 }
 0x725   :  { %v5289_v30 = vpop.eup %5288 }
 0x726   :  { %v3794_v38 = vmul.f32 0.6931472, %v5289_v30  ;;  %v3732_v4 = vpop.xlane.xlu2 %3731 }
 0x727   :  { %5290 = vlog2.f32 %v3732_v4 }
 0x728   :  { %v3828_v51 = vsub.f32 %v8126_v21, %v3794_v38 }
 0x72a   :  { %3860 = vst [vmem:[%s8230_s9 + $0xe8] sm:$0xff] %v3828_v51 }
 0x72d   :  { %v5291_v25 = vpop.eup %5290 }
 0x72e   :  { %v3796_v28 = vmul.f32 0.6931472, %v5291_v25  ;;  %v3734_v8 = vpop.xlane.xlu0 %3733 }
 0x72f   :  { %5292 = vlog2.f32 %v3734_v8 }
 0x730   :  { %v3829_v44 = vsub.f32 %v8130_v17, %v3796_v28 }
 0x732   :  { %3861 = vst [vmem:[%s8230_s9 + $0xf0] sm:$0xff] %v3829_v44 }
 0x735   :  { %v5293_v58 = vpop.eup %5292 }
 0x736   :  { %v3798_v5 = vmul.f32 0.6931472, %v5293_v58 }
 0x738   :  { %v3830_v34 = vsub.f32 %v8134_v61, %v3798_v5 }
 0x73a   :  { %3862 = vst [vmem:[%s8230_s9 + $0xf8] sm:$0xff] %v3830_v34 }

</bundles_post_ra>
